<compile_context>
chip_gen: v7x
topology: tpu7x:2x2x1
jax: 0.10.0
libtpu: 0.0.40
codegen_flags: <defaults>
</compile_context>

<pallas_src>
import functools

import jax
import jax.numpy as jnp
from jax.experimental import pallas as pl
from jax.experimental.pallas import tpu as pltpu

NEG_SLOPE = 0.2      # GATv2Conv default negative_slope
MASK_BIG = 1e30      # additive mask magnitude (kept in f32 -- do NOT bf16 this)

_VMEM = pl.BlockSpec(memory_space=pltpu.MemorySpace.VMEM)


# ----------------------------------------------------------------------------
# Fused Pallas kernel: 3 x (GATv2Conv + ReLU) -> mean-pool -> Linear -> tanh
# ----------------------------------------------------------------------------
def fused_policy_kernel(adj_ref, ea_ref, x_ref, pool_ref, r2_ref, sel2_ref,
                        wlr1, blr1, wew1, ar1, bs1,
                        wlr2, blr2, wew2, ar2, bs2,
                        wlr3, blr3, wew3, ar3, bs3,
                        wlin_ref, blin_ref,
                        out_ref, *, num_heads, out_ch, num_nodes):
    n = num_nodes
    c = out_ch
    hc = num_heads * out_ch

    # Additive attention mask built in-kernel from the int8 adjacency:
    # 0.0 where edge j->i exists, -1e30 otherwise.  Stays f32 on purpose.
    mask_bias = (adj_ref[...].astype(jnp.float32) - 1.0) * MASK_BIG       # [N, N]

    r2 = r2_ref[...]        # [HC, N*HC]  channel-replication matrix (0/1)
    sel2 = sel2_ref[...]    # [N,  N*HC]  source-node selector        (0/1)

    # Edge-attribute term replicated over channels; it is layer-invariant so
    # it is computed ONCE and reused by all three layers:
    #   ea_wide[i, j*HC + hc] = ea[i, j]
    ea_wide = jnp.dot(ea_ref[...], sel2, preferred_element_type=jnp.float32)

    def gat_layer(h_in, wlr_ref, blr_ref, wew_ref, ar_ref, b_ref):
        # Merged lin_l / lin_r projection: one MXU matmul, 2*HC = 128 lanes.
        xlr = (jnp.dot(h_in, wlr_ref[...], preferred_element_type=jnp.float32)
               + blr_ref[...])                                            # [N, 2*HC]
        xl = xlr[:, :hc]       # lin_l : source-node features             [N, HC]
        xr = xlr[:, hc:]       # lin_r : target-node features             [N, HC]

        # ---- channel-lane-dense GATv2 score slab (full 128-lane fill) ----
        #   e[i, j*HC + hc] = xr[i, hc] + xl[j, hc] + ea[i, j] * we[hc]
        xr_rep = jnp.dot(xr, r2, preferred_element_type=jnp.float32)      # [N, N*HC]
        xl_rep = jnp.dot(xl, r2, preferred_element_type=jnp.float32)      # [N, N*HC]
        xl_row = jnp.sum(sel2 * xl_rep, axis=0, keepdims=True)            # [1, N*HC]
        e = xr_rep + xl_row + ea_wide * wew_ref[...]
        e = jnp.maximum(e, NEG_SLOPE * e)          # leaky_relu: 2 VPU ops on the slab

        # Channel reduction for ALL heads with ONE MXU matmul:
        #   score[i, h*N + j] = sum_c att[h*C + c] * e[i, j*HC + h*C + c]
        score = jnp.dot(e, ar_ref[...], preferred_element_type=jnp.float32)  # [N, H*N]

        # ---- per-head masked softmax over sources j + aggregation ----
        outs = []
        for h in range(num_heads):
            s_h = score[:, h * n:(h + 1) * n] + mask_bias                 # [N, N]
            m = jnp.max(s_h, axis=-1, keepdims=True)
            p = jnp.exp(s_h - m)
            denom = jnp.sum(p, axis=-1, keepdims=True)
            alpha = p * pl.reciprocal(denom, approx=True)                 # EUP divide
            outs.append(jnp.dot(alpha, xl[:, h * c:(h + 1) * c],
                                preferred_element_type=jnp.float32))      # [N, C]

        out = jnp.concatenate(outs, axis=-1) + b_ref[...]                 # [N, HC]
        return jnp.maximum(out, 0.0)                                      # ReLU

    hcur = gat_layer(x_ref[...], wlr1, blr1, wew1, ar1, bs1)
    hcur = gat_layer(hcur,       wlr2, blr2, wew2, ar2, bs2)
    hcur = gat_layer(hcur,       wlr3, blr3, wew3, ar3, bs3)

    # global_mean_pool (pool_mat @ h) -> Linear -> tanh
    pooled = jnp.dot(pool_ref[...], hcur, preferred_element_type=jnp.float32)  # [G, HC]
    out_ref[...] = jnp.tanh(
        jnp.dot(pooled, wlin_ref[...], preferred_element_type=jnp.float32)
        + blin_ref[...])


# ----------------------------------------------------------------------------
# Structural constant builders (wrapper-side, XLA)
# ----------------------------------------------------------------------------
def _build_structural_mats(n, hc):
    """r2[hc, j*HC+hc'] = (hc==hc');  sel2[r, j*HC+hc'] = (r==j)."""
    lane = jnp.arange(n * hc)
    j_of = lane // hc
    hc_of = lane % hc
    r2 = (jnp.arange(hc)[:, None] == hc_of[None, :]).astype(jnp.float32)   # [HC, N*HC]
    sel2 = (jnp.arange(n)[:, None] == j_of[None, :]).astype(jnp.float32)   # [N,  N*HC]
    return r2, sel2


def _build_att_reduce(att, n, heads, out_ch):
    """A[j*HC+hc, h*N+j'] = (j==j') * (hc//C==h) * att[hc]   -> [N*HC, H*N]."""
    hc = heads * out_ch
    att = att.reshape(hc)
    row = jnp.arange(n * hc)
    row_j = row // hc
    row_hc = row % hc
    row_h = row_hc // out_ch
    col = jnp.arange(heads * n)
    col_h = col // n
    col_j = col % n
    struct = ((row_j[:, None] == col_j[None, :]) &
              (row_h[:, None] == col_h[None, :]))
    return struct.astype(jnp.float32) * att[row_hc][:, None]


# ----------------------------------------------------------------------------
# Wrapper
# ----------------------------------------------------------------------------
def gatv2_policy_fused(x, adj_i8, ea, pool_mat, p1, p2, p3, w_lin, b_lin):
    n = x.shape[0]
    g = pool_mat.shape[0]
    act_dims = w_lin.shape[1]
    heads, out_ch = p1["heads"], p1["out_ch"]
    hc = heads * out_ch

    r2, sel2 = _build_structural_mats(n, hc)

    def layer_args(p):
        wlr = jnp.concatenate([p["wl"], p["wr"]], axis=1)        # merged lin_l|lin_r
        blr = jnp.concatenate([p["bl"], p["br"]], axis=1)
        we_wide = jnp.tile(p["we"].reshape(1, hc), (1, n))       # [1, N*HC]
        a_red = _build_att_reduce(p["att"], n, heads, out_ch)    # [N*HC, H*N]
        return (wlr, blr, we_wide, a_red, p["bias"])

    kernel = functools.partial(fused_policy_kernel,
                               num_heads=heads, out_ch=out_ch, num_nodes=n)
    num_inputs = 6 + 3 * 5 + 2

    return pl.pallas_call(
        kernel,
        out_shape=jax.ShapeDtypeStruct((g, act_dims), jnp.float32),
        in_specs=[_VMEM] * num_inputs,
        out_specs=_VMEM,
        compiler_params=pltpu.CompilerParams(
            # explicit scoped-VMEM budget (safe on v5e/v6e/v7x); size up with N
            vmem_limit_bytes=32 * 1024 * 1024),
    )(adj_i8, ea, x, pool_mat, r2, sel2,
      *layer_args(p1), *layer_args(p2), *layer_args(p3),
      w_lin, b_lin)


# ----------------------------------------------------------------------------
# Plain-JAX glue: densify graph / pooling matrix / parameter init
# ----------------------------------------------------------------------------
def densify_graph(edge_index, edge_attr, num_nodes):
    """Dense adjacency + dense scalar edge attr, replicating GATv2Conv's
    default remove_self_loops + add_self_loops(fill_value='mean').
    Assumes no duplicate edges."""
    src, dst = edge_index[0], edge_index[1]
    adj = jnp.zeros((num_nodes, num_nodes), jnp.float32).at[dst, src].set(1.0)
    ea = jnp.zeros((num_nodes, num_nodes), jnp.float32).at[dst, src].set(
        edge_attr[:, 0])
    diag = jnp.arange(num_nodes)
    # remove any existing self loops
    adj = adj.at[diag, diag].set(0.0)
    ea = ea.at[diag, diag].set(0.0)
    # add self loops with edge_attr = mean of incoming edge attrs per node
    deg = adj.sum(axis=1)
    loop_attr = jnp.where(deg > 0, ea.sum(axis=1) / jnp.maximum(deg, 1.0), 0.0)
    adj = adj.at[diag, diag].set(1.0)
    ea = ea.at[diag, diag].set(loop_attr)
    return adj, ea


def build_pool_matrix(batch, num_graphs):
    onehot = (batch[None, :] == jnp.arange(num_graphs)[:, None]).astype(jnp.float32)
    counts = onehot.sum(axis=1, keepdims=True)
    return onehot / jnp.maximum(counts, 1.0)          # [G, N]


def _glorot(key, shape):
    fan_in, fan_out = shape[0], shape[-1]
    lim = (6.0 / (fan_in + fan_out)) ** 0.5
    return jax.random.uniform(key, shape, jnp.float32, -lim, lim)


def init_gat_params(key, fin, heads, out_ch):
    k = jax.random.split(key, 4)
    hc = heads * out_ch
    return dict(
        heads=heads, out_ch=out_ch,
        wl=_glorot(k[0], (fin, hc)),                  # lin_l weight
        bl=jnp.zeros((1, hc), jnp.float32),           # lin_l bias
        wr=_glorot(k[1], (fin, hc)),                  # lin_r weight
        br=jnp.zeros((1, hc), jnp.float32),           # lin_r bias
        we=_glorot(k[2], (1, hc)),                    # lin_edge weight (edge_dim=1)
        att=_glorot(k[3], (1, hc)),                   # attention vector a (per head)
        bias=jnp.zeros((1, hc), jnp.float32),         # output bias
    )


def gatv2_policy_forward(x, edge_index, edge_attr, batch, num_graphs,
                         p1, p2, p3, w_lin, b_lin):
    n = x.shape[0]
    adj, ea = densify_graph(edge_index, edge_attr, n)
    adj_i8 = adj.astype(jnp.int8)         # int8 mask input (bias built in-kernel)
    pool_mat = build_pool_matrix(batch, num_graphs)
    return gatv2_policy_fused(x, adj_i8, ea, pool_mat,
                              p1, p2, p3, w_lin, b_lin)


# ----------------------------------------------------------------------------
if __name__ == "__main__":
    key = jax.random.PRNGKey(0)
    obs_dims, act_dims = 8, 4
    hidden_dim, num_heads = 16, 4
    nodes_per_graph, num_graphs = 8, 2
    num_nodes = nodes_per_graph * num_graphs

    # bidirectional ring within each graph (no self loops, no duplicates)
    srcs, dsts = [], []
    for g in range(num_graphs):
        base = g * nodes_per_graph
        for i in range(nodes_per_graph):
            j = (i + 1) % nodes_per_graph
            srcs += [base + i, base + j]
            dsts += [base + j, base + i]
    edge_index = jnp.array([srcs, dsts], dtype=jnp.int32)      # [2, E]
    num_edges = edge_index.shape[1]

    kx, ke, kp1, kp2, kp3, klin = jax.random.split(key, 6)
    x = jax.random.normal(kx, (num_nodes, obs_dims), jnp.float32)
    edge_attr = jax.random.normal(ke, (num_edges, 1), jnp.float32)
    batch = jnp.repeat(jnp.arange(num_graphs, dtype=jnp.int32), nodes_per_graph)

    p1 = init_gat_params(kp1, obs_dims, num_heads, hidden_dim)
    p2 = init_gat_params(kp2, hidden_dim * num_heads, num_heads, hidden_dim)
    p3 = init_gat_params(kp3, hidden_dim * num_heads, num_heads, hidden_dim)
    w_lin = _glorot(klin, (hidden_dim * num_heads, act_dims))
    b_lin = jnp.zeros((1, act_dims), jnp.float32)

    out = gatv2_policy_forward(x, edge_index, edge_attr, batch, num_graphs,
                               p1, p2, p3, w_lin, b_lin)
    jax.block_until_ready(out)
    assert out.shape == (num_graphs, act_dims)
    assert bool(jnp.all(jnp.isfinite(out)))
    print("KERNEL_OK")
</pallas_src>

<mosaic_0001>
module attributes {stable_mosaic.version = 11 : i64} {
  func.func @fused_policy_kernel(%arg0: memref<16x16xi8, #tpu.memory_space<vmem>>, %arg1: memref<16x16xf32, #tpu.memory_space<vmem>>, %arg2: memref<16x8xf32, #tpu.memory_space<vmem>>, %arg3: memref<2x16xf32, #tpu.memory_space<vmem>>, %arg4: memref<64x1024xf32, #tpu.memory_space<vmem>>, %arg5: memref<16x1024xf32, #tpu.memory_space<vmem>>, %arg6: memref<8x128xf32, #tpu.memory_space<vmem>>, %arg7: memref<1x128xf32, #tpu.memory_space<vmem>>, %arg8: memref<1x1024xf32, #tpu.memory_space<vmem>>, %arg9: memref<1024x64xf32, #tpu.memory_space<vmem>>, %arg10: memref<1x64xf32, #tpu.memory_space<vmem>>, %arg11: memref<64x128xf32, #tpu.memory_space<vmem>>, %arg12: memref<1x128xf32, #tpu.memory_space<vmem>>, %arg13: memref<1x1024xf32, #tpu.memory_space<vmem>>, %arg14: memref<1024x64xf32, #tpu.memory_space<vmem>>, %arg15: memref<1x64xf32, #tpu.memory_space<vmem>>, %arg16: memref<64x128xf32, #tpu.memory_space<vmem>>, %arg17: memref<1x128xf32, #tpu.memory_space<vmem>>, %arg18: memref<1x1024xf32, #tpu.memory_space<vmem>>, %arg19: memref<1024x64xf32, #tpu.memory_space<vmem>>, %arg20: memref<1x64xf32, #tpu.memory_space<vmem>>, %arg21: memref<64x4xf32, #tpu.memory_space<vmem>>, %arg22: memref<1x4xf32, #tpu.memory_space<vmem>>, %arg23: memref<2x4xf32, #tpu.memory_space<vmem>>) attributes {dimension_semantics = [], scalar_prefetch = 0 : i64, scratch_operands = 0 : i64, tpu.core_type = #tpu.core_type<tc>} {
    %c0 = arith.constant 0 : index
    %c0_0 = arith.constant 0 : index
    %0 = vector.load %arg0[%c0, %c0_0] : memref<16x16xi8, #tpu.memory_space<vmem>>, vector<16x16xi8>
    %1 = arith.sitofp %0 : vector<16x16xi8> to vector<16x16xf32>
    %cst = arith.constant 1.000000e+00 : f32
    %2 = vector.broadcast %cst : f32 to vector<16x16xf32>
    %3 = arith.subf %1, %2 : vector<16x16xf32>
    %cst_1 = arith.constant 1.000000e+30 : f32
    %4 = vector.broadcast %cst_1 : f32 to vector<16x16xf32>
    %5 = arith.mulf %3, %4 : vector<16x16xf32>
    %c0_2 = arith.constant 0 : index
    %c0_3 = arith.constant 0 : index
    %6 = vector.load %arg4[%c0_2, %c0_3] : memref<64x1024xf32, #tpu.memory_space<vmem>>, vector<64x1024xf32>
    %c0_4 = arith.constant 0 : index
    %c0_5 = arith.constant 0 : index
    %7 = vector.load %arg5[%c0_4, %c0_5] : memref<16x1024xf32, #tpu.memory_space<vmem>>, vector<16x1024xf32>
    %c0_6 = arith.constant 0 : index
    %c0_7 = arith.constant 0 : index
    %8 = vector.load %arg1[%c0_6, %c0_7] : memref<16x16xf32, #tpu.memory_space<vmem>>, vector<16x16xf32>
    %cst_8 = arith.constant dense<0.000000e+00> : vector<16x1024xf32>
    %9 = tpu.matmul %8, %7, %cst_8 {dimension_numbers = #tpu.dot_dimension_numbers<[1], [0], [0], [1], [0, 0, 1, 1], [], []>} : vector<16x16xf32>, vector<16x1024xf32>, vector<16x1024xf32> -> vector<16x1024xf32>
    %c0_9 = arith.constant 0 : index
    %c0_10 = arith.constant 0 : index
    %10 = vector.load %arg2[%c0_9, %c0_10] : memref<16x8xf32, #tpu.memory_space<vmem>>, vector<16x8xf32>
    %c0_11 = arith.constant 0 : index
    %c0_12 = arith.constant 0 : index
    %11 = vector.load %arg6[%c0_11, %c0_12] : memref<8x128xf32, #tpu.memory_space<vmem>>, vector<8x128xf32>
    %cst_13 = arith.constant dense<0.000000e+00> : vector<16x128xf32>
    %12 = tpu.matmul %10, %11, %cst_13 {dimension_numbers = #tpu.dot_dimension_numbers<[1], [0], [0], [1], [0, 0, 1, 1], [], []>} : vector<16x8xf32>, vector<8x128xf32>, vector<16x128xf32> -> vector<16x128xf32>
    %c0_14 = arith.constant 0 : index
    %c0_15 = arith.constant 0 : index
    %13 = vector.load %arg7[%c0_14, %c0_15] : memref<1x128xf32, #tpu.memory_space<vmem>>, vector<1x128xf32>
    %14 = vector.broadcast %13 : vector<1x128xf32> to vector<16x128xf32>
    %15 = arith.addf %12, %14 : vector<16x128xf32>
    %16 = vector.extract_strided_slice %15 {offsets = [0, 0], sizes = [16, 64], strides = [1, 1]} : vector<16x128xf32> to vector<16x64xf32>
    %17 = vector.extract_strided_slice %15 {offsets = [0, 64], sizes = [16, 64], strides = [1, 1]} : vector<16x128xf32> to vector<16x64xf32>
    %cst_16 = arith.constant dense<0.000000e+00> : vector<16x1024xf32>
    %18 = tpu.matmul %17, %6, %cst_16 {dimension_numbers = #tpu.dot_dimension_numbers<[1], [0], [0], [1], [0, 0, 1, 1], [], []>} : vector<16x64xf32>, vector<64x1024xf32>, vector<16x1024xf32> -> vector<16x1024xf32>
    %cst_17 = arith.constant dense<0.000000e+00> : vector<16x1024xf32>
    %19 = tpu.matmul %16, %6, %cst_17 {dimension_numbers = #tpu.dot_dimension_numbers<[1], [0], [0], [1], [0, 0, 1, 1], [], []>} : vector<16x64xf32>, vector<64x1024xf32>, vector<16x1024xf32> -> vector<16x1024xf32>
    %20 = arith.mulf %7, %19 : vector<16x1024xf32>
    %cst_18 = arith.constant dense<0.000000e+00> : vector<1024xf32>
    %21 = vector.multi_reduction <add>, %20, %cst_18 [0] : vector<16x1024xf32> to vector<1024xf32>
    %22 = vector.shape_cast %21 : vector<1024xf32> to vector<1x1024xf32>
    %23 = vector.broadcast %22 : vector<1x1024xf32> to vector<16x1024xf32>
    %24 = arith.addf %18, %23 : vector<16x1024xf32>
    %c0_19 = arith.constant 0 : index
    %c0_20 = arith.constant 0 : index
    %25 = vector.load %arg8[%c0_19, %c0_20] : memref<1x1024xf32, #tpu.memory_space<vmem>>, vector<1x1024xf32>
    %26 = vector.broadcast %25 : vector<1x1024xf32> to vector<16x1024xf32>
    %27 = arith.mulf %9, %26 : vector<16x1024xf32>
    %28 = arith.addf %24, %27 : vector<16x1024xf32>
    %cst_21 = arith.constant 2.000000e-01 : f32
    %29 = vector.broadcast %cst_21 : f32 to vector<16x1024xf32>
    %30 = arith.mulf %29, %28 : vector<16x1024xf32>
    %31 = arith.maximumf %28, %30 : vector<16x1024xf32>
    %c0_22 = arith.constant 0 : index
    %c0_23 = arith.constant 0 : index
    %32 = vector.load %arg9[%c0_22, %c0_23] : memref<1024x64xf32, #tpu.memory_space<vmem>>, vector<1024x64xf32>
    %cst_24 = arith.constant dense<0.000000e+00> : vector<16x64xf32>
    %33 = tpu.matmul %31, %32, %cst_24 {dimension_numbers = #tpu.dot_dimension_numbers<[1], [0], [0], [1], [0, 0, 1, 1], [], []>} : vector<16x1024xf32>, vector<1024x64xf32>, vector<16x64xf32> -> vector<16x64xf32>
    %34 = vector.extract_strided_slice %33 {offsets = [0, 0], sizes = [16, 16], strides = [1, 1]} : vector<16x64xf32> to vector<16x16xf32>
    %35 = arith.addf %34, %5 : vector<16x16xf32>
    %cst_25 = arith.constant dense<0xFF800000> : vector<16xf32>
    %36 = vector.multi_reduction <maximumf>, %35, %cst_25 [1] : vector<16x16xf32> to vector<16xf32>
    %37 = vector.shape_cast %36 : vector<16xf32> to vector<16x1xf32>
    %38 = vector.broadcast %37 : vector<16x1xf32> to vector<16x16xf32>
    %39 = arith.subf %35, %38 : vector<16x16xf32>
    %40 = math.exp %39 : vector<16x16xf32>
    %cst_26 = arith.constant dense<0.000000e+00> : vector<16xf32>
    %41 = vector.multi_reduction <add>, %40, %cst_26 [1] : vector<16x16xf32> to vector<16xf32>
    %42 = vector.shape_cast %41 : vector<16xf32> to vector<16x1xf32>
    %43 = tpu.reciprocal %42 {approx = true} : vector<16x1xf32> -> vector<16x1xf32>
    %44 = vector.broadcast %43 : vector<16x1xf32> to vector<16x16xf32>
    %45 = arith.mulf %40, %44 : vector<16x16xf32>
    %46 = vector.extract_strided_slice %16 {offsets = [0, 0], sizes = [16, 16], strides = [1, 1]} : vector<16x64xf32> to vector<16x16xf32>
    %cst_27 = arith.constant dense<0.000000e+00> : vector<16x16xf32>
    %47 = tpu.matmul %45, %46, %cst_27 {dimension_numbers = #tpu.dot_dimension_numbers<[1], [0], [0], [1], [0, 0, 1, 1], [], []>} : vector<16x16xf32>, vector<16x16xf32>, vector<16x16xf32> -> vector<16x16xf32>
    %48 = vector.extract_strided_slice %33 {offsets = [0, 16], sizes = [16, 16], strides = [1, 1]} : vector<16x64xf32> to vector<16x16xf32>
    %49 = arith.addf %48, %5 : vector<16x16xf32>
    %cst_28 = arith.constant dense<0xFF800000> : vector<16xf32>
    %50 = vector.multi_reduction <maximumf>, %49, %cst_28 [1] : vector<16x16xf32> to vector<16xf32>
    %51 = vector.shape_cast %50 : vector<16xf32> to vector<16x1xf32>
    %52 = vector.broadcast %51 : vector<16x1xf32> to vector<16x16xf32>
    %53 = arith.subf %49, %52 : vector<16x16xf32>
    %54 = math.exp %53 : vector<16x16xf32>
    %cst_29 = arith.constant dense<0.000000e+00> : vector<16xf32>
    %55 = vector.multi_reduction <add>, %54, %cst_29 [1] : vector<16x16xf32> to vector<16xf32>
    %56 = vector.shape_cast %55 : vector<16xf32> to vector<16x1xf32>
    %57 = tpu.reciprocal %56 {approx = true} : vector<16x1xf32> -> vector<16x1xf32>
    %58 = vector.broadcast %57 : vector<16x1xf32> to vector<16x16xf32>
    %59 = arith.mulf %54, %58 : vector<16x16xf32>
    %60 = vector.extract_strided_slice %16 {offsets = [0, 16], sizes = [16, 16], strides = [1, 1]} : vector<16x64xf32> to vector<16x16xf32>
    %cst_30 = arith.constant dense<0.000000e+00> : vector<16x16xf32>
    %61 = tpu.matmul %59, %60, %cst_30 {dimension_numbers = #tpu.dot_dimension_numbers<[1], [0], [0], [1], [0, 0, 1, 1], [], []>} : vector<16x16xf32>, vector<16x16xf32>, vector<16x16xf32> -> vector<16x16xf32>
    %62 = vector.extract_strided_slice %33 {offsets = [0, 32], sizes = [16, 16], strides = [1, 1]} : vector<16x64xf32> to vector<16x16xf32>
    %63 = arith.addf %62, %5 : vector<16x16xf32>
    %cst_31 = arith.constant dense<0xFF800000> : vector<16xf32>
    %64 = vector.multi_reduction <maximumf>, %63, %cst_31 [1] : vector<16x16xf32> to vector<16xf32>
    %65 = vector.shape_cast %64 : vector<16xf32> to vector<16x1xf32>
    %66 = vector.broadcast %65 : vector<16x1xf32> to vector<16x16xf32>
    %67 = arith.subf %63, %66 : vector<16x16xf32>
    %68 = math.exp %67 : vector<16x16xf32>
    %cst_32 = arith.constant dense<0.000000e+00> : vector<16xf32>
    %69 = vector.multi_reduction <add>, %68, %cst_32 [1] : vector<16x16xf32> to vector<16xf32>
    %70 = vector.shape_cast %69 : vector<16xf32> to vector<16x1xf32>
    %71 = tpu.reciprocal %70 {approx = true} : vector<16x1xf32> -> vector<16x1xf32>
    %72 = vector.broadcast %71 : vector<16x1xf32> to vector<16x16xf32>
    %73 = arith.mulf %68, %72 : vector<16x16xf32>
    %74 = vector.extract_strided_slice %16 {offsets = [0, 32], sizes = [16, 16], strides = [1, 1]} : vector<16x64xf32> to vector<16x16xf32>
    %cst_33 = arith.constant dense<0.000000e+00> : vector<16x16xf32>
    %75 = tpu.matmul %73, %74, %cst_33 {dimension_numbers = #tpu.dot_dimension_numbers<[1], [0], [0], [1], [0, 0, 1, 1], [], []>} : vector<16x16xf32>, vector<16x16xf32>, vector<16x16xf32> -> vector<16x16xf32>
    %76 = vector.extract_strided_slice %33 {offsets = [0, 48], sizes = [16, 16], strides = [1, 1]} : vector<16x64xf32> to vector<16x16xf32>
    %77 = arith.addf %76, %5 : vector<16x16xf32>
    %cst_34 = arith.constant dense<0xFF800000> : vector<16xf32>
    %78 = vector.multi_reduction <maximumf>, %77, %cst_34 [1] : vector<16x16xf32> to vector<16xf32>
    %79 = vector.shape_cast %78 : vector<16xf32> to vector<16x1xf32>
    %80 = vector.broadcast %79 : vector<16x1xf32> to vector<16x16xf32>
    %81 = arith.subf %77, %80 : vector<16x16xf32>
    %82 = math.exp %81 : vector<16x16xf32>
    %cst_35 = arith.constant dense<0.000000e+00> : vector<16xf32>
    %83 = vector.multi_reduction <add>, %82, %cst_35 [1] : vector<16x16xf32> to vector<16xf32>
    %84 = vector.shape_cast %83 : vector<16xf32> to vector<16x1xf32>
    %85 = tpu.reciprocal %84 {approx = true} : vector<16x1xf32> -> vector<16x1xf32>
    %86 = vector.broadcast %85 : vector<16x1xf32> to vector<16x16xf32>
    %87 = arith.mulf %82, %86 : vector<16x16xf32>
    %88 = vector.extract_strided_slice %16 {offsets = [0, 48], sizes = [16, 16], strides = [1, 1]} : vector<16x64xf32> to vector<16x16xf32>
    %cst_36 = arith.constant dense<0.000000e+00> : vector<16x16xf32>
    %89 = tpu.matmul %87, %88, %cst_36 {dimension_numbers = #tpu.dot_dimension_numbers<[1], [0], [0], [1], [0, 0, 1, 1], [], []>} : vector<16x16xf32>, vector<16x16xf32>, vector<16x16xf32> -> vector<16x16xf32>
    %90 = tpu.concatenate %47, %61, %75, %89 in 1 : vector<16x16xf32>, vector<16x16xf32>, vector<16x16xf32>, vector<16x16xf32> -> vector<16x64xf32>
    %c0_37 = arith.constant 0 : index
    %c0_38 = arith.constant 0 : index
    %91 = vector.load %arg10[%c0_37, %c0_38] : memref<1x64xf32, #tpu.memory_space<vmem>>, vector<1x64xf32>
    %92 = vector.broadcast %91 : vector<1x64xf32> to vector<16x64xf32>
    %93 = arith.addf %90, %92 : vector<16x64xf32>
    %cst_39 = arith.constant 0.000000e+00 : f32
    %94 = vector.broadcast %cst_39 : f32 to vector<16x64xf32>
    %95 = arith.maximumf %93, %94 : vector<16x64xf32>
    %c0_40 = arith.constant 0 : index
    %c0_41 = arith.constant 0 : index
    %96 = vector.load %arg11[%c0_40, %c0_41] : memref<64x128xf32, #tpu.memory_space<vmem>>, vector<64x128xf32>
    %cst_42 = arith.constant dense<0.000000e+00> : vector<16x128xf32>
    %97 = tpu.matmul %95, %96, %cst_42 {dimension_numbers = #tpu.dot_dimension_numbers<[1], [0], [0], [1], [0, 0, 1, 1], [], []>} : vector<16x64xf32>, vector<64x128xf32>, vector<16x128xf32> -> vector<16x128xf32>
    %c0_43 = arith.constant 0 : index
    %c0_44 = arith.constant 0 : index
    %98 = vector.load %arg12[%c0_43, %c0_44] : memref<1x128xf32, #tpu.memory_space<vmem>>, vector<1x128xf32>
    %99 = vector.broadcast %98 : vector<1x128xf32> to vector<16x128xf32>
    %100 = arith.addf %97, %99 : vector<16x128xf32>
    %101 = vector.extract_strided_slice %100 {offsets = [0, 0], sizes = [16, 64], strides = [1, 1]} : vector<16x128xf32> to vector<16x64xf32>
    %102 = vector.extract_strided_slice %100 {offsets = [0, 64], sizes = [16, 64], strides = [1, 1]} : vector<16x128xf32> to vector<16x64xf32>
    %cst_45 = arith.constant dense<0.000000e+00> : vector<16x1024xf32>
    %103 = tpu.matmul %102, %6, %cst_45 {dimension_numbers = #tpu.dot_dimension_numbers<[1], [0], [0], [1], [0, 0, 1, 1], [], []>} : vector<16x64xf32>, vector<64x1024xf32>, vector<16x1024xf32> -> vector<16x1024xf32>
    %cst_46 = arith.constant dense<0.000000e+00> : vector<16x1024xf32>
    %104 = tpu.matmul %101, %6, %cst_46 {dimension_numbers = #tpu.dot_dimension_numbers<[1], [0], [0], [1], [0, 0, 1, 1], [], []>} : vector<16x64xf32>, vector<64x1024xf32>, vector<16x1024xf32> -> vector<16x1024xf32>
    %105 = arith.mulf %7, %104 : vector<16x1024xf32>
    %cst_47 = arith.constant dense<0.000000e+00> : vector<1024xf32>
    %106 = vector.multi_reduction <add>, %105, %cst_47 [0] : vector<16x1024xf32> to vector<1024xf32>
    %107 = vector.shape_cast %106 : vector<1024xf32> to vector<1x1024xf32>
    %108 = vector.broadcast %107 : vector<1x1024xf32> to vector<16x1024xf32>
    %109 = arith.addf %103, %108 : vector<16x1024xf32>
    %c0_48 = arith.constant 0 : index
    %c0_49 = arith.constant 0 : index
    %110 = vector.load %arg13[%c0_48, %c0_49] : memref<1x1024xf32, #tpu.memory_space<vmem>>, vector<1x1024xf32>
    %111 = vector.broadcast %110 : vector<1x1024xf32> to vector<16x1024xf32>
    %112 = arith.mulf %9, %111 : vector<16x1024xf32>
    %113 = arith.addf %109, %112 : vector<16x1024xf32>
    %cst_50 = arith.constant 2.000000e-01 : f32
    %114 = vector.broadcast %cst_50 : f32 to vector<16x1024xf32>
    %115 = arith.mulf %114, %113 : vector<16x1024xf32>
    %116 = arith.maximumf %113, %115 : vector<16x1024xf32>
    %c0_51 = arith.constant 0 : index
    %c0_52 = arith.constant 0 : index
    %117 = vector.load %arg14[%c0_51, %c0_52] : memref<1024x64xf32, #tpu.memory_space<vmem>>, vector<1024x64xf32>
    %cst_53 = arith.constant dense<0.000000e+00> : vector<16x64xf32>
    %118 = tpu.matmul %116, %117, %cst_53 {dimension_numbers = #tpu.dot_dimension_numbers<[1], [0], [0], [1], [0, 0, 1, 1], [], []>} : vector<16x1024xf32>, vector<1024x64xf32>, vector<16x64xf32> -> vector<16x64xf32>
    %119 = vector.extract_strided_slice %118 {offsets = [0, 0], sizes = [16, 16], strides = [1, 1]} : vector<16x64xf32> to vector<16x16xf32>
    %120 = arith.addf %119, %5 : vector<16x16xf32>
    %cst_54 = arith.constant dense<0xFF800000> : vector<16xf32>
    %121 = vector.multi_reduction <maximumf>, %120, %cst_54 [1] : vector<16x16xf32> to vector<16xf32>
    %122 = vector.shape_cast %121 : vector<16xf32> to vector<16x1xf32>
    %123 = vector.broadcast %122 : vector<16x1xf32> to vector<16x16xf32>
    %124 = arith.subf %120, %123 : vector<16x16xf32>
    %125 = math.exp %124 : vector<16x16xf32>
    %cst_55 = arith.constant dense<0.000000e+00> : vector<16xf32>
    %126 = vector.multi_reduction <add>, %125, %cst_55 [1] : vector<16x16xf32> to vector<16xf32>
    %127 = vector.shape_cast %126 : vector<16xf32> to vector<16x1xf32>
    %128 = tpu.reciprocal %127 {approx = true} : vector<16x1xf32> -> vector<16x1xf32>
    %129 = vector.broadcast %128 : vector<16x1xf32> to vector<16x16xf32>
    %130 = arith.mulf %125, %129 : vector<16x16xf32>
    %131 = vector.extract_strided_slice %101 {offsets = [0, 0], sizes = [16, 16], strides = [1, 1]} : vector<16x64xf32> to vector<16x16xf32>
    %cst_56 = arith.constant dense<0.000000e+00> : vector<16x16xf32>
    %132 = tpu.matmul %130, %131, %cst_56 {dimension_numbers = #tpu.dot_dimension_numbers<[1], [0], [0], [1], [0, 0, 1, 1], [], []>} : vector<16x16xf32>, vector<16x16xf32>, vector<16x16xf32> -> vector<16x16xf32>
    %133 = vector.extract_strided_slice %118 {offsets = [0, 16], sizes = [16, 16], strides = [1, 1]} : vector<16x64xf32> to vector<16x16xf32>
    %134 = arith.addf %133, %5 : vector<16x16xf32>
    %cst_57 = arith.constant dense<0xFF800000> : vector<16xf32>
    %135 = vector.multi_reduction <maximumf>, %134, %cst_57 [1] : vector<16x16xf32> to vector<16xf32>
    %136 = vector.shape_cast %135 : vector<16xf32> to vector<16x1xf32>
    %137 = vector.broadcast %136 : vector<16x1xf32> to vector<16x16xf32>
    %138 = arith.subf %134, %137 : vector<16x16xf32>
    %139 = math.exp %138 : vector<16x16xf32>
    %cst_58 = arith.constant dense<0.000000e+00> : vector<16xf32>
    %140 = vector.multi_reduction <add>, %139, %cst_58 [1] : vector<16x16xf32> to vector<16xf32>
    %141 = vector.shape_cast %140 : vector<16xf32> to vector<16x1xf32>
    %142 = tpu.reciprocal %141 {approx = true} : vector<16x1xf32> -> vector<16x1xf32>
    %143 = vector.broadcast %142 : vector<16x1xf32> to vector<16x16xf32>
    %144 = arith.mulf %139, %143 : vector<16x16xf32>
    %145 = vector.extract_strided_slice %101 {offsets = [0, 16], sizes = [16, 16], strides = [1, 1]} : vector<16x64xf32> to vector<16x16xf32>
    %cst_59 = arith.constant dense<0.000000e+00> : vector<16x16xf32>
    %146 = tpu.matmul %144, %145, %cst_59 {dimension_numbers = #tpu.dot_dimension_numbers<[1], [0], [0], [1], [0, 0, 1, 1], [], []>} : vector<16x16xf32>, vector<16x16xf32>, vector<16x16xf32> -> vector<16x16xf32>
    %147 = vector.extract_strided_slice %118 {offsets = [0, 32], sizes = [16, 16], strides = [1, 1]} : vector<16x64xf32> to vector<16x16xf32>
    %148 = arith.addf %147, %5 : vector<16x16xf32>
    %cst_60 = arith.constant dense<0xFF800000> : vector<16xf32>
    %149 = vector.multi_reduction <maximumf>, %148, %cst_60 [1] : vector<16x16xf32> to vector<16xf32>
    %150 = vector.shape_cast %149 : vector<16xf32> to vector<16x1xf32>
    %151 = vector.broadcast %150 : vector<16x1xf32> to vector<16x16xf32>
    %152 = arith.subf %148, %151 : vector<16x16xf32>
    %153 = math.exp %152 : vector<16x16xf32>
    %cst_61 = arith.constant dense<0.000000e+00> : vector<16xf32>
    %154 = vector.multi_reduction <add>, %153, %cst_61 [1] : vector<16x16xf32> to vector<16xf32>
    %155 = vector.shape_cast %154 : vector<16xf32> to vector<16x1xf32>
    %156 = tpu.reciprocal %155 {approx = true} : vector<16x1xf32> -> vector<16x1xf32>
    %157 = vector.broadcast %156 : vector<16x1xf32> to vector<16x16xf32>
    %158 = arith.mulf %153, %157 : vector<16x16xf32>
    %159 = vector.extract_strided_slice %101 {offsets = [0, 32], sizes = [16, 16], strides = [1, 1]} : vector<16x64xf32> to vector<16x16xf32>
    %cst_62 = arith.constant dense<0.000000e+00> : vector<16x16xf32>
    %160 = tpu.matmul %158, %159, %cst_62 {dimension_numbers = #tpu.dot_dimension_numbers<[1], [0], [0], [1], [0, 0, 1, 1], [], []>} : vector<16x16xf32>, vector<16x16xf32>, vector<16x16xf32> -> vector<16x16xf32>
    %161 = vector.extract_strided_slice %118 {offsets = [0, 48], sizes = [16, 16], strides = [1, 1]} : vector<16x64xf32> to vector<16x16xf32>
    %162 = arith.addf %161, %5 : vector<16x16xf32>
    %cst_63 = arith.constant dense<0xFF800000> : vector<16xf32>
    %163 = vector.multi_reduction <maximumf>, %162, %cst_63 [1] : vector<16x16xf32> to vector<16xf32>
    %164 = vector.shape_cast %163 : vector<16xf32> to vector<16x1xf32>
    %165 = vector.broadcast %164 : vector<16x1xf32> to vector<16x16xf32>
    %166 = arith.subf %162, %165 : vector<16x16xf32>
    %167 = math.exp %166 : vector<16x16xf32>
    %cst_64 = arith.constant dense<0.000000e+00> : vector<16xf32>
    %168 = vector.multi_reduction <add>, %167, %cst_64 [1] : vector<16x16xf32> to vector<16xf32>
    %169 = vector.shape_cast %168 : vector<16xf32> to vector<16x1xf32>
    %170 = tpu.reciprocal %169 {approx = true} : vector<16x1xf32> -> vector<16x1xf32>
    %171 = vector.broadcast %170 : vector<16x1xf32> to vector<16x16xf32>
    %172 = arith.mulf %167, %171 : vector<16x16xf32>
    %173 = vector.extract_strided_slice %101 {offsets = [0, 48], sizes = [16, 16], strides = [1, 1]} : vector<16x64xf32> to vector<16x16xf32>
    %cst_65 = arith.constant dense<0.000000e+00> : vector<16x16xf32>
    %174 = tpu.matmul %172, %173, %cst_65 {dimension_numbers = #tpu.dot_dimension_numbers<[1], [0], [0], [1], [0, 0, 1, 1], [], []>} : vector<16x16xf32>, vector<16x16xf32>, vector<16x16xf32> -> vector<16x16xf32>
    %175 = tpu.concatenate %132, %146, %160, %174 in 1 : vector<16x16xf32>, vector<16x16xf32>, vector<16x16xf32>, vector<16x16xf32> -> vector<16x64xf32>
    %c0_66 = arith.constant 0 : index
    %c0_67 = arith.constant 0 : index
    %176 = vector.load %arg15[%c0_66, %c0_67] : memref<1x64xf32, #tpu.memory_space<vmem>>, vector<1x64xf32>
    %177 = vector.broadcast %176 : vector<1x64xf32> to vector<16x64xf32>
    %178 = arith.addf %175, %177 : vector<16x64xf32>
    %cst_68 = arith.constant 0.000000e+00 : f32
    %179 = vector.broadcast %cst_68 : f32 to vector<16x64xf32>
    %180 = arith.maximumf %178, %179 : vector<16x64xf32>
    %c0_69 = arith.constant 0 : index
    %c0_70 = arith.constant 0 : index
    %181 = vector.load %arg16[%c0_69, %c0_70] : memref<64x128xf32, #tpu.memory_space<vmem>>, vector<64x128xf32>
    %cst_71 = arith.constant dense<0.000000e+00> : vector<16x128xf32>
    %182 = tpu.matmul %180, %181, %cst_71 {dimension_numbers = #tpu.dot_dimension_numbers<[1], [0], [0], [1], [0, 0, 1, 1], [], []>} : vector<16x64xf32>, vector<64x128xf32>, vector<16x128xf32> -> vector<16x128xf32>
    %c0_72 = arith.constant 0 : index
    %c0_73 = arith.constant 0 : index
    %183 = vector.load %arg17[%c0_72, %c0_73] : memref<1x128xf32, #tpu.memory_space<vmem>>, vector<1x128xf32>
    %184 = vector.broadcast %183 : vector<1x128xf32> to vector<16x128xf32>
    %185 = arith.addf %182, %184 : vector<16x128xf32>
    %186 = vector.extract_strided_slice %185 {offsets = [0, 0], sizes = [16, 64], strides = [1, 1]} : vector<16x128xf32> to vector<16x64xf32>
    %187 = vector.extract_strided_slice %185 {offsets = [0, 64], sizes = [16, 64], strides = [1, 1]} : vector<16x128xf32> to vector<16x64xf32>
    %cst_74 = arith.constant dense<0.000000e+00> : vector<16x1024xf32>
    %188 = tpu.matmul %187, %6, %cst_74 {dimension_numbers = #tpu.dot_dimension_numbers<[1], [0], [0], [1], [0, 0, 1, 1], [], []>} : vector<16x64xf32>, vector<64x1024xf32>, vector<16x1024xf32> -> vector<16x1024xf32>
    %cst_75 = arith.constant dense<0.000000e+00> : vector<16x1024xf32>
    %189 = tpu.matmul %186, %6, %cst_75 {dimension_numbers = #tpu.dot_dimension_numbers<[1], [0], [0], [1], [0, 0, 1, 1], [], []>} : vector<16x64xf32>, vector<64x1024xf32>, vector<16x1024xf32> -> vector<16x1024xf32>
    %190 = arith.mulf %7, %189 : vector<16x1024xf32>
    %cst_76 = arith.constant dense<0.000000e+00> : vector<1024xf32>
    %191 = vector.multi_reduction <add>, %190, %cst_76 [0] : vector<16x1024xf32> to vector<1024xf32>
    %192 = vector.shape_cast %191 : vector<1024xf32> to vector<1x1024xf32>
    %193 = vector.broadcast %192 : vector<1x1024xf32> to vector<16x1024xf32>
    %194 = arith.addf %188, %193 : vector<16x1024xf32>
    %c0_77 = arith.constant 0 : index
    %c0_78 = arith.constant 0 : index
    %195 = vector.load %arg18[%c0_77, %c0_78] : memref<1x1024xf32, #tpu.memory_space<vmem>>, vector<1x1024xf32>
    %196 = vector.broadcast %195 : vector<1x1024xf32> to vector<16x1024xf32>
    %197 = arith.mulf %9, %196 : vector<16x1024xf32>
    %198 = arith.addf %194, %197 : vector<16x1024xf32>
    %cst_79 = arith.constant 2.000000e-01 : f32
    %199 = vector.broadcast %cst_79 : f32 to vector<16x1024xf32>
    %200 = arith.mulf %199, %198 : vector<16x1024xf32>
    %201 = arith.maximumf %198, %200 : vector<16x1024xf32>
    %c0_80 = arith.constant 0 : index
    %c0_81 = arith.constant 0 : index
    %202 = vector.load %arg19[%c0_80, %c0_81] : memref<1024x64xf32, #tpu.memory_space<vmem>>, vector<1024x64xf32>
    %cst_82 = arith.constant dense<0.000000e+00> : vector<16x64xf32>
    %203 = tpu.matmul %201, %202, %cst_82 {dimension_numbers = #tpu.dot_dimension_numbers<[1], [0], [0], [1], [0, 0, 1, 1], [], []>} : vector<16x1024xf32>, vector<1024x64xf32>, vector<16x64xf32> -> vector<16x64xf32>
    %204 = vector.extract_strided_slice %203 {offsets = [0, 0], sizes = [16, 16], strides = [1, 1]} : vector<16x64xf32> to vector<16x16xf32>
    %205 = arith.addf %204, %5 : vector<16x16xf32>
    %cst_83 = arith.constant dense<0xFF800000> : vector<16xf32>
    %206 = vector.multi_reduction <maximumf>, %205, %cst_83 [1] : vector<16x16xf32> to vector<16xf32>
    %207 = vector.shape_cast %206 : vector<16xf32> to vector<16x1xf32>
    %208 = vector.broadcast %207 : vector<16x1xf32> to vector<16x16xf32>
    %209 = arith.subf %205, %208 : vector<16x16xf32>
    %210 = math.exp %209 : vector<16x16xf32>
    %cst_84 = arith.constant dense<0.000000e+00> : vector<16xf32>
    %211 = vector.multi_reduction <add>, %210, %cst_84 [1] : vector<16x16xf32> to vector<16xf32>
    %212 = vector.shape_cast %211 : vector<16xf32> to vector<16x1xf32>
    %213 = tpu.reciprocal %212 {approx = true} : vector<16x1xf32> -> vector<16x1xf32>
    %214 = vector.broadcast %213 : vector<16x1xf32> to vector<16x16xf32>
    %215 = arith.mulf %210, %214 : vector<16x16xf32>
    %216 = vector.extract_strided_slice %186 {offsets = [0, 0], sizes = [16, 16], strides = [1, 1]} : vector<16x64xf32> to vector<16x16xf32>
    %cst_85 = arith.constant dense<0.000000e+00> : vector<16x16xf32>
    %217 = tpu.matmul %215, %216, %cst_85 {dimension_numbers = #tpu.dot_dimension_numbers<[1], [0], [0], [1], [0, 0, 1, 1], [], []>} : vector<16x16xf32>, vector<16x16xf32>, vector<16x16xf32> -> vector<16x16xf32>
    %218 = vector.extract_strided_slice %203 {offsets = [0, 16], sizes = [16, 16], strides = [1, 1]} : vector<16x64xf32> to vector<16x16xf32>
    %219 = arith.addf %218, %5 : vector<16x16xf32>
    %cst_86 = arith.constant dense<0xFF800000> : vector<16xf32>
    %220 = vector.multi_reduction <maximumf>, %219, %cst_86 [1] : vector<16x16xf32> to vector<16xf32>
    %221 = vector.shape_cast %220 : vector<16xf32> to vector<16x1xf32>
    %222 = vector.broadcast %221 : vector<16x1xf32> to vector<16x16xf32>
    %223 = arith.subf %219, %222 : vector<16x16xf32>
    %224 = math.exp %223 : vector<16x16xf32>
    %cst_87 = arith.constant dense<0.000000e+00> : vector<16xf32>
    %225 = vector.multi_reduction <add>, %224, %cst_87 [1] : vector<16x16xf32> to vector<16xf32>
    %226 = vector.shape_cast %225 : vector<16xf32> to vector<16x1xf32>
    %227 = tpu.reciprocal %226 {approx = true} : vector<16x1xf32> -> vector<16x1xf32>
    %228 = vector.broadcast %227 : vector<16x1xf32> to vector<16x16xf32>
    %229 = arith.mulf %224, %228 : vector<16x16xf32>
    %230 = vector.extract_strided_slice %186 {offsets = [0, 16], sizes = [16, 16], strides = [1, 1]} : vector<16x64xf32> to vector<16x16xf32>
    %cst_88 = arith.constant dense<0.000000e+00> : vector<16x16xf32>
    %231 = tpu.matmul %229, %230, %cst_88 {dimension_numbers = #tpu.dot_dimension_numbers<[1], [0], [0], [1], [0, 0, 1, 1], [], []>} : vector<16x16xf32>, vector<16x16xf32>, vector<16x16xf32> -> vector<16x16xf32>
    %232 = vector.extract_strided_slice %203 {offsets = [0, 32], sizes = [16, 16], strides = [1, 1]} : vector<16x64xf32> to vector<16x16xf32>
    %233 = arith.addf %232, %5 : vector<16x16xf32>
    %cst_89 = arith.constant dense<0xFF800000> : vector<16xf32>
    %234 = vector.multi_reduction <maximumf>, %233, %cst_89 [1] : vector<16x16xf32> to vector<16xf32>
    %235 = vector.shape_cast %234 : vector<16xf32> to vector<16x1xf32>
    %236 = vector.broadcast %235 : vector<16x1xf32> to vector<16x16xf32>
    %237 = arith.subf %233, %236 : vector<16x16xf32>
    %238 = math.exp %237 : vector<16x16xf32>
    %cst_90 = arith.constant dense<0.000000e+00> : vector<16xf32>
    %239 = vector.multi_reduction <add>, %238, %cst_90 [1] : vector<16x16xf32> to vector<16xf32>
    %240 = vector.shape_cast %239 : vector<16xf32> to vector<16x1xf32>
    %241 = tpu.reciprocal %240 {approx = true} : vector<16x1xf32> -> vector<16x1xf32>
    %242 = vector.broadcast %241 : vector<16x1xf32> to vector<16x16xf32>
    %243 = arith.mulf %238, %242 : vector<16x16xf32>
    %244 = vector.extract_strided_slice %186 {offsets = [0, 32], sizes = [16, 16], strides = [1, 1]} : vector<16x64xf32> to vector<16x16xf32>
    %cst_91 = arith.constant dense<0.000000e+00> : vector<16x16xf32>
    %245 = tpu.matmul %243, %244, %cst_91 {dimension_numbers = #tpu.dot_dimension_numbers<[1], [0], [0], [1], [0, 0, 1, 1], [], []>} : vector<16x16xf32>, vector<16x16xf32>, vector<16x16xf32> -> vector<16x16xf32>
    %246 = vector.extract_strided_slice %203 {offsets = [0, 48], sizes = [16, 16], strides = [1, 1]} : vector<16x64xf32> to vector<16x16xf32>
    %247 = arith.addf %246, %5 : vector<16x16xf32>
    %cst_92 = arith.constant dense<0xFF800000> : vector<16xf32>
    %248 = vector.multi_reduction <maximumf>, %247, %cst_92 [1] : vector<16x16xf32> to vector<16xf32>
    %249 = vector.shape_cast %248 : vector<16xf32> to vector<16x1xf32>
    %250 = vector.broadcast %249 : vector<16x1xf32> to vector<16x16xf32>
    %251 = arith.subf %247, %250 : vector<16x16xf32>
    %252 = math.exp %251 : vector<16x16xf32>
    %cst_93 = arith.constant dense<0.000000e+00> : vector<16xf32>
    %253 = vector.multi_reduction <add>, %252, %cst_93 [1] : vector<16x16xf32> to vector<16xf32>
    %254 = vector.shape_cast %253 : vector<16xf32> to vector<16x1xf32>
    %255 = tpu.reciprocal %254 {approx = true} : vector<16x1xf32> -> vector<16x1xf32>
    %256 = vector.broadcast %255 : vector<16x1xf32> to vector<16x16xf32>
    %257 = arith.mulf %252, %256 : vector<16x16xf32>
    %258 = vector.extract_strided_slice %186 {offsets = [0, 48], sizes = [16, 16], strides = [1, 1]} : vector<16x64xf32> to vector<16x16xf32>
    %cst_94 = arith.constant dense<0.000000e+00> : vector<16x16xf32>
    %259 = tpu.matmul %257, %258, %cst_94 {dimension_numbers = #tpu.dot_dimension_numbers<[1], [0], [0], [1], [0, 0, 1, 1], [], []>} : vector<16x16xf32>, vector<16x16xf32>, vector<16x16xf32> -> vector<16x16xf32>
    %260 = tpu.concatenate %217, %231, %245, %259 in 1 : vector<16x16xf32>, vector<16x16xf32>, vector<16x16xf32>, vector<16x16xf32> -> vector<16x64xf32>
    %c0_95 = arith.constant 0 : index
    %c0_96 = arith.constant 0 : index
    %261 = vector.load %arg20[%c0_95, %c0_96] : memref<1x64xf32, #tpu.memory_space<vmem>>, vector<1x64xf32>
    %262 = vector.broadcast %261 : vector<1x64xf32> to vector<16x64xf32>
    %263 = arith.addf %260, %262 : vector<16x64xf32>
    %cst_97 = arith.constant 0.000000e+00 : f32
    %264 = vector.broadcast %cst_97 : f32 to vector<16x64xf32>
    %265 = arith.maximumf %263, %264 : vector<16x64xf32>
    %c0_98 = arith.constant 0 : index
    %c0_99 = arith.constant 0 : index
    %266 = vector.load %arg3[%c0_98, %c0_99] : memref<2x16xf32, #tpu.memory_space<vmem>>, vector<2x16xf32>
    %cst_100 = arith.constant dense<0.000000e+00> : vector<2x64xf32>
    %267 = tpu.matmul %266, %265, %cst_100 {dimension_numbers = #tpu.dot_dimension_numbers<[1], [0], [0], [1], [0, 0, 1, 1], [], []>} : vector<2x16xf32>, vector<16x64xf32>, vector<2x64xf32> -> vector<2x64xf32>
    %c0_101 = arith.constant 0 : index
    %c0_102 = arith.constant 0 : index
    %268 = vector.load %arg21[%c0_101, %c0_102] : memref<64x4xf32, #tpu.memory_space<vmem>>, vector<64x4xf32>
    %cst_103 = arith.constant dense<0.000000e+00> : vector<2x4xf32>
    %269 = tpu.matmul %267, %268, %cst_103 {dimension_numbers = #tpu.dot_dimension_numbers<[1], [0], [0], [1], [0, 0, 1, 1], [], []>} : vector<2x64xf32>, vector<64x4xf32>, vector<2x4xf32> -> vector<2x4xf32>
    %c0_104 = arith.constant 0 : index
    %c0_105 = arith.constant 0 : index
    %270 = vector.load %arg22[%c0_104, %c0_105] : memref<1x4xf32, #tpu.memory_space<vmem>>, vector<1x4xf32>
    %271 = vector.broadcast %270 : vector<1x4xf32> to vector<2x4xf32>
    %272 = arith.addf %269, %271 : vector<2x4xf32>
    %273 = math.tanh %272 : vector<2x4xf32>
    %c0_106 = arith.constant 0 : index
    %c0_107 = arith.constant 0 : index
    %274 = vector.load %arg23[%c0_106, %c0_107] : memref<2x4xf32, #tpu.memory_space<vmem>>, vector<2x4xf32>
    tpu.vector_store %arg23[%c0_106, %c0_107], %273 {strides = array<i32>} : memref<2x4xf32, #tpu.memory_space<vmem>>, vector<2x4xf32>,
    return
  }
}

</mosaic_0001>

<bundles_post_ra>
// kernel: tpu_custom_call.1
= control target key start
LH: loop header
LB: loop body
LE: loop exit
PB: predicated region body
PF: predicated region fallthrough
CT: control target
= control target key end

     0   :  { %s11136_s0 = inlined_call_operand.vmem [shape: s8[16,16], index: 0, kind: input, shape index: {}]   ;;  %s11137_s1 = inlined_call_operand.vmem [shape: f32[16,16], index: 1, kind: input, shape index: {}]   ;;  %s11138_s2 = inlined_call_operand.vmem [shape: f32[16,8], index: 2, kind: input, shape index: {}]   ;;  %s11139_s3 = inlined_call_operand.vmem [shape: f32[2,16], index: 3, kind: input, shape index: {}]   ;;  %s11140_s4 = inlined_call_operand.vmem [shape: f32[64,1024], index: 4, kind: input, shape index: {}]   ;;  %s11141_s5 = inlined_call_operand.vmem [shape: f32[16,1024], index: 5, kind: input, shape index: {}]   ;;  %s11142_s6 = inlined_call_operand.vmem [shape: f32[8,128], index: 6, kind: input, shape index: {}]   ;;  %s11143_s7 = inlined_call_operand.vmem [shape: f32[1,128], index: 7, kind: input, shape index: {}]   ;;  %s11144_s8 = inlined_call_operand.vmem [shape: f32[1,1024], index: 8, kind: input, shape index: {}]   ;;  %s11145_s9 = inlined_call_operand.vmem [shape: f32[1024,64], index: 9, kind: input, shape index: {}]   ;;  %s11146_s10 = inlined_call_operand.vmem [shape: f32[1,64], index: 10, kind: input, shape index: {}]   ;;  %s11147_s11 = inlined_call_operand.vmem [shape: f32[64,128], index: 11, kind: input, shape index: {}]   ;;  %s11148_s12 = inlined_call_operand.vmem [shape: f32[1,128], index: 12, kind: input, shape index: {}]   ;;  %s11149_s13 = inlined_call_operand.vmem [shape: f32[1,1024], index: 13, kind: input, shape index: {}]   ;;  %s11150_s14 = inlined_call_operand.vmem [shape: f32[1024,64], index: 14, kind: input, shape index: {}]   ;;  %s11151_s15 = inlined_call_operand.vmem [shape: f32[1,64], index: 15, kind: input, shape index: {}]   ;;  %s11152_s16 = inlined_call_operand.vmem [shape: f32[64,128], index: 16, kind: input, shape index: {}]   ;;  %s11153_s17 = inlined_call_operand.vmem [shape: f32[1,128], index: 17, kind: input, shape index: {}]   ;;  %s11154_s18 = inlined_call_operand.vmem [shape: f32[1,1024], index: 18, kind: input, shape index: {}]   ;;  %s11155_s19 = inlined_call_operand.vmem [shape: f32[1024,64], index: 19, kind: input, shape index: {}]   ;;  %s11156_s20 = inlined_call_operand.vmem [shape: f32[1,64], index: 20, kind: input, shape index: {}]   ;;  %s11157_s21 = inlined_call_operand.vmem [shape: f32[64,4], index: 21, kind: input, shape index: {}]   ;;  %s11158_s22 = inlined_call_operand.vmem [shape: f32[1,4], index: 22, kind: input, shape index: {}]   ;;  %s11159_s23 = inlined_call_operand.hbm [shape: f32[2,4], index: 23, kind: output, shape index: {}]  }
   0x1   :  { %11258 = sst [smem:[#allocation83_spill]] %s11136_s0 }
   0x2   :  { %11259 = sst [smem:[#allocation84_spill]] %s11137_s1 }
   0x3   :  { %11260 = sst [smem:[#allocation85_spill]] %s11138_s2 }
   0x4   :  { %11261 = sst [smem:[#allocation86_spill]] %s11139_s3 }
   0x5   :  { %11262 = sst [smem:[#allocation87_spill]] %s11140_s4 }
   0x6   :  { %11263 = sst [smem:[#allocation88_spill]] %s11141_s5 }
   0x7   :  { %11264 = sst [smem:[#allocation89_spill]] %s11142_s6 }
   0x8   :  { %11265 = sst [smem:[#allocation90_spill]] %s11143_s7 }
   0x9   :  { %s11266_s24 = sld [smem:[#allocation88_spill]]  ;;  %v11164_v5 = vmov 0.0   ;;  %s11268_s28 = sld [smem:[#allocation84_spill]]  ;;  %vm167_vm0 = vcmask 130048   ;;  %vm492_vm1 = vcmask 64512  }
   0xa   :  { %392 = vmatprep.mubr.f32.mxu0 %v11164_v5  ;;  %238 = vmatprep.mubr.f32.mxu1 %v11164_v5  ;;  %s11269_s0 = sld [smem:[#allocation89_spill]]  ;;  %s11272_s7 = sld [smem:[#allocation87_spill]] }
   0xb   :  { %s11273_s5 = sld [smem:[#allocation85_spill]] }
   0xf   :  { %v154_v0 = vld [vmem:[%s11266_s24 + $0x28] sm:$0xff]  ;;  %v8248_v2 = vld [vmem:[%s11266_s24 + $0x20] sm:$0xff]  ;;  %v8292_v14 = vld [vmem:[%s11266_s24 + $0x18] sm:$0xff] }
  0x10   :  { %v162_v1 = vld [vmem:[%s11266_s24 + $0x68] sm:$0xff]  ;;  %v8253_v4 = vld [vmem:[%s11266_s24 + $0x60] sm:$0xff]  ;;  %v8297_v15 = vld [vmem:[%s11266_s24 + $0x58] sm:$0xff] }
  0x11   :  { %v7025_v3 = vpack.c.bf16 %v162_v1, %v154_v0  ;;  %11267 = vst [vmem:[#allocation5_spill] sm:$0xff] %v8253_v4  ;;  %v7027_v6 = vpack.c.bf16 %v8253_v4, %v8248_v2  ;;  %v8262_v7 = vld [vmem:[%s11268_s28] sm:$0xff]  ;;  %v8270_v9 = vld [vmem:[%s11266_s24 + $0x8] sm:$0xff]  ;;  %v7021_v17 = vpack.c.bf16 %v8297_v15, %v8292_v14  ;;  %v8306_v18 = vld [vmem:[%s11266_s24 + $0x10] sm:$0xff] }
  0x12   :  { %v484_v8 = vld [vmem:[%s11269_s0] sm:$0xff]  ;;  %v8275_v10 = vld [vmem:[%s11266_s24 + $0x48] sm:$0xff]  ;;  %v8311_v19 = vld [vmem:[%s11266_s24 + $0x50] sm:$0xff] }
  0x13   :  { %7026 = vmatprep.subr.bf16.mxu0 %v7025_v3  ;;  %v8280_v11 = vld [vmem:[%s11266_s24] sm:$0xff]  ;;  %v7017_v12 = vpack.c.bf16 %v8275_v10, %v8270_v9  ;;  %v8316_v20 = vld [vmem:[%s11266_s24 + $0x38] sm:$0xff]  ;;  %v166_v23 = vld [vmem:[%s11268_s28 + $0x8] sm:$0xff]  ;;  %v7023_v24 = vpack.c.bf16 %v8311_v19, %v8306_v18 }
  0x14   :  { %7028 = vmatpush1.bf16.msra.mxu0 %v7027_v6  ;;  %v8287_v13 = vld [vmem:[%s11266_s24 + $0x40] sm:$0xff]  ;;  %11270 = vst [vmem:[#allocation6_spill] sm:$0xff] %v8316_v20  ;;  %v8321_v21 = vld [vmem:[%s11266_s24 + $0x78] sm:$0xff]  ;;  %v87_v29 = vld [vmem:[%s11272_s7 + $0x10] sm:$0xff] }
  0x15   :  { %6864 = vmatprep.subr.mxu0 %v484_v8  ;;  %v7019_v16 = vpack.c.bf16 %v8287_v13, %v8280_v11  ;;  %7018 = vmatprep.subr.bf16.mxu1 %v7017_v12  ;;  %11271 = vst [vmem:[#allocation7_spill] sm:$0xff] %v8321_v21  ;;  %v88_v22 = vld [vmem:[%s11272_s7 + $0x18] sm:$0xff]  ;;  %v482_v26 = vld [vmem:[%s11273_s5] sm:$0xff]  ;;  %v7029_v27 = vpack.c.bf16 %v8321_v21, %v8316_v20  ;;  %v95_v30 = vld [vmem:[%s11272_s7 + $0x50] sm:$0xff] }
  0x16   :  { %v96_v25 = vld [vmem:[%s11272_s7 + $0x58] sm:$0xff] }
  0x17   :  { %6230 = vmatmul.mubr.msk.f32.vlgmr.msra.gmra.mrb[0].mxu0 %vm167_vm0, %v8262_v7  ;;  %7020 = vmatpush1.bf16.msra.mxu1 %v7019_v16  ;;  %v8342_v28 = vpack.c.bf16 %v96_v25, %v88_v22  ;;  %v104_v31 = vld [vmem:[%s11272_s7 + $0x98] sm:$0xff] }
  0x18   :  { %6865 = vmatpush3.msra.mxu0 %v484_v8  ;;  %398 = vmatprep.mubr.f32.mxu0 %v11164_v5  ;;  %v112_v32 = vld [vmem:[%s11272_s7 + $0xd8] sm:$0xff] }
  0x19   :  { %7022 = vmatprep.subr.bf16.mxu1 %v7021_v17  ;;  %11274 = vst [vmem:[#allocation8_spill] sm:$0xff] %v8342_v28 }
  0x1a   :  { %6226 = vmatmul.mubr.msk.f32.vlgmr.msra.gmra.mrb[0].mxu1 %vm167_vm0, %v8262_v7 }
  0x1b   :  { %6231 = vmatmul.mubr.msk.f32.gmra.mrb[2].mxu0 %vm167_vm0, %v166_v23  ;;  %244 = vmatprep.mubr.f32.mxu1 %v11164_v5 }
  0x1c   :  { %28 = vsyncpa [#allocation3], 0  ;;  %6866 = vmatprep.mubr.msk.f32.mxu0 %vm492_vm1, %v482_v26  ;;  %v483_v33 = vld [vmem:[%s11273_s5 + $0x8] sm:$0xff]  ;;  %7024 = vmatpush1.bf16.msra.mxu1 %v7023_v24  ;;  %v8367_v34 = vld [vmem:[%s11266_s24 + $0x30] sm:$0xff]  ;;  %v8374_v36 = vpack.c.bf16 %v95_v30, %v87_v29  ;;  %v8383_v39 = vpack.c.bf16 %v112_v32, %v104_v31  ;;  %s11304_s28 = sld [smem:[#allocation90_spill]]  ;;  %vm574_vm2 = vcmask 523264  }
  0x1d   :  { %11275 = vst [vmem:[#allocation9_spill] sm:$0xff] %v8367_v34  ;;  %v8372_v35 = vld [vmem:[%s11266_s24 + $0x70] sm:$0xff]  ;;  %7030 = vmatprep.subr.bf16.mxu1 %v7029_v27  ;;  %v86_v37 = vld [vmem:[%s11272_s7 + $0x8] sm:$0xff]  ;;  %7050 = vmatprep.subr.bf16.mxu0 %v8342_v28  ;;  %v85_v42 = vld [vmem:[%s11272_s7] sm:$0xff]  ;;  %s8109_s1 = smov 64   ;;  %s11356_s29 = sld [smem:[#allocation83_spill]] }
  0x1e   :  { %11276 = vst [vmem:[#allocation10_spill] sm:$0xff] %v8372_v35  ;;  %11277 = vst [vmem:[#allocation11_spill] sm:$0xff] %v8374_v36  ;;  %v94_v38 = vld [vmem:[%s11272_s7 + $0x48] sm:$0xff]  ;;  %6227 = vmatmul.mubr.msk.f32.gmra.mrb[2].mxu1 %vm167_vm0, %v166_v23  ;;  %v7031_v40 = vpack.c.bf16 %v8372_v35, %v8367_v34  ;;  %v93_v43 = vld [vmem:[%s11272_s7 + $0x40] sm:$0xff]  ;;  %s8110_s3 = smov 16   ;;  %s8111_s0 = smov 32  }
  0x1f   :  { %11278 = vst [vmem:[#allocation12_spill] sm:$0xff] %v8383_v39  ;;  %6867 = vmatmul.mubr.msk.f32.vlgmr.msra.gmra.mrb[4].mxu0 %vm492_vm1, %v483_v33  ;;  %315 = vmatprep.mubr.f32.mxu1 %v11164_v5  ;;  %v8390_v41 = vpack.c.bf16 %v94_v38, %v86_v37  ;;  %v102_v44 = vld [vmem:[%s11272_s7 + $0x88] sm:$0xff]  ;;  %v8413_v46 = vpack.c.bf16 %v93_v43, %v85_v42  ;;  %v101_v48 = vld [vmem:[%s11272_s7 + $0x80] sm:$0xff]  ;;  %v103_v50 = vld [vmem:[%s11272_s7 + $0x90] sm:$0xff]  ;;  %v1279_v37 = vlaneseq  ;;  %s8112_s4 = smov 48   ;;  %vm1926_vm3 = vcmask 261248  }
  0x20   :  { %7052 = vmatpush1.bf16.msra.mxu0 %v8374_v36  ;;  %722 = vmatprep.mubr.f32.mxu0 %v11164_v5  ;;  %v110_v45 = vld [vmem:[%s11272_s7 + $0xc8] sm:$0xff]  ;;  %v109_v49 = vld [vmem:[%s11272_s7 + $0xc0] sm:$0xff]  ;;  %v111_v52 = vld [vmem:[%s11272_s7 + $0xd0] sm:$0xff]  ;;  %vm2056_vm4 = vcmask 392448   ;;  %vm2186_vm5 = vcmask 523648   ;;  %vm2334_vm6 = vcmask 261120  }
  0x21   :  { %11279 = vst [vmem:[#allocation13_spill] sm:$0xff] %v8390_v41  ;;  %7054 = vmatprep.subr.bf16.mxu0 %v8383_v39  ;;  %v8415_v47 = vpack.c.bf16 %v110_v45, %v102_v44  ;;  %v8433_v51 = vpack.c.bf16 %v109_v49, %v101_v48  ;;  %v8439_v53 = vpack.c.bf16 %v111_v52, %v103_v50  ;;  %v118_v54 = vld [vmem:[%s11272_s7 + $0x108] sm:$0xff]  ;;  %v120_v56 = vld [vmem:[%s11272_s7 + $0x118] sm:$0xff]  ;;  %v117_v59 = vld [vmem:[%s11272_s7 + $0x100] sm:$0xff]  ;;  %v8532_v38 = vshrl.u32 %v1279_v37, 7  ;;  %s11450_s25 = sld [smem:[#allocation86_spill]] }
  0x22   :  { %6228 = vmatmul.mubr.msk.f32.vlgmr.msra.gmra.mrb[4].mxu1 %vm167_vm0, %v8262_v7  ;;  %v126_v55 = vld [vmem:[%s11272_s7 + $0x148] sm:$0xff]  ;;  %v128_v58 = vld [vmem:[%s11272_s7 + $0x158] sm:$0xff]  ;;  %v125_v60 = vld [vmem:[%s11272_s7 + $0x140] sm:$0xff]  ;;  %vm2337_vm7 = vcmask 392192   ;;  %vm8117_vm8 = vmmov 0   ;;  %vm6208_vm9 = vcmask 25600  }
  0x23   :  { %321 = vmatprep.mubr.f32.mxu1 %v11164_v5  ;;  %7032 = vmatpush1.bf16.msra.mxu1 %v7031_v40  ;;  %11280 = vst [vmem:[#allocation14_spill] sm:$0xff] %v8439_v53  ;;  %v8450_v57 = vpack.c.bf16 %v126_v55, %v118_v54  ;;  %v8462_v61 = vpack.c.bf16 %v128_v58, %v120_v56  ;;  %v119_v63 = vld [vmem:[%s11272_s7 + $0x110] sm:$0xff]  ;;  %v134_v3 = vld [vmem:[%s11272_s7 + $0x188] sm:$0xff]  ;;  %v144_v12 = vld [vmem:[%s11272_s7 + $0x1d8] sm:$0xff]  ;;  %v8535_v40 = vsub.s32 4, %v8532_v38  ;;  %v8548_v44 = vsub.s32 5, %v8532_v38 }
  0x24   :  { %7034 = vmatprep.subr.bf16.mxu1 %v8390_v41  ;;  %7056 = vmatpush1.bf16.msra.mxu0 %v8439_v53  ;;  %v8464_v62 = vpack.c.bf16 %v125_v60, %v117_v59  ;;  %v127_v0 = vld [vmem:[%s11272_s7 + $0x150] sm:$0xff]  ;;  %v142_v6 = vld [vmem:[%s11272_s7 + $0x1c8] sm:$0xff]  ;;  %v133_v16 = vld [vmem:[%s11272_s7 + $0x180] sm:$0xff]  ;;  %v8766_v21 = vsub.s32 2, %v8532_v38  ;;  %v8779_v20 = vsub.s32 3, %v8532_v38 }
  0x25   :  { %11281 = vst [vmem:[#allocation15_spill] sm:$0xff] %v8462_v61  ;;  %v8473_v1 = vpack.c.bf16 %v127_v0, %v119_v63  ;;  %7058 = vmatprep.subr.bf16.mxu0 %v8462_v61  ;;  %v8486_v8 = vpack.c.bf16 %v142_v6, %v134_v3  ;;  %v141_v17 = vld [vmem:[%s11272_s7 + $0x1c0] sm:$0xff]  ;;  %v135_v24 = vld [vmem:[%s11272_s7 + $0x190] sm:$0xff]  ;;  %v90_v27 = vld [vmem:[%s11272_s7 + $0x28] sm:$0xff] }
  0x26   :  { %6229 = vmatmul.mubr.msk.f32.gmra.mrb[6].mxu1 %vm167_vm0, %v166_v23  ;;  %11282 = vst [vmem:[#allocation16_spill] sm:$0xff] %v8464_v62  ;;  %v143_v25 = vld [vmem:[%s11272_s7 + $0x1d0] sm:$0xff]  ;;  %v98_v29 = vld [vmem:[%s11272_s7 + $0x68] sm:$0xff]  ;;  %v92_v31 = vld [vmem:[%s11272_s7 + $0x38] sm:$0xff] }
  0x27   :  { %469 = vmatprep.mubr.f32.mxu1 %v11164_v5  ;;  %11283 = vst [vmem:[#allocation17_spill] sm:$0xff] %v8473_v1  ;;  %11284 = vst [vmem:[#allocation18_spill] sm:$0xff] %v8486_v8  ;;  %v8509_v26 = vpack.c.bf16 %v143_v25, %v135_v24  ;;  %v8519_v30 = vpack.c.bf16 %v98_v29, %v90_v27  ;;  %v100_v32 = vld [vmem:[%s11272_s7 + $0x78] sm:$0xff]  ;;  %v8540_v42 = vld [vmem:[%s11149_s13] sm:$0xff] }
  0x28   :  { %7060 = vmatpush1.bf16.msra.mxu0 %v8473_v1  ;;  %v8528_v33 = vpack.c.bf16 %v100_v32, %v92_v31  ;;  %11290 = vst [vmem:[#allocation24_spill] sm:$0xff] %v8535_v40  ;;  %v8545_v43 = vld [vmem:[%s11154_s18] sm:$0xff]  ;;  %11291 = vst [vmem:[#allocation25_spill] sm:$0xff] %v8548_v44  ;;  %v3170_v45 = vrot.slane %v8540_v42, %v8535_v40  ;;  %v3174_v49 = vrot.slane %v8540_v42, %v8548_v44  ;;  %v91_v24 = vld [vmem:[%s11272_s7 + $0x30] sm:$0xff]  ;;  %s8118_s18 = smov [#allocation2]  }
  0x29   :  { %11287 = vst [vmem:[#allocation21_spill] sm:$0xff] %v8509_v26  ;;  %11288 = vst [vmem:[#allocation22_spill] sm:$0xff] %v8519_v30  ;;  %v5017_v48 = vrot.slane %v8545_v43, %v8535_v40  ;;  %v5021_v50 = vrot.slane %v8545_v43, %v8548_v44  ;;  %v99_v25 = vld [vmem:[%s11272_s7 + $0x70] sm:$0xff]  ;;  %v106_v27 = vld [vmem:[%s11272_s7 + $0xa8] sm:$0xff]  ;;  %s6216_s26 = sshll.u32 %s8118_s18, 4  ;;  %s6217_s26 = int_to_ptr.vmem [resolvable:$true] %s6216_s26 }
  0x2a   :  { %6232 = vmatmul.mubr.msk.f32.vlgmr.msra.gmra.mrb[8].mxu1 %vm167_vm0, %v8262_v7  ;;  %v136_v7 = vld [vmem:[%s11272_s7 + $0x198] sm:$0xff]  ;;  %11289 = vst [vmem:[#allocation23_spill] sm:$0xff] %v8528_v33  ;;  %v114_v31 = vld [vmem:[%s11272_s7 + $0xe8] sm:$0xff]  ;;  %s8084_s2 = scalar_lea.vmem %s6217_s26, 32  ;;  %p8089_p1 = scmp.lt.s32.totalorder %s6217_s26, %s6217_s26 }
  0x2b   :  { %7036 = vmatpush1.bf16.msra.mxu1 %v8413_v46  ;;  %475 = vmatprep.mubr.f32.mxu1 %v11164_v5  ;;  %v8498_v22 = vpack.c.bf16 %v144_v12, %v136_v7  ;;  %v6234_v12 = vld [vmem:[%s11304_s28] ss:$0 sm:$0xff]  ;;  %v108_v32 = vld [vmem:[%s11272_s7 + $0xb8] sm:$0xff]  ;;  %s8115_s28 = smov 80   ;;  %p8085_p0 = scmp.ne.s32.totalorder %s6217_s26, %s8084_s2 }
  0x2c   :  { %7038 = vmatprep.subr.bf16.mxu1 %v8415_v47  ;;  %v116_v37 = vld [vmem:[%s11272_s7 + $0xf8] sm:$0xff]  ;;  %p8090_p2 = scmp.lt.s32.totalorder %s8084_s2, %s8084_s2 }
  0x2d   :  { %11285 = vst [vmem:[#allocation19_spill] sm:$0xff] %v8498_v22  ;;  %7062 = vmatprep.subr.bf16.mxu0 %v8498_v22 }
  0x2e   :  { %6233 = vmatmul.mubr.msk.f32.gmra.mrb[10].mxu1 %vm167_vm0, %v166_v23  ;;  %v8500_v23 = vpack.c.bf16 %v141_v17, %v133_v16  ;;  %7064 = vmatpush1.bf16.msra.mxu0 %v8509_v26  ;;  %v89_v16 = vld [vmem:[%s11272_s7 + $0x20] sm:$0xff]  ;;  %p8091_p3 = por %p8090_p2, %p8089_p1 }
  0x2f   :  { %645 = vmatprep.mubr.f32.mxu1 %v11164_v5  ;;  %7040 = vmatpush1.bf16.msra.mxu1 %v8433_v51  ;;  %v97_v17 = vld [vmem:[%s11272_s7 + $0x60] sm:$0xff]  ;;  %v8623_v5 = vpack.c.bf16 %v99_v25, %v91_v24  ;;  %v130_v24 = vld [vmem:[%s11272_s7 + $0x168] sm:$0xff]  ;;  %v124_v25 = vld [vmem:[%s11272_s7 + $0x138] sm:$0xff] }
  0x30   :  { %7042 = vmatprep.subr.bf16.mxu1 %v8450_v57  ;;  %11286 = vst [vmem:[#allocation20_spill] sm:$0xff] %v8500_v23  ;;  %7082 = vmatprep.subr.bf16.mxu0 %v8528_v33  ;;  %p8092_p4 = pnand %p8091_p3, %p8085_p0 }
  0x31   :  { %11306 = vst [vmem:[#allocation39_spill] sm:$0xff] %v8623_v5 }
  0x33   :  { %7044 = vmatpush1.bf16.msra.mxu1 %v8464_v62 }
  0x34   :  { %7046 = vmatprep.subr.bf16.mxu1 %v8486_v8 }
  0x37   :  { %7048 = vmatpush1.bf16.msra.mxu1 %v8500_v23 }
  0x38   :  { %7066 = vmatprep.subr.bf16.mxu1 %v8519_v30 }
  0xea   :  { %v8558_v52 = vpop.f32.mrb[0].mxu0 }
  0xeb   :  { %11292 = vst [vmem:[#allocation26_spill] sm:$0xff] %v8558_v52  ;;  %v8561_v54 = vmul.f32 %v3170_v45, %v8558_v52  ;;  %v8564_v55 = vmul.f32 %v5017_v48, %v8558_v52  ;;  %v8566_v56 = vpop.f32.mrb[1].mxu0 }
  0xec   :  { %11295 = vst [vmem:[#allocation29_spill] sm:$0xff] %v8566_v56  ;;  %v8569_v58 = vmul.f32 %v3174_v49, %v8566_v56  ;;  %v8572_v59 = vmul.f32 %v5021_v50, %v8566_v56  ;;  %v8741_v56 = vsub.s32 1, %v8532_v38 }
  0xed   :  { %11293 = vst [vmem:[#allocation27_spill] sm:$0xff] %v8561_v54  ;;  %11294 = vst [vmem:[#allocation28_spill] sm:$0xff] %v8564_v55 }
  0xee   :  { %11296 = vst [vmem:[#allocation30_spill] sm:$0xff] %v8569_v58  ;;  %11297 = vst [vmem:[#allocation31_spill] sm:$0xff] %v8572_v59  ;;  %v8574_v60 = vpop.f32.mrb[2].mxu0  ;;  %v8631_v59 = vpack.c.bf16 %v114_v31, %v106_v27  ;;  %v132_v27 = vld [vmem:[%s11272_s7 + $0x178] sm:$0xff]  ;;  %v3158_v40 = vrot.slane %v8540_v42, %v8741_v56 }
  0xef   :  { %11298 = vst [vmem:[#allocation32_spill] sm:$0xff] %v8574_v60  ;;  %v8577_v63 = vmul.f32 %v3170_v45, %v8574_v60  ;;  %v8580_v0 = vmul.f32 %v5017_v48, %v8574_v60  ;;  %v8582_v3 = vpop.f32.mrb[3].mxu0  ;;  %v8684_v54 = vpack.c.bf16 %v132_v27, %v124_v25  ;;  %11322 = vst [vmem:[#allocation54_spill] sm:$0xff] %v8741_v56 }
  0xf0   :  { %11301 = vst [vmem:[#allocation35_spill] sm:$0xff] %v8582_v3  ;;  %v8585_v6 = vmul.f32 %v3174_v49, %v8582_v3  ;;  %v8588_v7 = vmul.f32 %v5021_v50, %v8582_v3  ;;  %v8619_v49 = vpack.c.bf16 %v97_v17, %v89_v16  ;;  %11307 = vst [vmem:[#allocation40_spill] sm:$0xff] %v8631_v59  ;;  %v107_v16 = vld [vmem:[%s11272_s7 + $0xb0] sm:$0xff]  ;;  %v122_v17 = vld [vmem:[%s11272_s7 + $0x128] sm:$0xff] }
  0xf1   :  { %11299 = vst [vmem:[#allocation33_spill] sm:$0xff] %v8577_v63  ;;  %11300 = vst [vmem:[#allocation34_spill] sm:$0xff] %v8580_v0  ;;  %v113_v0 = vld [vmem:[%s11272_s7 + $0xe0] sm:$0xff]  ;;  %v8682_v58 = vpack.c.bf16 %v130_v24, %v122_v17  ;;  %v140_v17 = vld [vmem:[%s11272_s7 + $0x1b8] sm:$0xff] }
  0xf2   :  { %11302 = vst [vmem:[#allocation36_spill] sm:$0xff] %v8585_v6  ;;  %11303 = vst [vmem:[#allocation37_spill] sm:$0xff] %v8588_v7  ;;  %v6868_v29 = vpop.f32.mrb[4].mxu0  ;;  %v105_v7 = vld [vmem:[%s11272_s7 + $0xa0] sm:$0xff]  ;;  %v148_v24 = vld [vmem:[%s11272_s7 + $0x1f8] sm:$0xff] }
  0xf3   :  { %v8617_v45 = vadd.f32 %v6868_v29, %v6234_v12  ;;  %v565_v48 = vpop.f32.mrb[5].mxu0  ;;  %11305 = vst [vmem:[#allocation38_spill] sm:$0xff] %v8619_v49  ;;  %v8633_v29 = vpack.c.bf16 %v116_v37, %v108_v32  ;;  %v11311_v37 = vmov 0.0   ;;  %v121_v6 = vld [vmem:[%s11272_s7 + $0x120] sm:$0xff]  ;;  %11314 = vst [vmem:[#allocation46_spill] sm:$0xff] %v8682_v58  ;;  %v8727_v60 = vpack.c.bf16 %v148_v24, %v140_v17 }
  0xf4   :  { %v8621_v50 = vadd.f32 %v6234_v12, %v565_v48  ;;  %v115_v12 = vld [vmem:[%s11272_s7 + $0xf0] sm:$0xff]  ;;  %v8670_v48 = vpack.c.bf16 %v113_v0, %v105_v7  ;;  %v129_v63 = vld [vmem:[%s11272_s7 + $0x160] sm:$0xff]  ;;  %11315 = vst [vmem:[#allocation47_spill] sm:$0xff] %v8684_v54 }
  0xf5   :  { %11308 = vst [vmem:[#allocation41_spill] sm:$0xff] %v8633_v29  ;;  %v8672_v55 = vpack.c.bf16 %v115_v12, %v107_v16  ;;  %v123_v0 = vld [vmem:[%s11272_s7 + $0x130] sm:$0xff]  ;;  %v138_v16 = vld [vmem:[%s11272_s7 + $0x1a8] sm:$0xff]  ;;  %v8713_v25 = vpack.c.bf16 %v129_v63, %v121_v6  ;;  %11319 = vst [vmem:[#allocation51_spill] sm:$0xff] %v8727_v60 }
  0xf6   :  { %961 = vrot.lane.b32.xlu0 %v8621_v50, %s8109_s1  ;;  %6237 = vmatmul.mubr.msk.f32.vlgmr.msra.gmra.mrb[12].mxu1 %vm574_vm2, %v8621_v50  ;;  %v8659_v31 = vpack.c.bf16 %v8617_v45, %v8621_v50  ;;  %v8663_v32 = vpack.i.bf16 %v8617_v45, %v8621_v50  ;;  %11312 = vst [vmem:[#allocation44_spill] sm:$0xff] %v8670_v48  ;;  %v131_v7 = vld [vmem:[%s11272_s7 + $0x170] sm:$0xff]  ;;  %v146_v12 = vld [vmem:[%s11272_s7 + $0x1e8] sm:$0xff] }
  0xf7   :  { %6239 = vmatmul.mubr.msk.f32.vlgmr.msra.gmra.mrb[6].mxu0 %vm574_vm2, %v8621_v50  ;;  %7068 = vmatpush1.bf16.msra.mxu1 %v8619_v49  ;;  %11313 = vst [vmem:[#allocation45_spill] sm:$0xff] %v8672_v55  ;;  %11316 = vst [vmem:[#allocation48_spill] sm:$0xff] %v8713_v25  ;;  %v8715_v27 = vpack.c.bf16 %v131_v7, %v123_v0  ;;  %v8725_v3 = vpack.c.bf16 %v146_v12, %v138_v16  ;;  %v139_v63 = vld [vmem:[%s11272_s7 + $0x1b0] sm:$0xff]  ;;  %v8735_v0 = vpop.f32.mrb[0].mxu1  ;;  %v8738_v7 = vsub.s32 0, %v8532_v38 }
  0xf8   :  { %11309 = vst [vmem:[#allocation42_spill] sm:$0xff] %v8659_v31  ;;  %11310 = vst [vmem:[#allocation43_spill] sm:$0xff] %v8663_v32  ;;  %7084 = vmatpush1.bf16.msra.mxu0 %v8623_v5  ;;  %651 = vmatprep.mubr.f32.mxu1 %v11311_v37  ;;  %v137_v32 = vld [vmem:[%s11272_s7 + $0x1a0] sm:$0xff]  ;;  %v147_v6 = vld [vmem:[%s11272_s7 + $0x1f0] sm:$0xff]  ;;  %v8745_v16 = vpop.f32.mrb[1].mxu1 }
  0xf9   :  { %728 = vmatprep.mubr.f32.mxu0 %v11311_v37  ;;  %7070 = vmatprep.subr.bf16.mxu1 %v8631_v59  ;;  %11317 = vst [vmem:[#allocation49_spill] sm:$0xff] %v8715_v27  ;;  %v145_v31 = vld [vmem:[%s11272_s7 + $0x1e0] sm:$0xff]  ;;  %11318 = vst [vmem:[#allocation50_spill] sm:$0xff] %v8725_v3  ;;  %v3154_v17 = vrot.slane %v8540_v42, %v8738_v7  ;;  %v5001_v24 = vrot.slane %v8545_v43, %v8738_v7  ;;  %v8753_v52 = vpop.f32.mrb[2].mxu1  ;;  %s8114_s7 = smov 96  }
  0xfa   :  { %7086 = vmatprep.subr.bf16.mxu0 %v8633_v29  ;;  %963 = vrot.lane.b32.xlu0 %v8617_v45, %s8109_s1  ;;  %11320 = vst [vmem:[#allocation52_spill] sm:$0xff] %v8735_v0  ;;  %11321 = vst [vmem:[#allocation53_spill] sm:$0xff] %v8738_v7  ;;  %v8747_v12 = vpack.c.bf16 %v145_v31, %v137_v32  ;;  %v8757_v44 = vpack.c.bf16 %v147_v6, %v139_v63  ;;  %v8763_v32 = vpop.f32.mrb[3].mxu1 }
  0xfb   :  { %6238 = vmatmul.mubr.msk.f32.gmra.mrb[14].mxu1 %vm574_vm2, %v8617_v45  ;;  %6240 = vmatmul.mubr.msk.f32.gmra.mrb[8].mxu0 %vm574_vm2, %v8617_v45  ;;  %v5005_v31 = vrot.slane %v8545_v43, %v8741_v56  ;;  %11325 = vst [vmem:[#allocation57_spill] sm:$0xff] %v8763_v32  ;;  %v8771_v7 = vmul.f32 %v3154_v17, %v8735_v0  ;;  %v8776_v6 = vpop.f32.mrb[4].mxu1 }
  0xfc   :  { %7072 = vmatpush1.bf16.msra.mxu1 %v8670_v48  ;;  %7088 = vmatpush1.bf16.msra.mxu0 %v8672_v55  ;;  %11323 = vst [vmem:[#allocation55_spill] sm:$0xff] %v8747_v12  ;;  %11324 = vst [vmem:[#allocation56_spill] sm:$0xff] %v8757_v44  ;;  %v8774_v63 = vmul.f32 %v5001_v24, %v8735_v0  ;;  %v8782_v56 = vmul.f32 %v3158_v40, %v8745_v16  ;;  %v8787_v4 = vpop.f32.mrb[5].mxu1 }
  0xfd   :  { %7074 = vmatprep.subr.bf16.mxu1 %v8682_v58  ;;  %7090 = vmatprep.subr.bf16.mxu0 %v8684_v54  ;;  %11326 = vst [vmem:[#allocation58_spill] sm:$0xff] %v8771_v7  ;;  %11328 = vst [vmem:[#allocation60_spill] sm:$0xff] %v8776_v6  ;;  %v8785_v35 = vmul.f32 %v5005_v31, %v8745_v16  ;;  %v8790_v34 = vmul.f32 %v3154_v17, %v8753_v52  ;;  %v8798_v0 = vpop.f32.mrb[6].mxu1 }
  0xfe   :  { %799 = vmatprep.mubr.f32.mxu1 %v11311_v37  ;;  %876 = vmatprep.mubr.f32.mxu0 %v11311_v37  ;;  %11327 = vst [vmem:[#allocation59_spill] sm:$0xff] %v8774_v63  ;;  %11329 = vst [vmem:[#allocation61_spill] sm:$0xff] %v8782_v56  ;;  %v8793_v7 = vmul.f32 %v5001_v24, %v8753_v52  ;;  %v8796_v63 = vmul.f32 %v3158_v40, %v8763_v32  ;;  %v8807_v17 = vpop.f32.mrb[7].mxu1 }
  0xff   :  { %11330 = vst [vmem:[#allocation62_spill] sm:$0xff] %v8785_v35  ;;  %11331 = vst [vmem:[#allocation63_spill] sm:$0xff] %v8790_v34  ;;  %v8803_v56 = vmul.f32 %v5005_v31, %v8763_v32  ;;  %v3162_v35 = vrot.slane %v8540_v42, %v8766_v21  ;;  %v5009_v40 = vrot.slane %v8545_v43, %v8766_v21  ;;  %v8826_v34 = vsub.s32 6, %v8532_v38 }
 0x100   :  { %7076 = vmatpush1.bf16.msra.mxu1 %v8713_v25  ;;  %7092 = vmatpush1.bf16.msra.mxu0 %v8715_v27  ;;  %11332 = vst [vmem:[#allocation64_spill] sm:$0xff] %v8793_v7  ;;  %11333 = vst [vmem:[#allocation65_spill] sm:$0xff] %v8796_v63  ;;  %v3166_v24 = vrot.slane %v8540_v42, %v8779_v20  ;;  %v8815_v7 = vpop.f32.mrb[8].mxu1 }
 0x101   :  { %7078 = vmatprep.subr.bf16.mxu1 %v8725_v3  ;;  %7094 = vmatprep.subr.bf16.mxu0 %v8727_v60  ;;  %11334 = vst [vmem:[#allocation66_spill] sm:$0xff] %v8803_v56  ;;  %v8818_v31 = vmul.f32 %v3162_v35, %v8776_v6  ;;  %v5013_v56 = vrot.slane %v8545_v43, %v8779_v20 }
 0x102   :  { %v8823_v63 = vmul.f32 %v3162_v35, %v8798_v0  ;;  %v8841_v35 = vsub.s32 7, %v8532_v38  ;;  %v8858_v38 = vmul.f32 %v3166_v24, %v8807_v17 }
 0x103   :  { %11335 = vst [vmem:[#allocation67_spill] sm:$0xff] %v8818_v31  ;;  %v8838_v31 = vmul.f32 %v3166_v24, %v8787_v4  ;;  %v8848_v32 = vmul.f32 %v5013_v56, %v8787_v4 }
 0x104   :  { %7080 = vmatpush1.bf16.msra.mxu1 %v8747_v12  ;;  %7096 = vmatpush1.bf16.msra.mxu0 %v8757_v44  ;;  %11336 = vst [vmem:[#allocation68_spill] sm:$0xff] %v8823_v63  ;;  %11341 = vst [vmem:[#allocation73_spill] sm:$0xff] %v8858_v38  ;;  %v5029_v24 = vrot.slane %v8545_v43, %v8841_v35 }
 0x105   :  { %7098 = vmatprep.subr.bf16.mxu1 %v8390_v41  ;;  %7114 = vmatprep.subr.bf16.mxu0 %v8342_v28  ;;  %v8828_v28 = vpop.f32.mrb[9].mxu1  ;;  %v8835_v41 = vmul.f32 %v5009_v40, %v8776_v6  ;;  %11338 = vst [vmem:[#allocation70_spill] sm:$0xff] %v8838_v31  ;;  %11339 = vst [vmem:[#allocation71_spill] sm:$0xff] %v8848_v32  ;;  %v1415_v31 = vld [vmem:[%s11145_s9 + $0x100] sm:$0xff] }
 0x106   :  { %v8843_v63 = vpop.f32.mrb[10].mxu1 }
 0x107   :  { %6241 = vmatmul.mubr.msk.f32.vlgmr.msra.gmra.mrb[16].mxu1 %vm574_vm2, %v8621_v50  ;;  %6243 = vmatmul.mubr.msk.f32.vlgmr.msra.gmra.mrb[10].mxu0 %vm574_vm2, %v8621_v50  ;;  %11337 = vst [vmem:[#allocation69_spill] sm:$0xff] %v8835_v41  ;;  %v8851_v50 = vmul.f32 %v5009_v40, %v8798_v0  ;;  %v8853_v6 = vpop.f32.mrb[11].mxu1  ;;  %v8861_v41 = vmul.f32 %v5013_v56, %v8807_v17 }
 0x108   :  { %805 = vmatprep.mubr.f32.mxu1 %v11311_v37  ;;  %882 = vmatprep.mubr.f32.mxu0 %v11311_v37  ;;  %v3178_v40 = vrot.slane %v8540_v42, %v8826_v34  ;;  %v3182_v56 = vrot.slane %v8540_v42, %v8841_v35  ;;  %v8891_v42 = vmul.f32 %v5029_v24, %v8828_v28 }
 0x109   :  { %11340 = vst [vmem:[#allocation72_spill] sm:$0xff] %v8851_v50  ;;  %7100 = vmatpush1.bf16.msra.mxu1 %v8413_v46  ;;  %7116 = vmatpush1.bf16.msra.mxu0 %v8374_v36  ;;  %11342 = vst [vmem:[#allocation74_spill] sm:$0xff] %v8861_v41  ;;  %v5025_v50 = vrot.slane %v8545_v43, %v8826_v34  ;;  %v8905_v38 = vmul.f32 %v5029_v24, %v8853_v6  ;;  %v1400_v24 = vld [vmem:[%s11145_s9 + $0x88] sm:$0xff] }
 0x10a   :  { %7102 = vmatprep.subr.bf16.mxu1 %v8415_v47  ;;  %7118 = vmatprep.subr.bf16.mxu0 %v8383_v39  ;;  %v8880_v41 = vmul.f32 %v3178_v40, %v8815_v7  ;;  %11346 = vst [vmem:[#allocation78_spill] sm:$0xff] %v8891_v42  ;;  %v8896_v43 = vmul.f32 %v3178_v40, %v8843_v63 }
 0x10b   :  { %6242 = vmatmul.mubr.msk.f32.gmra.mrb[18].mxu1 %vm574_vm2, %v8617_v45  ;;  %6244 = vmatmul.mubr.msk.f32.gmra.mrb[12].mxu0 %vm574_vm2, %v8617_v45  ;;  %v8883_v32 = vmul.f32 %v5025_v50, %v8815_v7  ;;  %v8888_v45 = vmul.f32 %v3182_v56, %v8828_v28  ;;  %11350 = vst [vmem:[#allocation82_spill] sm:$0xff] %v8905_v38  ;;  %v1431_v38 = vld [vmem:[%s11145_s9 + $0x180] sm:$0xff] }
 0x10c   :  { %1033 = vmatprep.mubr.f32.mxu1 %v11311_v37  ;;  %1110 = vmatprep.mubr.f32.mxu0 %v11311_v37  ;;  %11343 = vst [vmem:[#allocation75_spill] sm:$0xff] %v8880_v41  ;;  %11347 = vst [vmem:[#allocation79_spill] sm:$0xff] %v8896_v43  ;;  %v8899_v41 = vmul.f32 %v5025_v50, %v8843_v63  ;;  %v1383_v43 = vld [vmem:[%s11145_s9] sm:$0xff] }
 0x10d   :  { %11344 = vst [vmem:[#allocation76_spill] sm:$0xff] %v8883_v32  ;;  %7104 = vmatpush1.bf16.msra.mxu1 %v8433_v51  ;;  %7120 = vmatpush1.bf16.msra.mxu0 %v8439_v53  ;;  %11345 = vst [vmem:[#allocation77_spill] sm:$0xff] %v8888_v45  ;;  %v8902_v32 = vmul.f32 %v3182_v56, %v8853_v6  ;;  %v1399_v56 = vld [vmem:[%s11145_s9 + $0x80] sm:$0xff]  ;;  %v1384_v45 = vld [vmem:[%s11145_s9 + $0x8] sm:$0xff] }
 0x10e   :  { %7106 = vmatprep.subr.bf16.mxu1 %v8450_v57  ;;  %7122 = vmatprep.subr.bf16.mxu0 %v8462_v61  ;;  %11348 = vst [vmem:[#allocation80_spill] sm:$0xff] %v8899_v41  ;;  %v1432_v41 = vld [vmem:[%s11145_s9 + $0x188] sm:$0xff]  ;;  %v7161_v42 = vpack.c.bf16 %v1400_v24, %v1399_v56  ;;  %v1433_v56 = vld [vmem:[%s11145_s9 + $0x190] sm:$0xff]  ;;  %v1434_v24 = vld [vmem:[%s11145_s9 + $0x198] sm:$0xff] }
 0x10f   :  { %11349 = vst [vmem:[#allocation81_spill] sm:$0xff] %v8902_v32  ;;  %v7193_v32 = vpack.c.bf16 %v1432_v41, %v1431_v38  ;;  %v1401_v41 = vld [vmem:[%s11145_s9 + $0x90] sm:$0xff]  ;;  %v1402_v38 = vld [vmem:[%s11145_s9 + $0x98] sm:$0xff] }
 0x111   :  { %7108 = vmatpush1.bf16.msra.mxu1 %v8464_v62  ;;  %7124 = vmatpush1.bf16.msra.mxu0 %v8473_v1 }
 0x112   :  { %7110 = vmatprep.subr.bf16.mxu1 %v8486_v8  ;;  %7126 = vmatprep.subr.bf16.mxu0 %v8498_v22 }
 0x115   :  { %7112 = vmatpush1.bf16.msra.mxu1 %v8500_v23  ;;  %7128 = vmatpush1.bf16.msra.mxu0 %v8509_v26 }
 0x116   :  { %7130 = vmatprep.subr.bf16.mxu1 %v8519_v30  ;;  %7146 = vmatprep.subr.bf16.mxu0 %v8528_v33 }
 0x168   :  { %v962_v50 = vpop.permute.xlu0 %961 }
 0x169   :  { %6245 = vmatmul.mubr.msk.f32.vlgmr.msra.gmra.mrb[20].mxu1 %vm574_vm2, %v962_v50  ;;  %6247 = vmatmul.mubr.msk.f32.vlgmr.msra.gmra.mrb[14].mxu0 %vm574_vm2, %v962_v50 }
 0x16a   :  { %7132 = vmatpush1.bf16.msra.mxu1 %v8619_v49  ;;  %7148 = vmatpush1.bf16.msra.mxu0 %v8623_v5  ;;  %v11363_v5 = vld [vmem:[#allocation32_spill] sm:$0xff] }
 0x16b   :  { %1039 = vmatprep.mubr.f32.mxu1 %v11311_v37  ;;  %1116 = vmatprep.mubr.f32.mxu0 %v11311_v37 }
 0x16c   :  { %v8921_v40 = vpop.permute.xlu0 %963  ;;  %7134 = vmatprep.subr.bf16.mxu1 %v8631_v59  ;;  %7150 = vmatprep.subr.bf16.mxu0 %v8633_v29  ;;  %v11362_v59 = vld [vmem:[#allocation54_spill] sm:$0xff] }
 0x16d   :  { %6246 = vmatmul.mubr.msk.f32.gmra.mrb[22].mxu1 %vm574_vm2, %v8921_v40  ;;  %6248 = vmatmul.mubr.msk.f32.gmra.mrb[16].mxu0 %vm574_vm2, %v8921_v40 }
 0x16e   :  { %7136 = vmatpush1.bf16.msra.mxu1 %v8670_v48  ;;  %7152 = vmatpush1.bf16.msra.mxu0 %v8672_v55  ;;  %v7197_v55 = vpack.c.bf16 %v1434_v24, %v1433_v56  ;;  %v11361_v48 = vld [vmem:[#allocation29_spill] sm:$0xff] }
 0x16f   :  { %7138 = vmatprep.subr.bf16.mxu1 %v8682_v58  ;;  %7154 = vmatprep.subr.bf16.mxu0 %v8684_v54  ;;  %v1386_v54 = vld [vmem:[%s11145_s9 + $0x18] sm:$0xff]  ;;  %v7165_v58 = vpack.c.bf16 %v1402_v38, %v1401_v41  ;;  %v1387_v41 = vld [vmem:[%s11145_s9 + $0x20] sm:$0xff]  ;;  %v1388_v38 = vld [vmem:[%s11145_s9 + $0x28] sm:$0xff] }
 0x170   :  { %1187 = vmatprep.mubr.f32.mxu1 %v11311_v37  ;;  %1264 = vmatprep.mubr.f32.mxu0 %v11311_v37 }
 0x172   :  { %7140 = vmatpush1.bf16.msra.mxu1 %v8713_v25  ;;  %7156 = vmatpush1.bf16.msra.mxu0 %v8715_v27  ;;  %v1385_v25 = vld [vmem:[%s11145_s9 + $0x10] sm:$0xff] }
 0x173   :  { %7142 = vmatprep.subr.bf16.mxu1 %v8725_v3  ;;  %7158 = vmatprep.subr.bf16.mxu0 %v8727_v60  ;;  %v1416_v3 = vld [vmem:[%s11145_s9 + $0x108] sm:$0xff]  ;;  %v7163_v60 = vpack.c.bf16 %v1384_v45, %v1383_v43  ;;  %v1435_v45 = vld [vmem:[%s11145_s9 + $0x1a0] sm:$0xff]  ;;  %v7167_v43 = vpack.c.bf16 %v1386_v54, %v1385_v25  ;;  %v1438_v25 = vld [vmem:[%s11145_s9 + $0x1b8] sm:$0xff] }
 0x174   :  { %v7195_v27 = vpack.c.bf16 %v1416_v3, %v1415_v31  ;;  %v1403_v3 = vld [vmem:[%s11145_s9 + $0xa0] sm:$0xff]  ;;  %v1404_v31 = vld [vmem:[%s11145_s9 + $0xa8] sm:$0xff] }
 0x175   :  { %v7169_v56 = vpack.c.bf16 %v1404_v31, %v1403_v3  ;;  %v1420_v54 = vld [vmem:[%s11145_s9 + $0x128] sm:$0xff] }
 0x176   :  { %7144 = vmatpush1.bf16.msra.mxu1 %v8747_v12  ;;  %7160 = vmatpush1.bf16.msra.mxu0 %v8757_v44  ;;  %v1417_v12 = vld [vmem:[%s11145_s9 + $0x110] sm:$0xff]  ;;  %v1419_v44 = vld [vmem:[%s11145_s9 + $0x120] sm:$0xff] }
 0x177   :  { %7162 = vmatprep.subr.bf16.mxu1 %v7161_v42  ;;  %7194 = vmatprep.subr.bf16.mxu0 %v7193_v32  ;;  %v1418_v32 = vld [vmem:[%s11145_s9 + $0x118] sm:$0xff]  ;;  %v1436_v42 = vld [vmem:[%s11145_s9 + $0x1a8] sm:$0xff] }
 0x178   :  { %v7201_v24 = vpack.c.bf16 %v1436_v42, %v1435_v45  ;;  %v1421_v45 = vld [vmem:[%s11145_s9 + $0x130] sm:$0xff]  ;;  %v1407_v42 = vld [vmem:[%s11145_s9 + $0xc0] sm:$0xff] }
 0x179   :  { %6249 = vmatmul.mubr.msk.f32.vlgmr.msra.gmra.mrb[24].mxu1 %vm574_vm2, %v962_v50  ;;  %6251 = vmatmul.mubr.msk.f32.vlgmr.msra.gmra.mrb[18].mxu0 %vm574_vm2, %v962_v50  ;;  %v7199_v50 = vpack.c.bf16 %v1418_v32, %v1417_v12  ;;  %v7203_v12 = vpack.c.bf16 %v1420_v54, %v1419_v44  ;;  %v1390_v32 = vld [vmem:[%s11145_s9 + $0x38] sm:$0xff]  ;;  %v1392_v54 = vld [vmem:[%s11145_s9 + $0x48] sm:$0xff] }
 0x17a   :  { %1193 = vmatprep.mubr.f32.mxu1 %v11311_v37  ;;  %1270 = vmatprep.mubr.f32.mxu0 %v11311_v37  ;;  %v1422_v44 = vld [vmem:[%s11145_s9 + $0x138] sm:$0xff] }
 0x17b   :  { %7164 = vmatpush3.bf16.msra.mxu1 %v7163_v60  ;;  %7196 = vmatpush3.bf16.msra.mxu0 %v7195_v27  ;;  %v1405_v60 = vld [vmem:[%s11145_s9 + $0xb0] sm:$0xff]  ;;  %v7171_v27 = vpack.c.bf16 %v1388_v38, %v1387_v41  ;;  %v1440_v41 = vld [vmem:[%s11145_s9 + $0x1c8] sm:$0xff] }
 0x17c   :  { %7166 = vmatprep.subr.bf16.mxu1 %v7165_v58  ;;  %7198 = vmatprep.subr.bf16.mxu0 %v7197_v55  ;;  %v1406_v55 = vld [vmem:[%s11145_s9 + $0xb8] sm:$0xff]  ;;  %v1437_v58 = vld [vmem:[%s11145_s9 + $0x1b0] sm:$0xff] }
 0x17d   :  { %6250 = vmatmul.mubr.msk.f32.gmra.mrb[26].mxu1 %vm574_vm2, %v8921_v40  ;;  %6252 = vmatmul.mubr.msk.f32.gmra.mrb[20].mxu0 %vm574_vm2, %v8921_v40  ;;  %v1389_v40 = vld [vmem:[%s11145_s9 + $0x30] sm:$0xff]  ;;  %v7173_v3 = vpack.c.bf16 %v1406_v55, %v1405_v60  ;;  %v7205_v31 = vpack.c.bf16 %v1438_v25, %v1437_v58  ;;  %v1423_v58 = vld [vmem:[%s11145_s9 + $0x140] sm:$0xff]  ;;  %v1424_v25 = vld [vmem:[%s11145_s9 + $0x148] sm:$0xff] }
 0x17e   :  { %v7175_v38 = vpack.c.bf16 %v1390_v32, %v1389_v40  ;;  %v1441_v40 = vld [vmem:[%s11145_s9 + $0x1d0] sm:$0xff]  ;;  %v1442_v32 = vld [vmem:[%s11145_s9 + $0x1d8] sm:$0xff] }
 0x17f   :  { %7168 = vmatpush3.bf16.msra.mxu1 %v7167_v43  ;;  %7200 = vmatpush3.bf16.msra.mxu0 %v7199_v50  ;;  %v1408_v43 = vld [vmem:[%s11145_s9 + $0xc8] sm:$0xff]  ;;  %v1439_v50 = vld [vmem:[%s11145_s9 + $0x1c0] sm:$0xff] }
 0x180   :  { %7170 = vmatprep.subr.bf16.mxu1 %v7169_v56  ;;  %7202 = vmatprep.subr.bf16.mxu0 %v7201_v24  ;;  %v7207_v56 = vpack.c.bf16 %v1422_v44, %v1421_v45  ;;  %v1391_v24 = vld [vmem:[%s11145_s9 + $0x40] sm:$0xff]  ;;  %v7177_v60 = vpack.c.bf16 %v1408_v43, %v1407_v42  ;;  %v7209_v55 = vpack.c.bf16 %v1440_v41, %v1439_v50  ;;  %v1393_v45 = vld [vmem:[%s11145_s9 + $0x50] sm:$0xff]  ;;  %v1394_v43 = vld [vmem:[%s11145_s9 + $0x58] sm:$0xff] }
 0x181   :  { %v7213_v42 = vpack.c.bf16 %v1442_v32, %v1441_v40  ;;  %v1425_v50 = vld [vmem:[%s11145_s9 + $0x150] sm:$0xff]  ;;  %v1426_v41 = vld [vmem:[%s11145_s9 + $0x158] sm:$0xff]  ;;  %v1427_v32 = vld [vmem:[%s11145_s9 + $0x160] sm:$0xff] }
 0x183   :  { %7172 = vmatpush3.bf16.msra.mxu1 %v7171_v27  ;;  %7204 = vmatpush3.bf16.msra.mxu0 %v7203_v12  ;;  %v1409_v27 = vld [vmem:[%s11145_s9 + $0xd0] sm:$0xff]  ;;  %v1410_v12 = vld [vmem:[%s11145_s9 + $0xd8] sm:$0xff] }
 0x184   :  { %7174 = vmatprep.subr.bf16.mxu1 %v7173_v3  ;;  %7206 = vmatprep.subr.bf16.mxu0 %v7205_v31  ;;  %v7179_v3 = vpack.c.bf16 %v1392_v54, %v1391_v24  ;;  %v7211_v31 = vpack.c.bf16 %v1424_v25, %v1423_v58  ;;  %v7181_v44 = vpack.c.bf16 %v1410_v12, %v1409_v27  ;;  %v1411_v24 = vld [vmem:[%s11145_s9 + $0xe0] sm:$0xff]  ;;  %v1412_v54 = vld [vmem:[%s11145_s9 + $0xe8] sm:$0xff] }
 0x185   :  { %v1444_v58 = vld [vmem:[%s11145_s9 + $0x1e8] sm:$0xff]  ;;  %v1395_v25 = vld [vmem:[%s11145_s9 + $0x60] sm:$0xff] }
 0x186   :  { %v1396_v27 = vld [vmem:[%s11145_s9 + $0x68] sm:$0xff] }
 0x187   :  { %7176 = vmatpush3.bf16.msra.mxu1 %v7175_v38  ;;  %7208 = vmatpush3.bf16.msra.mxu0 %v7207_v56  ;;  %v7183_v38 = vpack.c.bf16 %v1394_v43, %v1393_v45  ;;  %v7215_v56 = vpack.c.bf16 %v1426_v41, %v1425_v50  ;;  %v7187_v40 = vpack.c.bf16 %v1396_v27, %v1395_v25  ;;  %v1413_v45 = vld [vmem:[%s11145_s9 + $0xf0] sm:$0xff]  ;;  %v1446_v50 = vld [vmem:[%s11145_s9 + $0x1f8] sm:$0xff]  ;;  %v1464_v25 = vld [vmem:[%s11145_s9 + $0x288] sm:$0xff] }
 0x188   :  { %7178 = vmatprep.subr.bf16.mxu1 %v7177_v60  ;;  %7210 = vmatprep.subr.bf16.mxu0 %v7209_v55  ;;  %v1443_v60 = vld [vmem:[%s11145_s9 + $0x1e0] sm:$0xff]  ;;  %v7185_v55 = vpack.c.bf16 %v1412_v54, %v1411_v24  ;;  %v1397_v41 = vld [vmem:[%s11145_s9 + $0x70] sm:$0xff] }
 0x189   :  { %v7217_v12 = vpack.c.bf16 %v1444_v58, %v1443_v60  ;;  %v1429_v54 = vld [vmem:[%s11145_s9 + $0x170] sm:$0xff]  ;;  %v1430_v60 = vld [vmem:[%s11145_s9 + $0x178] sm:$0xff]  ;;  %v1463_v58 = vld [vmem:[%s11145_s9 + $0x280] sm:$0xff] }
 0x18a   :  { %v1495_v27 = vld [vmem:[%s11145_s9 + $0x380] sm:$0xff] }
 0x18b   :  { %7180 = vmatpush3.bf16.msra.mxu1 %v7179_v3  ;;  %7212 = vmatpush3.bf16.msra.mxu0 %v7211_v31  ;;  %v1428_v3 = vld [vmem:[%s11145_s9 + $0x168] sm:$0xff] }
 0x18c   :  { %7182 = vmatprep.subr.bf16.mxu1 %v7181_v44  ;;  %7214 = vmatprep.subr.bf16.mxu0 %v7213_v42  ;;  %v7219_v31 = vpack.c.bf16 %v1428_v3, %v1427_v32  ;;  %v1414_v44 = vld [vmem:[%s11145_s9 + $0xf8] sm:$0xff]  ;;  %v1445_v42 = vld [vmem:[%s11145_s9 + $0x1f0] sm:$0xff] }
 0x18d   :  { %v7189_v43 = vpack.c.bf16 %v1414_v44, %v1413_v45 }
 0x18f   :  { %7184 = vmatpush3.bf16.msra.mxu1 %v7183_v38  ;;  %7216 = vmatpush3.bf16.msra.mxu0 %v7215_v56  ;;  %v1398_v38 = vld [vmem:[%s11145_s9 + $0x78] sm:$0xff]  ;;  %v7221_v56 = vpack.c.bf16 %v1446_v50, %v1445_v42 }
 0x190   :  { %7186 = vmatprep.subr.bf16.mxu1 %v7185_v55  ;;  %7218 = vmatprep.subr.bf16.mxu0 %v7217_v12  ;;  %v7191_v24 = vpack.c.bf16 %v1398_v38, %v1397_v41  ;;  %v7223_v55 = vpack.c.bf16 %v1430_v60, %v1429_v54  ;;  %v7225_v12 = vpack.c.bf16 %v1464_v25, %v1463_v58 }
 0x193   :  { %7188 = vmatpush3.bf16.msra.mxu1 %v7187_v40  ;;  %7220 = vmatpush3.bf16.msra.mxu0 %v7219_v31  ;;  %v1496_v40 = vld [vmem:[%s11145_s9 + $0x388] sm:$0xff] }
 0x194   :  { %7190 = vmatprep.subr.bf16.mxu1 %v7189_v43  ;;  %7222 = vmatprep.subr.bf16.mxu0 %v7221_v56  ;;  %v7257_v32 = vpack.c.bf16 %v1496_v40, %v1495_v27 }
 0x197   :  { %7192 = vmatpush3.bf16.msra.mxu1 %v7191_v24  ;;  %7224 = vmatpush3.bf16.msra.mxu0 %v7223_v55 }
 0x198   :  { %7226 = vmatprep.subr.bf16.mxu1 %v7225_v12  ;;  %7258 = vmatprep.subr.bf16.mxu0 %v7257_v32 }
 0x1c9   :  { %v647_v3 = vpop.f32.mrb[12].mxu1 }
 0x1ca   :  { %v724_v31 = vpop.f32.mrb[6].mxu0  ;;  %v649_v45 = vpop.f32.mrb[13].mxu1  ;;  %v889_v50 = vmul.f32 %v647_v3, %v8280_v11 }
 0x1cb   :  { %v726_v44 = vpop.f32.mrb[7].mxu0  ;;  %v891_v41 = vmul.f32 %v724_v31, %v8306_v18  ;;  %v890_v60 = vmul.f32 %v649_v45, %v8270_v9  ;;  %v11352_v45 = vld [vmem:[#allocation5_spill] sm:$0xff] }
 0x1cc   :  { %v892_v55 = vmul.f32 %v726_v44, %v8292_v14  ;;  %v11353_v44 = vld [vmem:[#allocation10_spill] sm:$0xff] }
 0x1ce   :  { %v653_v42 = vpop.f32.mrb[14].mxu1  ;;  %v730_v43 = vpop.f32.mrb[8].mxu0 }
 0x1cf   :  { %v897_v38 = vmul.f32 %v653_v42, %v8287_v13  ;;  %v899_v56 = vmul.f32 %v730_v43, %v8311_v19  ;;  %v655_v24 = vpop.f32.mrb[15].mxu1  ;;  %v732_v54 = vpop.f32.mrb[9].mxu0  ;;  %v11351_v43 = vld [vmem:[#allocation9_spill] sm:$0xff] }
 0x1d0   :  { %v898_v58 = vmul.f32 %v655_v24, %v8275_v10  ;;  %v900_v25 = vmul.f32 %v732_v54, %v8297_v15  ;;  %v8051_v54 = vld [vmem:[%s11266_s24 + $0x68] sm:$0xff] }
 0x1d1   :  { %v905_v27 = vadd.f32 %v897_v38, %v889_v50  ;;  %v919_v12 = vadd.f32 %v899_v56, %v891_v41  ;;  %v8050_v50 = vld [vmem:[%s11266_s24 + $0x28] sm:$0xff] }
 0x1d2   :  { %v912_v40 = vadd.f32 %v898_v58, %v890_v60  ;;  %v926_v11 = vadd.f32 %v900_v25, %v892_v55  ;;  %v11354_v38 = vld [vmem:[#allocation6_spill] sm:$0xff]  ;;  %v11355_v60 = vld [vmem:[#allocation7_spill] sm:$0xff] }
 0x1da   :  { %v801_v32 = vpop.f32.mrb[16].mxu1  ;;  %v878_v18 = vpop.f32.mrb[10].mxu0 }
 0x1db   :  { %v803_v3 = vpop.f32.mrb[17].mxu1  ;;  %v880_v13 = vpop.f32.mrb[11].mxu0  ;;  %v893_v42 = vmul.f32 %v801_v32, %v8248_v2  ;;  %v895_v9 = vmul.f32 %v878_v18, %v11351_v43 }
 0x1dc   :  { %v894_v41 = vmul.f32 %v8050_v50, %v803_v3  ;;  %v896_v56 = vmul.f32 %v880_v13, %v11354_v38 }
 0x1de   :  { %v807_v31 = vpop.f32.mrb[18].mxu1  ;;  %v884_v19 = vpop.f32.mrb[12].mxu0 }
 0x1df   :  { %v901_v14 = vmul.f32 %v807_v31, %v11352_v45  ;;  %v903_v10 = vmul.f32 %v884_v19, %v11353_v44  ;;  %v809_v24 = vpop.f32.mrb[19].mxu1  ;;  %v886_v15 = vpop.f32.mrb[13].mxu0  ;;  %v6322_v31 = vld [vmem:[%s11356_s29] sm:$0xf]  }
 0x1e0   :  { %v902_v2 = vmul.f32 %v8051_v54, %v809_v24  ;;  %v904_v55 = vmul.f32 %v886_v15, %v11355_v60  ;;  %v6323_v3 = vunpack.c.0.s8 %v6322_v31  ;;  %v6324_v19 = vunpack.c.1.s8 %v6322_v31  ;;  %v9199_v54 = vld [vmem:[%s11144_s8] sm:$0xff] }
 0x1e1   :  { %v933_v58 = vadd.f32 %v901_v14, %v893_v42  ;;  %v947_v25 = vadd.f32 %v903_v10, %v895_v9  ;;  %v906_v9 = vrot.slane %v905_v27, 4  ;;  %v920_v14 = vrot.slane %v919_v12, 4 }
 0x1e2   :  { %v9173_v32 = vadd.f32 %v902_v2, %v894_v41  ;;  %v9175_v18 = vadd.f32 %v904_v55, %v896_v56  ;;  %v79_v13 = vcvt.s32.f32 %v6323_v3  ;;  %v80_v43 = vcvt.s32.f32 %v6324_v19  ;;  %v11357_v3 = vld [vmem:[#allocation24_spill] sm:$0xff] }
 0x1e3   :  { %v913_v10 = vrot.slane %v912_v40, 4  ;;  %v927_v24 = vrot.slane %v926_v11, 4  ;;  %v907_v15 = vadd.f32 %v906_v9, %v905_v27  ;;  %v921_v41 = vadd.f32 %v920_v14, %v919_v12 }
 0x1e4   :  { %v6224_v45 = vadd.f32 -1.0, %v79_v13  ;;  %v6225_v44 = vadd.f32 -1.0, %v80_v43  ;;  %v1298_v19 = vrot.slane %v9199_v54, %v11357_v3  ;;  %v11358_v13 = vld [vmem:[#allocation25_spill] sm:$0xff]  ;;  %v1286_v3 = vrot.slane %v9199_v54, %v11362_v59 }
 0x1e5   :  { %v914_v38 = vadd.f32 %v913_v10, %v912_v40  ;;  %v928_v56 = vadd.f32 %v927_v24, %v926_v11  ;;  %v908_v2 = vrot.slane %v907_v15, 2  ;;  %v922_v60 = vrot.slane %v921_v41, 2  ;;  %v11360_v10 = vld [vmem:[#allocation26_spill] sm:$0xff] }
 0x1e6   :  { %v9180_v50 = vmul.f32 1e+30, %v6224_v45  ;;  %v9186_v42 = vmul.f32 1e+30, %v6225_v44  ;;  %v1302_v43 = vrot.slane %v9199_v54, %v11358_v13  ;;  %v11359_v45 = vld [vmem:[#allocation53_spill] sm:$0xff]  ;;  %v934_v11 = vrot.slane %v933_v58, 4 }
 0x1e7   :  { %v915_v55 = vrot.slane %v914_v38, 2  ;;  %v929_v31 = vrot.slane %v928_v56, 2  ;;  %v1282_v27 = vrot.slane %v9199_v54, %v11359_v45  ;;  %v909_v12 = vadd.f32 %v908_v2, %v907_v15  ;;  %v11364_v15 = vld [vmem:[#allocation35_spill] sm:$0xff] }
 0x1e8   :  { %1918 = vrot.lane.b32.xlu1 %v9180_v50, %s8110_s3  ;;  %2048 = vrot.lane.b32.xlu0 %v9180_v50, %s8111_s0  ;;  %v923_v40 = vadd.f32 %v922_v60, %v921_v41  ;;  %v948_v44 = vrot.slane %v947_v25, 4  ;;  %v9208_v24 = vmul.f32 %v1298_v19, %v11360_v10  ;;  %v9211_v29 = vmul.f32 %v1302_v43, %v11361_v48 }
 0x1e9   :  { %v916_v9 = vadd.f32 %v915_v55, %v914_v38  ;;  %v930_v14 = vadd.f32 %v929_v31, %v928_v56  ;;  %v1290_v13 = vrot.slane %v9199_v54, %v8766_v21  ;;  %v9218_v45 = vmul.f32 %v1298_v19, %v11363_v5  ;;  %v11365_v38 = vld [vmem:[#allocation52_spill] sm:$0xff] }
 0x1ea   :  { %v9221_v41 = vmul.f32 %v1302_v43, %v11364_v15  ;;  %v1319_v56 = vmul.f32 %v1282_v27, %v11365_v38  ;;  %v1294_v2 = vrot.slane %v9199_v54, %v8779_v20  ;;  %v941_v48 = vrot.slane %v9173_v32, 4  ;;  %v11366_v43 = vld [vmem:[#allocation57_spill] sm:$0xff]  ;;  %v11367_v38 = vld [vmem:[#allocation60_spill] sm:$0xff] }
 0x1eb   :  { %v955_v60 = vrot.slane %v9175_v18, 4  ;;  %v910_v55 = vrot.slane %v909_v12, 1  ;;  %v924_v59 = vrot.slane %v923_v40, 1  ;;  %v935_v31 = vadd.f32 %v934_v11, %v933_v58  ;;  %v9235_v20 = vld [vmem:[%s11145_s9 + $0x200] sm:$0xff]  ;;  %v9240_v58 = vld [vmem:[%s11145_s9 + $0x208] sm:$0xff] }
 0x1ec   :  { %1920 = vrot.lane.b32.xlu1 %v9186_v42, %s8110_s3  ;;  %2178 = vrot.lane.b32.xlu0 %v9180_v50, %s8112_s4  ;;  %v949_v10 = vadd.f32 %v948_v44, %v947_v25  ;;  %v917_v21 = vrot.slane %v916_v9, 1  ;;  %v931_v49 = vrot.slane %v930_v14, 1  ;;  %v1320_v5 = vmul.f32 %v1286_v3, %v8745_v16  ;;  %v9252_v11 = vld [vmem:[%s11145_s9 + $0x300] sm:$0xff]  ;;  %v9257_v44 = vld [vmem:[%s11145_s9 + $0x308] sm:$0xff] }
 0x1ed   :  { %v1327_v19 = vmul.f32 %v1282_v27, %v8753_v52  ;;  %v1328_v15 = vmul.f32 %v1286_v3, %v11366_v43  ;;  %v1321_v33 = vmul.f32 %v1290_v13, %v11367_v38  ;;  %v1322_v25 = vmul.f32 %v1294_v2, %v8787_v4  ;;  %v9262_v4 = vld [vmem:[%s11145_s9 + $0x290] sm:$0xff]  ;;  %v9279_v43 = vld [vmem:[%s11145_s9 + $0x398] sm:$0xff] }
 0x1ee   :  { %v1329_v16 = vmul.f32 %v1290_v13, %v8798_v0  ;;  %v1330_v52 = vmul.f32 %v1294_v2, %v8807_v17  ;;  %v9247_v27 = vrot.slane %v9199_v54, %v8826_v34  ;;  %v942_v0 = vadd.f32 %v941_v48, %v9173_v32  ;;  %v9269_v13 = vld [vmem:[%s11145_s9 + $0x298] sm:$0xff]  ;;  %v9274_v2 = vld [vmem:[%s11145_s9 + $0x390] sm:$0xff] }
 0x1ef   :  { %v956_v34 = vadd.f32 %v955_v60, %v9175_v18  ;;  %v911_v17 = vadd.f32 %v910_v55, %v909_v12  ;;  %v925_v3 = vadd.f32 %v924_v59, %v923_v40  ;;  %v918_v18 = vadd.f32 %v917_v21, %v916_v9 }
 0x1f0   :  { %2050 = vrot.lane.b32.xlu1 %v9186_v42, %s8111_s0  ;;  %v932_v12 = vadd.f32 %v931_v49, %v930_v14  ;;  %v936_v40 = vrot.slane %v935_v31, 2  ;;  %v950_v60 = vrot.slane %v949_v10, 2  ;;  %v7227_v22 = vpack.c.bf16 %v9240_v58, %v9235_v20 }
 0x1f1   :  { %v7259_v1 = vpack.c.bf16 %v9257_v44, %v9252_v11  ;;  %v943_v21 = vrot.slane %v942_v0, 2 }
 0x1f2   :  { %v9289_v20 = vadd.f32 %v936_v40, %v935_v31  ;;  %v9291_v58 = vadd.f32 %v950_v60, %v949_v10 }
 0x1f4   :  { %2180 = vrot.lane.b32.xlu1 %v9186_v42, %s8112_s4  ;;  %v938_v40 = vrot.slane %v9289_v20, 1 }
 0x23c   :  { %v1035_v32 = vpop.f32.mrb[20].mxu1  ;;  %v1112_v48 = vpop.f32.mrb[14].mxu0 }
 0x23d   :  { %v1036_v55 = vadd.f32 %v1035_v32, %v911_v17  ;;  %v1113_v59 = vadd.f32 %v1112_v48, %v925_v3  ;;  %v1037_v38 = vpop.f32.mrb[21].mxu1  ;;  %v1114_v26 = vpop.f32.mrb[15].mxu0  ;;  %v957_v32 = vrot.slane %v956_v34, 2 }
 0x23e   :  { %v1038_v61 = vadd.f32 %v1037_v38, %v918_v18  ;;  %v1115_v53 = vadd.f32 %v1114_v26, %v932_v12 }
 0x23f   :  { %v1335_v9 = vadd.f32 %v1319_v56, %v1036_v55  ;;  %v1337_v14 = vadd.f32 %v1321_v33, %v1113_v59  ;;  %v958_v31 = vadd.f32 %v957_v32, %v956_v34 }
 0x240   :  { %v1336_v48 = vadd.f32 %v1320_v5, %v1038_v61  ;;  %v1338_v36 = vadd.f32 %v1322_v25, %v1115_v53  ;;  %v1041_v30 = vpop.f32.mrb[22].mxu1  ;;  %v1118_v23 = vpop.f32.mrb[16].mxu0  ;;  %v1449_v53 = vld [vmem:[%s11145_s9 + $0x210] sm:$0xff]  ;;  %v1450_v61 = vld [vmem:[%s11145_s9 + $0x218] sm:$0xff]  ;;  %v9308_v25 = vld [vmem:[%s11145_s9 + $0x2a0] sm:$0xff] }
 0x241   :  { %v1351_v11 = vmul.f32 0.2, %v1335_v9  ;;  %v1353_v26 = vmul.f32 0.2, %v1337_v14  ;;  %v1042_v44 = vadd.f32 %v1041_v30, %v911_v17  ;;  %v1119_v38 = vadd.f32 %v1118_v23, %v925_v3  ;;  %v1043_v39 = vpop.f32.mrb[23].mxu1  ;;  %v1120_v8 = vpop.f32.mrb[17].mxu0 }
 0x242   :  { %v1352_v62 = vmul.f32 0.2, %v1336_v48  ;;  %v1354_v49 = vmul.f32 0.2, %v1338_v36  ;;  %v1044_v56 = vadd.f32 %v1043_v39, %v918_v18  ;;  %v1121_v33 = vadd.f32 %v1120_v8, %v932_v12  ;;  %v1481_v23 = vld [vmem:[%s11145_s9 + $0x310] sm:$0xff]  ;;  %v1499_v18 = vld [vmem:[%s11145_s9 + $0x3a0] sm:$0xff] }
 0x243   :  { %v1343_v55 = vadd.f32 %v1327_v19, %v1042_v44  ;;  %v1345_v59 = vadd.f32 %v1329_v16, %v1119_v38  ;;  %v944_v30 = vadd.f32 %v943_v21, %v942_v0  ;;  %v1482_v19 = vld [vmem:[%s11145_s9 + $0x318] sm:$0xff]  ;;  %v9313_v16 = vld [vmem:[%s11145_s9 + $0x2a8] sm:$0xff]  ;;  %v1367_v0 = vmax.f32 %v1335_v9, %v1351_v11  ;;  %v1483_v11 = vld [vmem:[%s11145_s9 + $0x320] sm:$0xff] }
 0x244   :  { %v1344_v10 = vadd.f32 %v1328_v15, %v1044_v56  ;;  %v1346_v5 = vadd.f32 %v1330_v52, %v1121_v33  ;;  %v1368_v39 = vmax.f32 %v1336_v48, %v1352_v62  ;;  %v1370_v8 = vmax.f32 %v1338_v36, %v1354_v49  ;;  %v1500_v12 = vld [vmem:[%s11145_s9 + $0x3a8] sm:$0xff]  ;;  %v9332_v49 = vld [vmem:[%s11145_s9 + $0x220] sm:$0xff]  ;;  %v1469_v33 = vld [vmem:[%s11145_s9 + $0x2b0] sm:$0xff] }
 0x245   :  { %v1369_v34 = vmax.f32 %v1337_v14, %v1353_v26  ;;  %v1359_v15 = vmul.f32 0.2, %v1343_v55  ;;  %v1361_v52 = vmul.f32 0.2, %v1345_v59  ;;  %v9317_v36 = vrot.slane %v9199_v54, %v8841_v35  ;;  %v9337_v9 = vld [vmem:[%s11145_s9 + $0x228] sm:$0xff] }
 0x246   :  { %v1360_v62 = vmul.f32 0.2, %v1344_v10  ;;  %v1362_v17 = vmul.f32 0.2, %v1346_v5  ;;  %1575 = vmatprep.mubr.f32.mxu1 %v1368_v39  ;;  %1650 = vmatprep.mubr.f32.mxu0 %v1370_v8  ;;  %v7231_v3 = vpack.c.bf16 %v1450_v61, %v1449_v53  ;;  %v952_v35 = vrot.slane %v9291_v58, 1  ;;  %v1484_v26 = vld [vmem:[%s11145_s9 + $0x328] sm:$0xff] }
 0x247   :  { %1576 = vmatmul.mubr.f32.vlgmr.msra.gmra.mrb[28].mxu1 %v1367_v0  ;;  %1651 = vmatmul.mubr.f32.vlgmr.msra.gmra.mrb[22].mxu0 %v1369_v34  ;;  %v7263_v54 = vpack.c.bf16 %v1482_v19, %v1481_v23  ;;  %v7233_v60 = vpack.c.bf16 %v9313_v16, %v9308_v25  ;;  %v945_v32 = vrot.slane %v944_v30, 1  ;;  %v959_v48 = vrot.slane %v958_v31, 1  ;;  %v1470_v53 = vld [vmem:[%s11145_s9 + $0x2b8] sm:$0xff] }
 0x248   :  { %7228 = vmatpush3.bf16.msra.mxu1 %v7227_v22  ;;  %7260 = vmatpush3.bf16.msra.mxu0 %v7259_v1  ;;  %v1376_v14 = vmax.f32 %v1344_v10, %v1360_v62  ;;  %v1378_v21 = vmax.f32 %v1346_v5, %v1362_v17  ;;  %v11368_v44 = vpack.c.bf16 %v9269_v13, %v9262_v4  ;;  %v1486_v19 = vld [vmem:[%s11145_s9 + $0x338] sm:$0xff] }
 0x249   :  { %v11369_v22 = vpack.c.bf16 %v9279_v43, %v9274_v2  ;;  %v1375_v1 = vmax.f32 %v1343_v55, %v1359_v15  ;;  %v1377_v38 = vmax.f32 %v1345_v59, %v1361_v52  ;;  %v7265_v56 = vpack.c.bf16 %v1500_v12, %v1499_v18  ;;  %v1501_v2 = vld [vmem:[%s11145_s9 + $0x3b0] sm:$0xff]  ;;  %v1502_v43 = vld [vmem:[%s11145_s9 + $0x3b8] sm:$0xff]  ;;  %v1472_v15 = vld [vmem:[%s11145_s9 + $0x2c8] sm:$0xff] }
 0x24a   :  { %7230 = vmatprep.subr.bf16.mxu1 %v11368_v44  ;;  %v1325_v61 = vmul.f32 %v9247_v27, %v8815_v7  ;;  %v1326_v4 = vmul.f32 %v9317_v36, %v8828_v28  ;;  %1580 = vmatprep.mubr.f32.mxu1 %v1376_v14  ;;  %v7235_v13 = vpack.c.bf16 %v9337_v9, %v9332_v49  ;;  %v1453_v59 = vld [vmem:[%s11145_s9 + $0x230] sm:$0xff]  ;;  %v1503_v18 = vld [vmem:[%s11145_s9 + $0x3c0] sm:$0xff]  ;;  %v1504_v12 = vld [vmem:[%s11145_s9 + $0x3c8] sm:$0xff] }
 0x24b   :  { %7262 = vmatprep.subr.bf16.mxu0 %v11369_v22  ;;  %1655 = vmatprep.mubr.f32.mxu0 %v1378_v21  ;;  %v939_v55 = vadd.f32 %v938_v40, %v9289_v20  ;;  %v953_v7 = vadd.f32 %v952_v35, %v9291_v58  ;;  %v7267_v28 = vpack.c.bf16 %v1484_v26, %v1483_v11  ;;  %v1454_v20 = vld [vmem:[%s11145_s9 + $0x238] sm:$0xff]  ;;  %v1485_v58 = vld [vmem:[%s11145_s9 + $0x330] sm:$0xff]  ;;  %v1487_v14 = vld [vmem:[%s11145_s9 + $0x340] sm:$0xff] }
 0x24c   :  { %1581 = vmatmul.mubr.f32.gmra.mrb[30].mxu1 %v1375_v1  ;;  %1656 = vmatmul.mubr.f32.gmra.mrb[24].mxu0 %v1377_v38  ;;  %v1189_v23 = vpop.f32.mrb[24].mxu1  ;;  %v1266_v10 = vpop.f32.mrb[18].mxu0  ;;  %v946_v5 = vadd.f32 %v945_v32, %v944_v30  ;;  %v960_v39 = vadd.f32 %v959_v48, %v958_v31  ;;  %v7237_v8 = vpack.c.bf16 %v1470_v53, %v1469_v33  ;;  %v1471_v31 = vld [vmem:[%s11145_s9 + $0x2c0] sm:$0xff]  ;;  %v1488_v21 = vld [vmem:[%s11145_s9 + $0x348] sm:$0xff]  ;;  %v1473_v44 = vld [vmem:[%s11145_s9 + $0x2d0] sm:$0xff] }
 0x24d   :  { %7232 = vmatpush3.bf16.msra.mxu1 %v7231_v3  ;;  %7264 = vmatpush3.bf16.msra.mxu0 %v7263_v54  ;;  %v1190_v25 = vadd.f32 %v1189_v23, %v939_v55  ;;  %v1267_v16 = vadd.f32 %v1266_v10, %v953_v7  ;;  %v1191_v0 = vpop.f32.mrb[25].mxu1  ;;  %v1268_v34 = vpop.f32.mrb[19].mxu0  ;;  %v7269_v30 = vpack.c.bf16 %v1502_v43, %v1501_v2  ;;  %v1474_v22 = vld [vmem:[%s11145_s9 + $0x2d8] sm:$0xff]  ;;  %v1505_v53 = vld [vmem:[%s11145_s9 + $0x3d0] sm:$0xff] }
 0x24e   :  { %7234 = vmatprep.subr.bf16.mxu1 %v7233_v60  ;;  %7266 = vmatprep.subr.bf16.mxu0 %v7265_v56  ;;  %v1333_v52 = vmul.f32 %v9247_v27, %v8843_v63  ;;  %v1334_v62 = vmul.f32 %v9317_v36, %v8853_v6  ;;  %v1192_v17 = vadd.f32 %v1191_v0, %v946_v5  ;;  %v1455_v6 = vld [vmem:[%s11145_s9 + $0x240] sm:$0xff] }
 0x24f   :  { %v1269_v3 = vadd.f32 %v1268_v34, %v960_v39  ;;  %v9400_v40 = vadd.f32 %v9208_v24, %v1190_v25  ;;  %v9402_v35 = vadd.f32 %v1325_v61, %v1267_v16  ;;  %v7239_v54 = vpack.c.bf16 %v1454_v20, %v1453_v59  ;;  %v1456_v24 = vld [vmem:[%s11145_s9 + $0x248] sm:$0xff]  ;;  %v1506_v61 = vld [vmem:[%s11145_s9 + $0x3d8] sm:$0xff]  ;;  %v1457_v59 = vld [vmem:[%s11145_s9 + $0x250] sm:$0xff] }
 0x250   :  { %v7271_v63 = vpack.c.bf16 %v1486_v19, %v1485_v58  ;;  %v1340_v27 = vadd.f32 %v9211_v29, %v1192_v17  ;;  %v1195_v60 = vpop.f32.mrb[26].mxu1  ;;  %v1272_v49 = vpop.f32.mrb[20].mxu0  ;;  %v7241_v9 = vpack.c.bf16 %v1472_v15, %v1471_v31  ;;  %v7273_v26 = vpack.c.bf16 %v1504_v12, %v1503_v18  ;;  %v1476_v20 = vld [vmem:[%s11145_s9 + $0x2e8] sm:$0xff]  ;;  %v1507_v58 = vld [vmem:[%s11145_s9 + $0x3e0] sm:$0xff]  ;;  %v1478_v17 = vld [vmem:[%s11145_s9 + $0x2f8] sm:$0xff] }
 0x251   :  { %v1342_v36 = vadd.f32 %v1326_v4, %v1269_v3  ;;  %7236 = vmatpush3.bf16.msra.mxu1 %v7235_v13  ;;  %7268 = vmatpush3.bf16.msra.mxu0 %v7267_v28  ;;  %v1196_v32 = vadd.f32 %v1195_v60, %v939_v55  ;;  %v1273_v29 = vadd.f32 %v1272_v49, %v953_v7  ;;  %v1197_v48 = vpop.f32.mrb[27].mxu1  ;;  %v1274_v11 = vpop.f32.mrb[21].mxu0  ;;  %v1508_v19 = vld [vmem:[%s11145_s9 + $0x3e8] sm:$0xff]  ;;  %v1459_v0 = vld [vmem:[%s11145_s9 + $0x260] sm:$0xff]  ;;  %v1509_v3 = vld [vmem:[%s11145_s9 + $0x3f0] sm:$0xff] }
 0x252   :  { %7238 = vmatprep.subr.bf16.mxu1 %v7237_v8  ;;  %7270 = vmatprep.subr.bf16.mxu0 %v7269_v30  ;;  %v1356_v1 = vmul.f32 0.2, %v1340_v27  ;;  %v1198_v56 = vadd.f32 %v1197_v48, %v946_v5  ;;  %v1275_v33 = vadd.f32 %v1274_v11, %v960_v39  ;;  %v7243_v2 = vpack.c.bf16 %v1456_v24, %v1455_v6  ;;  %v1490_v39 = vld [vmem:[%s11145_s9 + $0x358] sm:$0xff]  ;;  %v1475_v8 = vld [vmem:[%s11145_s9 + $0x2e0] sm:$0xff]  ;;  %v1460_v34 = vld [vmem:[%s11145_s9 + $0x268] sm:$0xff] }
 0x253   :  { %v1358_v38 = vmul.f32 0.2, %v1342_v36  ;;  %v9430_v4 = vadd.f32 %v9218_v45, %v1196_v32  ;;  %v9432_v13 = vadd.f32 %v1333_v52, %v1273_v29  ;;  %v7275_v43 = vpack.c.bf16 %v1488_v21, %v1487_v14  ;;  %v1458_v45 = vld [vmem:[%s11145_s9 + $0x258] sm:$0xff]  ;;  %v1491_v15 = vld [vmem:[%s11145_s9 + $0x360] sm:$0xff]  ;;  %v1492_v52 = vld [vmem:[%s11145_s9 + $0x368] sm:$0xff] }
 0x254   :  { %v9435_v55 = vadd.f32 %v9221_v41, %v1198_v56  ;;  %v9437_v7 = vadd.f32 %v1334_v62, %v1275_v33  ;;  %v1372_v28 = vmax.f32 %v1340_v27, %v1356_v1  ;;  %v7245_v10 = vpack.c.bf16 %v1474_v22, %v1473_v44  ;;  %v1489_v41 = vld [vmem:[%s11145_s9 + $0x350] sm:$0xff]  ;;  %v1510_v18 = vld [vmem:[%s11145_s9 + $0x3f8] sm:$0xff] }
 0x255   :  { %7240 = vmatpush3.bf16.msra.mxu1 %v7239_v54  ;;  %7272 = vmatpush3.bf16.msra.mxu0 %v7271_v63  ;;  %v1374_v23 = vmax.f32 %v1342_v36, %v1358_v38  ;;  %v7277_v5 = vpack.c.bf16 %v1506_v61, %v1505_v53  ;;  %v7247_v25 = vpack.c.bf16 %v1458_v45, %v1457_v59  ;;  %v1477_v62 = vld [vmem:[%s11145_s9 + $0x2f0] sm:$0xff]  ;;  %v1462_v36 = vld [vmem:[%s11145_s9 + $0x278] sm:$0xff]  ;;  %v1355_v14 = vmul.f32 0.2, %v9400_v40 }
 0x256   :  { %7242 = vmatprep.subr.bf16.mxu1 %v7241_v9  ;;  %7274 = vmatprep.subr.bf16.mxu0 %v7273_v26  ;;  %v7279_v16 = vpack.c.bf16 %v1490_v39, %v1489_v41  ;;  %v7249_v30 = vpack.c.bf16 %v1476_v20, %v1475_v8  ;;  %v7281_v31 = vpack.c.bf16 %v1508_v19, %v1507_v58  ;;  %v1461_v63 = vld [vmem:[%s11145_s9 + $0x270] sm:$0xff]  ;;  %v1494_v49 = vld [vmem:[%s11145_s9 + $0x378] sm:$0xff]  ;;  %v1357_v21 = vmul.f32 0.2, %v9402_v35 }
 0x257   :  { %1725 = vmatprep.mubr.f32.mxu1 %v1372_v28  ;;  %1800 = vmatprep.mubr.f32.mxu0 %v1374_v23  ;;  %v7251_v12 = vpack.c.bf16 %v1460_v34, %v1459_v0  ;;  %v7283_v54 = vpack.c.bf16 %v1492_v52, %v1491_v15  ;;  %v7253_v6 = vpack.c.bf16 %v1478_v17, %v1477_v62  ;;  %v1493_v60 = vld [vmem:[%s11145_s9 + $0x370] sm:$0xff]  ;;  %v1364_v32 = vmul.f32 0.2, %v9435_v55  ;;  %s8113_s9 = smov 112  }
 0x258   :  { %v7285_v27 = vpack.c.bf16 %v1510_v18, %v1509_v3  ;;  %v7255_v9 = vpack.c.bf16 %v1462_v36, %v1461_v63  ;;  %v7287_v24 = vpack.c.bf16 %v1494_v49, %v1493_v60  ;;  %v1366_v29 = vmul.f32 0.2, %v9437_v7  ;;  %v11370_v22 = vld [vmem:[#allocation42_spill] sm:$0xff] }
 0x259   :  { %7244 = vmatpush3.bf16.msra.mxu1 %v7243_v2  ;;  %7276 = vmatpush3.bf16.msra.mxu0 %v7275_v43  ;;  %v1371_v48 = vmax.f32 %v9400_v40, %v1355_v14  ;;  %v1373_v11 = vmax.f32 %v9402_v35, %v1357_v21  ;;  %v1363_v26 = vmul.f32 0.2, %v9430_v4  ;;  %v1365_v44 = vmul.f32 0.2, %v9432_v13 }
 0x25a   :  { %7246 = vmatprep.subr.bf16.mxu1 %v7245_v10  ;;  %7278 = vmatprep.subr.bf16.mxu0 %v7277_v5  ;;  %v1380_v1 = vmax.f32 %v9435_v55, %v1364_v32  ;;  %v1382_v38 = vmax.f32 %v9437_v7, %v1366_v29  ;;  %v9513_v41 = vpop.permute.xlu1 %1918  ;;  %v9515_v19 = vpop.permute.xlu0 %2048 }
 0x25b   :  { %v1379_v40 = vmax.f32 %v9430_v4, %v1363_v26  ;;  %v1381_v35 = vmax.f32 %v9432_v13, %v1365_v44 }
 0x25d   :  { %7248 = vmatpush3.bf16.msra.mxu1 %v7247_v25  ;;  %7280 = vmatpush3.bf16.msra.mxu0 %v7279_v16 }
 0x25e   :  { %7250 = vmatprep.subr.bf16.mxu1 %v7249_v30  ;;  %7282 = vmatprep.subr.bf16.mxu0 %v7281_v31  ;;  %v9517_v25 = vpop.permute.xlu1 %1920 }
 0x261   :  { %7252 = vmatpush3.bf16.msra.mxu1 %v7251_v12  ;;  %7284 = vmatpush3.bf16.msra.mxu0 %v7283_v54 }
 0x262   :  { %7254 = vmatprep.subr.bf16.mxu1 %v7253_v6  ;;  %7286 = vmatprep.subr.bf16.mxu0 %v7285_v27  ;;  %v9523_v18 = vpop.permute.xlu1 %2050  ;;  %v9530_v6 = vpop.permute.xlu0 %2178 }
 0x265   :  { %7256 = vmatpush3.bf16.msra.mxu1 %v7255_v9  ;;  %7288 = vmatpush3.bf16.msra.mxu0 %v7287_v24 }
 0x266   :  { %7290 = vmatprep.subr.bf16.mxu1 %v11370_v22  ;;  %v9540_v24 = vpop.permute.xlu1 %2180 }
 0x268   :  { %1726 = vmatmul.mubr.f32.vlgmr.msra.gmra.mrb[32].mxu1 %v1371_v48  ;;  %1801 = vmatmul.mubr.f32.vlgmr.msra.gmra.mrb[26].mxu0 %v1373_v11 }
 0x269   :  { %1730 = vmatprep.mubr.f32.mxu1 %v1380_v1  ;;  %1805 = vmatprep.mubr.f32.mxu0 %v1382_v38 }
 0x26a   :  { %7292 = vmatpush3.bf16.msra.mxu1 %v11370_v22 }
 0x26c   :  { %1731 = vmatmul.mubr.f32.gmra.mrb[34].mxu1 %v1379_v40  ;;  %1806 = vmatmul.mubr.f32.gmra.mrb[28].mxu0 %v1381_v35 }
 0x31a   :  { %v6360_v56 = vpop.f32.mrb[28].mxu1  ;;  %v6398_v33 = vpop.f32.mrb[22].mxu0 }
 0x31b   :  { %v6361_v53 = vpop.f32.mrb[29].mxu1  ;;  %v6399_v61 = vpop.f32.mrb[23].mxu0 }
 0x31c   :  { %v6362_v2 = vadd.f32 %v6361_v53, %v6360_v56  ;;  %v6400_v43 = vadd.f32 %v6399_v61, %v6398_v33 }
 0x31e   :  { %v1653_v55 = vadd.f32 %v6400_v43, %v6362_v2 }
 0x31f   :  { %v6363_v7 = vpop.f32.mrb[30].mxu1  ;;  %v6401_v28 = vpop.f32.mrb[24].mxu0 }
 0x320   :  { %v6364_v59 = vpop.f32.mrb[31].mxu1  ;;  %v6402_v45 = vpop.f32.mrb[25].mxu0 }
 0x321   :  { %v6365_v23 = vadd.f32 %v6364_v59, %v6363_v7  ;;  %v6403_v10 = vadd.f32 %v6402_v45, %v6401_v28 }
 0x323   :  { %v1658_v5 = vadd.f32 %v6403_v10, %v6365_v23 }
 0x33b   :  { %v6436_v4 = vpop.f32.mrb[32].mxu1  ;;  %v6474_v13 = vpop.f32.mrb[26].mxu0 }
 0x33c   :  { %v6437_v39 = vpop.f32.mrb[33].mxu1  ;;  %v6475_v8 = vpop.f32.mrb[27].mxu0 }
 0x33d   :  { %v6438_v20 = vadd.f32 %v6437_v39, %v6436_v4  ;;  %v6476_v58 = vadd.f32 %v6475_v8, %v6474_v13 }
 0x33f   :  { %v1728_v16 = vadd.f32 %v6438_v20, %v1653_v55  ;;  %v6439_v0 = vpop.f32.mrb[34].mxu1  ;;  %v6477_v34 = vpop.f32.mrb[28].mxu0 }
 0x340   :  { %v6440_v30 = vpop.f32.mrb[35].mxu1  ;;  %v6478_v31 = vpop.f32.mrb[29].mxu0 }
 0x341   :  { %v9519_v15 = vadd.f32 %v6476_v58, %v1728_v16  ;;  %v6441_v52 = vadd.f32 %v6440_v30, %v6439_v0  ;;  %v6479_v62 = vadd.f32 %v6478_v31, %v6477_v34 }
 0x343   :  { %v1733_v17 = vadd.f32 %v6441_v52, %v1658_v5  ;;  %v1924_v3 = vadd.f32 %v9513_v41, %v9519_v15  ;;  %v2054_v63 = vadd.f32 %v9515_v19, %v9519_v15  ;;  %v2184_v49 = vadd.f32 %v9530_v6, %v9519_v15 }
 0x344   :  { %v1811_v13 = vadd.f32 %v9519_v15, %v9180_v50 }
 0x345   :  { %v9525_v12 = vadd.f32 %v6479_v62, %v1733_v17  ;;  %v1927_v54 = vsel %vm1926_vm3, %v1924_v3, -inf  ;;  %v2057_v36 = vsel %vm2056_vm4, %v2054_v63, -inf  ;;  %v2187_v14 = vsel %vm2186_vm5, %v2184_v49, -inf }
 0x346   :  { %1928 = vmax.xlane.f32.xlu0 %v1927_v54  ;;  %v1813_v39 = vsel %vm167_vm0, %v1811_v13, -inf }
 0x347   :  { %v1925_v27 = vadd.f32 %v9517_v25, %v9525_v12  ;;  %v2055_v9 = vadd.f32 %v9523_v18, %v9525_v12  ;;  %v2185_v32 = vadd.f32 %v9540_v24, %v9525_v12  ;;  %v1812_v8 = vadd.f32 %v9525_v12, %v9186_v42 }
 0x349   :  { %v1930_v60 = vsel %vm1926_vm3, %v1925_v27, -inf  ;;  %v2060_v21 = vsel %vm2056_vm4, %v2055_v9, -inf  ;;  %v2190_v29 = vsel %vm2186_vm5, %v2185_v32, -inf  ;;  %v1816_v20 = vsel %vm167_vm0, %v1812_v8, -inf }
 0x34a   :  { %2058 = vmax.xlane.f32.xlu0 %v2057_v36  ;;  %1931 = vmax.xlane.f32.xlu1 %v1930_v60 }
 0x34e   :  { %2188 = vmax.xlane.f32.xlu1 %v2187_v14  ;;  %2061 = vmax.xlane.f32.xlu0 %v2060_v21 }
 0x352   :  { %2191 = vmax.xlane.f32.xlu0 %v2190_v29  ;;  %v11371_v29 = vld [vmem:[#allocation43_spill] sm:$0xff] }
 0x3d3   :  { %v1929_v48 = vpop.xlane.xlu0 %1928 }
 0x3d4   :  { %v1933_v11 = vsub.f32 %v1924_v3, %v1929_v48 }
 0x3d6   :  { %v1935_v26 = vmul.f32 1.442695, %v1933_v11 }
 0x3d7   :  { %v2059_v44 = vpop.xlane.xlu0 %2058  ;;  %v1932_v22 = vpop.xlane.xlu1 %1931 }
 0x3d8   :  { %7952 = vpow2.f32 %v1935_v26  ;;  %v2063_v1 = vsub.f32 %v2054_v63, %v2059_v44  ;;  %v1934_v38 = vsub.f32 %v1925_v27, %v1932_v22 }
 0x3da   :  { %v2065_v40 = vmul.f32 1.442695, %v2063_v1  ;;  %v1937_v35 = vmul.f32 1.442695, %v1934_v38 }
 0x3db   :  { %v2062_v56 = vpop.xlane.xlu0 %2061  ;;  %v2189_v33 = vpop.xlane.xlu1 %2188 }
 0x3dc   :  { %7954 = vpow2.f32 %v2065_v40  ;;  %v2064_v53 = vsub.f32 %v2055_v9, %v2062_v56  ;;  %v2193_v61 = vsub.f32 %v2184_v49, %v2189_v33 }
 0x3dd   :  { %7956 = vpow2.f32 %v1937_v35 }
 0x3de   :  { %v2067_v2 = vmul.f32 1.442695, %v2064_v53  ;;  %v2195_v43 = vmul.f32 1.442695, %v2193_v61 }
 0x3df   :  { %v2192_v55 = vpop.xlane.xlu0 %2191 }
 0x3e0   :  { %7958 = vpow2.f32 %v2067_v2  ;;  %v2194_v7 = vsub.f32 %v2185_v32, %v2192_v55 }
 0x3e1   :  { %7960 = vpow2.f32 %v2195_v43 }
 0x3e2   :  { %v9547_v28 = vpop.eup %7952  ;;  %v2197_v59 = vmul.f32 1.442695, %v2194_v7 }
 0x3e3   :  { %1941 = vrot.lane.b32.xlu1 %v9547_v28, %s8113_s9 }
 0x3e4   :  { %7962 = vpow2.f32 %v2197_v59 }
 0x3e6   :  { %v9551_v45 = vpop.eup %7954 }
 0x3e7   :  { %v9553_v23 = vpop.eup %7956  ;;  %2071 = vrot.lane.b32.xlu1 %v9551_v45, %s8114_s7 }
 0x3e8   :  { %1943 = vrot.lane.b32.xlu0 %v9553_v23, %s8113_s9 }
 0x3ea   :  { %v9559_v10 = vpop.eup %7958 }
 0x3eb   :  { %v9561_v5 = vpop.eup %7960  ;;  %2073 = vrot.lane.b32.xlu1 %v9559_v10, %s8114_s7 }
 0x3ec   :  { %2201 = vrot.lane.b32.xlu0 %v9561_v5, %s8115_s28 }
 0x3ee   :  { %v9567_v4 = vpop.eup %7962 }
 0x3ef   :  { %2203 = vrot.lane.b32.xlu1 %v9567_v4, %s8115_s28 }
 0x40b   :  { %1814 = vmax.xlane.f32.xlu0 %v1813_v39 }
 0x413   :  { %1817 = vmax.xlane.f32.xlu1 %v1816_v20 }
 0x455   :  { %v1942_v58 = vpop.permute.xlu1 %1941 }
 0x456   :  { %v1947_v16 = vsel %vm167_vm0, %v1942_v58, 0.0 }
 0x457   :  { %1948 = vadd.xlane.f32.xlu0 %v1947_v16 }
 0x459   :  { %v2072_v0 = vpop.permute.xlu1 %2071 }
 0x45a   :  { %v1944_v34 = vpop.permute.xlu0 %1943  ;;  %v2077_v30 = vsel %vm167_vm0, %v2072_v0, 0.0 }
 0x45b   :  { %2078 = vadd.xlane.f32.xlu1 %v2077_v30  ;;  %v1950_v31 = vsel %vm167_vm0, %v1944_v34, 0.0 }
 0x45c   :  { %1951 = vadd.xlane.f32.xlu0 %v1950_v31 }
 0x45d   :  { %v2074_v15 = vpop.permute.xlu1 %2073 }
 0x45e   :  { %v2202_v52 = vpop.permute.xlu0 %2201  ;;  %v2080_v62 = vsel %vm167_vm0, %v2074_v15, 0.0 }
 0x45f   :  { %v2207_v17 = vsel %vm167_vm0, %v2202_v52, 0.0 }
 0x460   :  { %2208 = vadd.xlane.f32.xlu1 %v2207_v17  ;;  %2081 = vadd.xlane.f32.xlu0 %v2080_v62 }
 0x461   :  { %v2204_v3 = vpop.permute.xlu1 %2203 }
 0x462   :  { %v2210_v12 = vsel %vm167_vm0, %v2204_v3, 0.0 }
 0x464   :  { %2211 = vadd.xlane.f32.xlu0 %v2210_v12  ;;  %v11372_v12 = vld [vmem:[#allocation13_spill] sm:$0xff] }
 0x498   :  { %v1815_v54 = vpop.xlane.xlu0 %1814 }
 0x499   :  { %v1819_v63 = vsub.f32 %v1811_v13, %v1815_v54 }
 0x49b   :  { %v1821_v27 = vmul.f32 1.442695, %v1819_v63 }
 0x49d   :  { %7964 = vpow2.f32 %v1821_v27 }
 0x4a0   :  { %v1818_v36 = vpop.xlane.xlu1 %1817 }
 0x4a1   :  { %v1820_v60 = vsub.f32 %v1812_v8, %v1818_v36  ;;  %v11373_v36 = vld [vmem:[#allocation16_spill] sm:$0xff] }
 0x4a3   :  { %v1823_v49 = vmul.f32 1.442695, %v1820_v60  ;;  %v11374_v60 = vld [vmem:[#allocation18_spill] sm:$0xff] }
 0x4a5   :  { %7966 = vpow2.f32 %v1823_v49  ;;  %v11375_v49 = vld [vmem:[#allocation20_spill] sm:$0xff] }
 0x4a7   :  { %v7965_v9 = vpop.eup %7964 }
 0x4a8   :  { %v1825_v14 = vsel %vm167_vm0, %v7965_v9, 0.0 }
 0x4a9   :  { %1826 = vadd.xlane.f32.xlu1 %v1825_v14 }
 0x4af   :  { %v7967_v21 = vpop.eup %7966 }
 0x4b0   :  { %v1828_v32 = vsel %vm167_vm0, %v7967_v21, 0.0 }
 0x4b1   :  { %1829 = vadd.xlane.f32.xlu0 %v1828_v32  ;;  %v2351_v32 = vld [vmem:[%s11147_s11] sm:$0xff] }
 0x4ba   :  { %7908 = vrot.lane.b32.xlu1 %v11371_v29, %s8113_s9 }
 0x4be   :  { %7918 = vrot.lane.b32.xlu1 %v11371_v29, %s8115_s28 }
 0x4c7   :  { %7913 = vrot.lane.b32.xlu0 %v11371_v29, %s8114_s7  ;;  %v2352_v29 = vld [vmem:[%s11147_s11 + $0x8] sm:$0xff] }
 0x4e4   :  { %v1949_v48 = vpop.xlane.xlu0 %1948 }
 0x4e5   :  { %7968 = vrcp.f32 %v1949_v48  ;;  %v7305_v48 = vpack.c.bf16 %v2352_v29, %v2351_v32 }
 0x4e8   :  { %v2079_v11 = vpop.xlane.xlu1 %2078 }
 0x4e9   :  { %7970 = vrcp.f32 %v2079_v11  ;;  %v1952_v26 = vpop.xlane.xlu0 %1951  ;;  %v2353_v11 = vld [vmem:[%s11147_s11 + $0x10] sm:$0xff] }
 0x4ea   :  { %7972 = vrcp.f32 %v1952_v26  ;;  %v2354_v26 = vld [vmem:[%s11147_s11 + $0x18] sm:$0xff] }
 0x4ed   :  { %v2209_v44 = vpop.xlane.xlu1 %2208  ;;  %v2082_v22 = vpop.xlane.xlu0 %2081 }
 0x4ee   :  { %7974 = vrcp.f32 %v2209_v44  ;;  %v7309_v44 = vpack.c.bf16 %v2354_v26, %v2353_v11 }
 0x4ef   :  { %v7969_v1 = vpop.eup %7968  ;;  %7976 = vrcp.f32 %v2082_v22  ;;  %v2355_v22 = vld [vmem:[%s11147_s11 + $0x20] sm:$0xff] }
 0x4f0   :  { %v1955_v38 = vmul.f32 %v7969_v1, %v9547_v28  ;;  %v2356_v1 = vld [vmem:[%s11147_s11 + $0x28] sm:$0xff] }
 0x4f1   :  { %v2212_v40 = vpop.xlane.xlu0 %2211 }
 0x4f2   :  { %7978 = vrcp.f32 %v2212_v40  ;;  %1959 = vrot.lane.b32.xlu1 %v1955_v38, %s8113_s9  ;;  %v7313_v38 = vpack.c.bf16 %v2356_v1, %v2355_v22  ;;  %v2357_v40 = vld [vmem:[%s11147_s11 + $0x30] sm:$0xff]  ;;  %v11388_v1 = vld [vmem:[#allocation40_spill] sm:$0xff] }
 0x4f3   :  { %v7971_v35 = vpop.eup %7970  ;;  %v11387_v22 = vld [vmem:[#allocation39_spill] sm:$0xff] }
 0x4f4   :  { %v7973_v56 = vpop.eup %7972  ;;  %v2085_v33 = vmul.f32 %v7971_v35, %v9551_v45  ;;  %v2358_v35 = vld [vmem:[%s11147_s11 + $0x38] sm:$0xff] }
 0x4f5   :  { %v1956_v53 = vmul.f32 %v7973_v56, %v9553_v23  ;;  %v7317_v56 = vpack.c.bf16 %v2358_v35, %v2357_v40  ;;  %v11390_v40 = vld [vmem:[#allocation44_spill] sm:$0xff]  ;;  %v11391_v35 = vld [vmem:[#allocation45_spill] sm:$0xff] }
 0x4f6   :  { %2089 = vrot.lane.b32.xlu1 %v2085_v33, %s8114_s7 }
 0x4f7   :  { %1961 = vrot.lane.b32.xlu0 %v1956_v53, %s8113_s9 }
 0x4f8   :  { %v7975_v61 = vpop.eup %7974 }
 0x4f9   :  { %v7977_v2 = vpop.eup %7976  ;;  %v2215_v43 = vmul.f32 %v7975_v61, %v9561_v5  ;;  %v11377_v61 = vld [vmem:[#allocation8_spill] sm:$0xff] }
 0x4fa   :  { %v2086_v55 = vmul.f32 %v7977_v2, %v9559_v10 }
 0x4fb   :  { %2219 = vrot.lane.b32.xlu1 %v2215_v43, %s8115_s28 }
 0x4fc   :  { %v7979_v7 = vpop.eup %7978  ;;  %2091 = vrot.lane.b32.xlu0 %v2086_v55, %s8114_s7 }
 0x4fd   :  { %v2216_v28 = vmul.f32 %v7979_v7, %v9567_v4 }
 0x500   :  { %2221 = vrot.lane.b32.xlu0 %v2216_v28, %s8115_s28 }
 0x536   :  { %v1827_v59 = vpop.xlane.xlu1 %1826 }
 0x537   :  { %7980 = vrcp.f32 %v1827_v59 }
 0x53a   :  { %v7909_v45 = vpop.permute.xlu1 %7908 }
 0x53b   :  { %v7911_v23 = vunpack.i.h.bf16 %v7909_v45  ;;  %v7910_v13 = vunpack.i.l.bf16 %v7909_v45 }
 0x53d   :  { %v7293_v39 = vpack.c.bf16 %v7911_v23, %v7910_v13 }
 0x53e   :  { %v1830_v8 = vpop.xlane.xlu0 %1829  ;;  %v7919_v0 = vpop.permute.xlu1 %7918 }
 0x53f   :  { %7294 = vmatprep.subr.bf16.mxu1 %v7293_v39  ;;  %7982 = vrcp.f32 %v1830_v8  ;;  %v7921_v34 = vunpack.i.h.bf16 %v7919_v0  ;;  %v7920_v30 = vunpack.i.l.bf16 %v7919_v0 }
 0x541   :  { %v7981_v5 = vpop.eup %7980  ;;  %v7301_v52 = vpack.c.bf16 %v7921_v34, %v7920_v30 }
 0x542   :  { %v7914_v10 = vpop.permute.xlu0 %7913  ;;  %v1833_v20 = vmul.f32 %v7981_v5, %v7965_v9  ;;  %v11376_v9 = vld [vmem:[#allocation22_spill] sm:$0xff] }
 0x543   :  { %v7916_v58 = vunpack.i.h.bf16 %v7914_v10  ;;  %v7915_v16 = vunpack.i.l.bf16 %v7914_v10 }
 0x544   :  { %6873 = vmatprep.mubr.msk.f32.mxu1 %vm167_vm0, %v1833_v20 }
 0x545   :  { %v7297_v4 = vpack.c.bf16 %v7916_v58, %v7915_v16 }
 0x547   :  { %7298 = vmatprep.subr.bf16.mxu0 %v7297_v4 }
 0x548   :  { %7300 = vmatpush3.bf16.msra.mxu0 %v7297_v4 }
 0x549   :  { %v7983_v31 = vpop.eup %7982  ;;  %7306 = vmatprep.subr.bf16.mxu0 %v7305_v48 }
 0x54a   :  { %v1834_v15 = vmul.f32 %v7983_v31, %v7967_v21 }
 0x54c   :  { %6874 = vmatmul.mubr.msk.f32.vlgmr.msra.gmra.mrb[36].mxu1 %vm167_vm0, %v1834_v15  ;;  %v11378_v15 = vld [vmem:[#allocation11_spill] sm:$0xff] }
 0x54d   :  { %7296 = vmatpush3.bf16.msra.mxu1 %v7293_v39  ;;  %v6261_v39 = vld [vmem:[%s11146_s10] ss:$0 sm:$0xff] }
 0x54e   :  { %7302 = vmatprep.subr.bf16.mxu1 %v7301_v52 }
 0x564   :  { %v1960_v62 = vpop.permute.xlu1 %1959 }
 0x565   :  { %6880 = vmatprep.mubr.msk.f32.mxu1 %vm167_vm0, %v1960_v62  ;;  %v11380_v62 = vld [vmem:[#allocation14_spill] sm:$0xff] }
 0x568   :  { %v2090_v17 = vpop.permute.xlu1 %2089 }
 0x569   :  { %v1962_v3 = vpop.permute.xlu0 %1961  ;;  %6887 = vmatprep.mubr.msk.f32.mxu0 %vm167_vm0, %v2090_v17  ;;  %v11381_v17 = vld [vmem:[#allocation15_spill] sm:$0xff] }
 0x56a   :  { %6881 = vmatmul.mubr.msk.f32.vlgmr.msra.gmra.mrb[38].mxu1 %vm167_vm0, %v1962_v3  ;;  %v11382_v3 = vld [vmem:[#allocation17_spill] sm:$0xff] }
 0x56b   :  { %7304 = vmatpush3.bf16.msra.mxu1 %v7301_v52  ;;  %v11379_v52 = vld [vmem:[#allocation12_spill] sm:$0xff] }
 0x56c   :  { %7322 = vmatprep.subr.bf16.mxu1 %v11372_v12 }
 0x56d   :  { %v2220_v54 = vpop.permute.xlu1 %2219 }
 0x56e   :  { %v2092_v63 = vpop.permute.xlu0 %2091  ;;  %6894 = vmatprep.mubr.msk.f32.mxu1 %vm167_vm0, %v2220_v54  ;;  %v11383_v54 = vld [vmem:[#allocation19_spill] sm:$0xff] }
 0x56f   :  { %6888 = vmatmul.mubr.msk.f32.vlgmr.msra.gmra.mrb[30].mxu0 %vm167_vm0, %v2092_v63  ;;  %v11384_v63 = vld [vmem:[#allocation21_spill] sm:$0xff] }
 0x570   :  { %7308 = vmatpush3.bf16.msra.mxu0 %v7305_v48 }
 0x571   :  { %7310 = vmatprep.subr.bf16.mxu0 %v7309_v44 }
 0x572   :  { %v2222_v27 = vpop.permute.xlu0 %2221 }
 0x573   :  { %6895 = vmatmul.mubr.msk.f32.vlgmr.msra.gmra.mrb[40].mxu1 %vm167_vm0, %v2222_v27  ;;  %v11385_v27 = vld [vmem:[#allocation23_spill] sm:$0xff] }
 0x574   :  { %7324 = vmatpush1.bf16.msra.mxu1 %v8413_v46  ;;  %2517 = vmatprep.mubr.f32.mxu1 %v11311_v37 }
 0x575   :  { %7326 = vmatprep.subr.bf16.mxu1 %v8415_v47  ;;  %7312 = vmatpush3.bf16.msra.mxu0 %v7309_v44  ;;  %v11386_v44 = vld [vmem:[#allocation38_spill] sm:$0xff] }
 0x576   :  { %7314 = vmatprep.subr.bf16.mxu0 %v7313_v38 }
 0x578   :  { %7328 = vmatpush1.bf16.msra.mxu1 %v8433_v51 }
 0x579   :  { %7330 = vmatprep.subr.bf16.mxu1 %v8450_v57  ;;  %7316 = vmatpush3.bf16.msra.mxu0 %v7313_v38  ;;  %v11389_v38 = vld [vmem:[#allocation41_spill] sm:$0xff] }
 0x57a   :  { %7318 = vmatprep.subr.bf16.mxu0 %v7317_v56 }
 0x57c   :  { %7332 = vmatpush1.bf16.msra.mxu1 %v11373_v36 }
 0x57d   :  { %7334 = vmatprep.subr.bf16.mxu1 %v11374_v60  ;;  %7320 = vmatpush3.bf16.msra.mxu0 %v7317_v56  ;;  %v11392_v56 = vld [vmem:[#allocation46_spill] sm:$0xff] }
 0x57e   :  { %7338 = vmatprep.subr.bf16.mxu0 %v11377_v61 }
 0x580   :  { %7336 = vmatpush1.bf16.msra.mxu1 %v11375_v49 }
 0x581   :  { %7354 = vmatprep.subr.bf16.mxu1 %v11376_v9 }
 0x61f   :  { %v6875_v14 = vpop.f32.mrb[36].mxu1 }
 0x620   :  { %v1907_v21 = vpop.f32.mrb[37].mxu1 }
 0x63d   :  { %v6882_v33 = vpop.f32.mrb[38].mxu1 }
 0x63e   :  { %2312 = vrot.lane.b32.xlu0 %v6882_v33, %s8110_s3  ;;  %v2039_v53 = vpop.f32.mrb[39].mxu1  ;;  %v11393_v33 = vld [vmem:[#allocation47_spill] sm:$0xff] }
 0x63f   :  { %2310 = vrot.lane.b32.xlu1 %v2039_v53, %s8110_s3  ;;  %v11394_v53 = vld [vmem:[#allocation48_spill] sm:$0xff] }
 0x642   :  { %v6889_v2 = vpop.f32.mrb[30].mxu0 }
 0x643   :  { %2320 = vrot.lane.b32.xlu0 %v6889_v2, %s8111_s0  ;;  %v2169_v43 = vpop.f32.mrb[31].mxu0  ;;  %v11395_v2 = vld [vmem:[#allocation49_spill] sm:$0xff] }
 0x644   :  { %2318 = vrot.lane.b32.xlu1 %v2169_v43, %s8111_s0  ;;  %v11396_v43 = vld [vmem:[#allocation50_spill] sm:$0xff] }
 0x646   :  { %v6896_v55 = vpop.f32.mrb[40].mxu1 }
 0x647   :  { %v2299_v7 = vpop.f32.mrb[41].mxu1  ;;  %2328 = vrot.lane.b32.xlu0 %v6896_v55, %s8112_s4  ;;  %v11397_v55 = vld [vmem:[#allocation51_spill] sm:$0xff] }
 0x648   :  { %2326 = vrot.lane.b32.xlu1 %v2299_v7, %s8112_s4  ;;  %v11398_v7 = vld [vmem:[#allocation55_spill] sm:$0xff] }
 0x6b0   :  { %v2313_v28 = vpop.permute.xlu0 %2312 }
 0x6b1   :  { %v2311_v59 = vpop.permute.xlu1 %2310  ;;  %v2333_v13 = vsel %vm167_vm0, %v6875_v14, %v2313_v28  ;;  %v6262_v14 = vld [vmem:[%s11148_s12] ss:$0 sm:$0xff] }
 0x6b2   :  { %v2332_v8 = vsel %vm167_vm0, %v1907_v21, %v2311_v59  ;;  %v11399_v28 = vld [vmem:[#allocation56_spill] sm:$0xff] }
 0x6b5   :  { %v2321_v45 = vpop.permute.xlu0 %2320 }
 0x6b6   :  { %v2319_v23 = vpop.permute.xlu1 %2318  ;;  %v2336_v5 = vsel %vm2334_vm6, %v2333_v13, %v2321_v45  ;;  %v3272_v13 = vld [vmem:[%s11150_s14 + $0x88] sm:$0xff] }
 0x6b7   :  { %v2335_v20 = vsel %vm2334_vm6, %v2332_v8, %v2319_v23  ;;  %v3271_v23 = vld [vmem:[%s11150_s14 + $0x80] sm:$0xff]  ;;  %v3304_v8 = vld [vmem:[%s11150_s14 + $0x188] sm:$0xff] }
 0x6b9   :  { %v2329_v10 = vpop.permute.xlu0 %2328 }
 0x6ba   :  { %v2339_v58 = vsel %vm2337_vm7, %v2336_v5, %v2329_v10  ;;  %v2327_v16 = vpop.permute.xlu1 %2326  ;;  %v7449_v5 = vpack.c.bf16 %v3272_v13, %v3271_v23  ;;  %v3289_v13 = vld [vmem:[%s11150_s14 + $0x110] sm:$0xff] }
 0x6bb   :  { %v2348_v0 = vadd.f32 %v6261_v39, %v2339_v58  ;;  %v2338_v4 = vsel %vm2337_vm7, %v2335_v20, %v2327_v16  ;;  %v3255_v20 = vld [vmem:[%s11150_s14] sm:$0xff]  ;;  %v3256_v58 = vld [vmem:[%s11150_s14 + $0x8] sm:$0xff] }
 0x6bc   :  { %v2347_v34 = vadd.f32 %v6261_v39, %v2338_v4  ;;  %v3303_v39 = vld [vmem:[%s11150_s14 + $0x180] sm:$0xff]  ;;  %v3273_v4 = vld [vmem:[%s11150_s14 + $0x90] sm:$0xff] }
 0x6bd   :  { %v2350_v31 = vmax.f32 %v2348_v0, 0.0  ;;  %v7481_v10 = vpack.c.bf16 %v3304_v8, %v3303_v39  ;;  %v3287_v16 = vld [vmem:[%s11150_s14 + $0x100] sm:$0xff]  ;;  %v3288_v0 = vld [vmem:[%s11150_s14 + $0x108] sm:$0xff]  ;;  %v3290_v39 = vld [vmem:[%s11150_s14 + $0x118] sm:$0xff] }
 0x6be   :  { %v2349_v30 = vmax.f32 %v2347_v34, 0.0  ;;  %v3274_v34 = vld [vmem:[%s11150_s14 + $0x98] sm:$0xff]  ;;  %v3275_v8 = vld [vmem:[%s11150_s14 + $0xa0] sm:$0xff] }
 0x6c0   :  { %6913 = vmatprep.mubr.msk.f32.mxu0 %vm574_vm2, %v2349_v30  ;;  %v3305_v30 = vld [vmem:[%s11150_s14 + $0x190] sm:$0xff] }
 0x6c1   :  { %6914 = vmatmul.mubr.msk.f32.vlgmr.msra.gmra.mrb[32].mxu0 %vm574_vm2, %v2350_v31  ;;  %v3306_v31 = vld [vmem:[%s11150_s14 + $0x198] sm:$0xff] }
 0x6c2   :  { %7340 = vmatpush1.bf16.msra.mxu0 %v11378_v15  ;;  %2594 = vmatprep.mubr.f32.mxu0 %v11311_v37  ;;  %v7485_v23 = vpack.c.bf16 %v3306_v31, %v3305_v30  ;;  %v3291_v30 = vld [vmem:[%s11150_s14 + $0x120] sm:$0xff]  ;;  %v3292_v31 = vld [vmem:[%s11150_s14 + $0x128] sm:$0xff] }
 0x6c3   :  { %7342 = vmatprep.subr.bf16.mxu0 %v11379_v52 }
 0x6c6   :  { %7344 = vmatpush1.bf16.msra.mxu0 %v11380_v62 }
 0x6c7   :  { %7346 = vmatprep.subr.bf16.mxu0 %v11381_v17 }
 0x6ca   :  { %7348 = vmatpush1.bf16.msra.mxu0 %v11382_v3 }
 0x6cb   :  { %7350 = vmatprep.subr.bf16.mxu0 %v11383_v54 }
 0x6ce   :  { %7352 = vmatpush1.bf16.msra.mxu0 %v11384_v63 }
 0x6cf   :  { %7370 = vmatprep.subr.bf16.mxu0 %v11385_v27 }
 0x794   :  { %v6915_v21 = vpop.f32.mrb[32].mxu0 }
 0x795   :  { %v2444_v32 = vadd.f32 %v6915_v21, %v6262_v14  ;;  %v2438_v29 = vpop.f32.mrb[33].mxu0  ;;  %v7483_v21 = vpack.c.bf16 %v3288_v0, %v3287_v16  ;;  %v3259_v16 = vld [vmem:[%s11150_s14 + $0x20] sm:$0xff]  ;;  %v3260_v0 = vld [vmem:[%s11150_s14 + $0x28] sm:$0xff] }
 0x796   :  { %v2439_v48 = vadd.f32 %v6262_v14, %v2438_v29  ;;  %v7451_v14 = vpack.c.bf16 %v3256_v58, %v3255_v20  ;;  %v3258_v29 = vld [vmem:[%s11150_s14 + $0x18] sm:$0xff]  ;;  %v3308_v20 = vld [vmem:[%s11150_s14 + $0x1a8] sm:$0xff] }
 0x797   :  { %2835 = vrot.lane.b32.xlu0 %v2444_v32, %s8109_s1 }
 0x798   :  { %2833 = vrot.lane.b32.xlu1 %v2439_v48, %s8109_s1  ;;  %6265 = vmatmul.mubr.msk.f32.vlgmr.msra.gmra.mrb[42].mxu1 %vm574_vm2, %v2439_v48  ;;  %v9678_v11 = vpack.c.bf16 %v2444_v32, %v2439_v48  ;;  %v9680_v26 = vpack.i.bf16 %v2444_v32, %v2439_v48 }
 0x799   :  { %6267 = vmatmul.mubr.msk.f32.vlgmr.msra.gmra.mrb[34].mxu0 %vm574_vm2, %v2439_v48  ;;  %7356 = vmatpush1.bf16.msra.mxu1 %v11386_v44 }
 0x79a   :  { %7372 = vmatpush1.bf16.msra.mxu0 %v11387_v22  ;;  %2523 = vmatprep.mubr.f32.mxu1 %v11311_v37 }
 0x79b   :  { %2600 = vmatprep.mubr.f32.mxu0 %v11311_v37  ;;  %7358 = vmatprep.subr.bf16.mxu1 %v11388_v1 }
 0x79c   :  { %7374 = vmatprep.subr.bf16.mxu0 %v11389_v38  ;;  %6266 = vmatmul.mubr.msk.f32.gmra.mrb[44].mxu1 %vm574_vm2, %v2444_v32 }
 0x79d   :  { %6268 = vmatmul.mubr.msk.f32.gmra.mrb[36].mxu0 %vm574_vm2, %v2444_v32  ;;  %7360 = vmatpush1.bf16.msra.mxu1 %v11390_v40 }
 0x79e   :  { %7376 = vmatpush1.bf16.msra.mxu0 %v11391_v35  ;;  %7362 = vmatprep.subr.bf16.mxu1 %v11392_v56 }
 0x79f   :  { %7378 = vmatprep.subr.bf16.mxu0 %v11393_v33  ;;  %2671 = vmatprep.mubr.f32.mxu1 %v11311_v37 }
 0x7a0   :  { %2748 = vmatprep.mubr.f32.mxu0 %v11311_v37 }
 0x7a1   :  { %7364 = vmatpush1.bf16.msra.mxu1 %v11394_v53 }
 0x7a2   :  { %7380 = vmatpush1.bf16.msra.mxu0 %v11395_v2  ;;  %7366 = vmatprep.subr.bf16.mxu1 %v11396_v43 }
 0x7a3   :  { %7382 = vmatprep.subr.bf16.mxu0 %v11397_v55 }
 0x7a5   :  { %7368 = vmatpush1.bf16.msra.mxu1 %v11398_v7 }
 0x7a6   :  { %7384 = vmatpush1.bf16.msra.mxu0 %v11399_v28  ;;  %7386 = vmatprep.subr.bf16.mxu1 %v11372_v12 }
 0x7a7   :  { %7402 = vmatprep.subr.bf16.mxu0 %v11377_v61 }
 0x7a8   :  { %6269 = vmatmul.mubr.msk.f32.vlgmr.msra.gmra.mrb[46].mxu1 %vm574_vm2, %v2439_v48 }
 0x7a9   :  { %6271 = vmatmul.mubr.msk.f32.vlgmr.msra.gmra.mrb[38].mxu0 %vm574_vm2, %v2439_v48  ;;  %2677 = vmatprep.mubr.f32.mxu1 %v11311_v37  ;;  %v7453_v48 = vpack.c.bf16 %v3274_v34, %v3273_v4 }
 0x7aa   :  { %2754 = vmatprep.mubr.f32.mxu0 %v11311_v37  ;;  %7388 = vmatpush1.bf16.msra.mxu1 %v8413_v46 }
 0x7ab   :  { %7404 = vmatpush1.bf16.msra.mxu0 %v11378_v15  ;;  %7390 = vmatprep.subr.bf16.mxu1 %v8415_v47 }
 0x7ac   :  { %6270 = vmatmul.mubr.msk.f32.gmra.mrb[48].mxu1 %vm574_vm2, %v2444_v32  ;;  %7406 = vmatprep.subr.bf16.mxu0 %v11379_v52 }
 0x7ad   :  { %6272 = vmatmul.mubr.msk.f32.gmra.mrb[40].mxu0 %vm574_vm2, %v2444_v32  ;;  %2905 = vmatprep.mubr.f32.mxu1 %v11311_v37  ;;  %v3257_v32 = vld [vmem:[%s11150_s14 + $0x10] sm:$0xff] }
 0x7ae   :  { %7392 = vmatpush1.bf16.msra.mxu1 %v8433_v51  ;;  %2982 = vmatprep.mubr.f32.mxu0 %v11311_v37  ;;  %v7455_v58 = vpack.c.bf16 %v3258_v29, %v3257_v32  ;;  %v3309_v32 = vld [vmem:[%s11150_s14 + $0x1b0] sm:$0xff]  ;;  %v3310_v29 = vld [vmem:[%s11150_s14 + $0x1b8] sm:$0xff] }
 0x7af   :  { %7408 = vmatpush1.bf16.msra.mxu0 %v11380_v62  ;;  %7394 = vmatprep.subr.bf16.mxu1 %v8450_v57 }
 0x7b0   :  { %7410 = vmatprep.subr.bf16.mxu0 %v11381_v17 }
 0x7b2   :  { %7396 = vmatpush1.bf16.msra.mxu1 %v11373_v36 }
 0x7b3   :  { %7412 = vmatpush1.bf16.msra.mxu0 %v11382_v3  ;;  %7398 = vmatprep.subr.bf16.mxu1 %v11374_v60  ;;  %v11404_v3 = vld [vmem:[#allocation63_spill] sm:$0xff] }
 0x7b4   :  { %7414 = vmatprep.subr.bf16.mxu0 %v11383_v54 }
 0x7b6   :  { %7400 = vmatpush1.bf16.msra.mxu1 %v11375_v49 }
 0x7b7   :  { %7416 = vmatpush1.bf16.msra.mxu0 %v11384_v63  ;;  %7418 = vmatprep.subr.bf16.mxu1 %v11376_v9 }
 0x7b8   :  { %7434 = vmatprep.subr.bf16.mxu0 %v11385_v27 }
 0x809   :  { %v9735_v45 = vpop.permute.xlu0 %2835 }
 0x80a   :  { %v2834_v59 = vpop.permute.xlu1 %2833 }
 0x80b   :  { %6273 = vmatmul.mubr.msk.f32.vlgmr.msra.gmra.mrb[50].mxu1 %vm574_vm2, %v2834_v59  ;;  %6275 = vmatmul.mubr.msk.f32.vlgmr.msra.gmra.mrb[42].mxu0 %vm574_vm2, %v2834_v59 }
 0x80c   :  { %7420 = vmatpush1.bf16.msra.mxu1 %v11386_v44  ;;  %7436 = vmatpush1.bf16.msra.mxu0 %v11387_v22  ;;  %v11402_v44 = vld [vmem:[#allocation61_spill] sm:$0xff] }
 0x80d   :  { %2911 = vmatprep.mubr.f32.mxu1 %v11311_v37  ;;  %2988 = vmatprep.mubr.f32.mxu0 %v11311_v37 }
 0x80e   :  { %7422 = vmatprep.subr.bf16.mxu1 %v11388_v1  ;;  %7438 = vmatprep.subr.bf16.mxu0 %v11389_v38 }
 0x80f   :  { %6274 = vmatmul.mubr.msk.f32.gmra.mrb[52].mxu1 %vm574_vm2, %v9735_v45  ;;  %6276 = vmatmul.mubr.msk.f32.gmra.mrb[44].mxu0 %vm574_vm2, %v9735_v45 }
 0x810   :  { %7424 = vmatpush1.bf16.msra.mxu1 %v11390_v40  ;;  %7440 = vmatpush1.bf16.msra.mxu0 %v11391_v35 }
 0x811   :  { %7426 = vmatprep.subr.bf16.mxu1 %v11392_v56  ;;  %7442 = vmatprep.subr.bf16.mxu0 %v11393_v33 }
 0x812   :  { %3059 = vmatprep.mubr.f32.mxu1 %v11311_v37  ;;  %3136 = vmatprep.mubr.f32.mxu0 %v11311_v37 }
 0x814   :  { %7428 = vmatpush1.bf16.msra.mxu1 %v11394_v53  ;;  %7444 = vmatpush1.bf16.msra.mxu0 %v11395_v2 }
 0x815   :  { %7430 = vmatprep.subr.bf16.mxu1 %v11396_v43  ;;  %7446 = vmatprep.subr.bf16.mxu0 %v11397_v55 }
 0x818   :  { %7432 = vmatpush1.bf16.msra.mxu1 %v11398_v7  ;;  %7448 = vmatpush1.bf16.msra.mxu0 %v11399_v28 }
 0x819   :  { %7450 = vmatprep.subr.bf16.mxu1 %v7449_v5  ;;  %7482 = vmatprep.subr.bf16.mxu0 %v7481_v10  ;;  %v3276_v5 = vld [vmem:[%s11150_s14 + $0xa8] sm:$0xff]  ;;  %v3307_v10 = vld [vmem:[%s11150_s14 + $0x1a0] sm:$0xff] }
 0x81a   :  { %v7457_v4 = vpack.c.bf16 %v3276_v5, %v3275_v8  ;;  %v7489_v34 = vpack.c.bf16 %v3308_v20, %v3307_v10  ;;  %v7493_v8 = vpack.c.bf16 %v3310_v29, %v3309_v32  ;;  %v3293_v5 = vld [vmem:[%s11150_s14 + $0x130] sm:$0xff]  ;;  %v3294_v10 = vld [vmem:[%s11150_s14 + $0x138] sm:$0xff]  ;;  %v3279_v20 = vld [vmem:[%s11150_s14 + $0xc0] sm:$0xff] }
 0x81b   :  { %6277 = vmatmul.mubr.msk.f32.vlgmr.msra.gmra.mrb[54].mxu1 %vm574_vm2, %v2834_v59  ;;  %6279 = vmatmul.mubr.msk.f32.vlgmr.msra.gmra.mrb[46].mxu0 %vm574_vm2, %v2834_v59  ;;  %v7487_v59 = vpack.c.bf16 %v3290_v39, %v3289_v13  ;;  %v3262_v13 = vld [vmem:[%s11150_s14 + $0x38] sm:$0xff]  ;;  %v3296_v32 = vld [vmem:[%s11150_s14 + $0x148] sm:$0xff]  ;;  %v3281_v29 = vld [vmem:[%s11150_s14 + $0xd0] sm:$0xff] }
 0x81c   :  { %3065 = vmatprep.mubr.f32.mxu1 %v11311_v37  ;;  %3142 = vmatprep.mubr.f32.mxu0 %v11311_v37 }
 0x81d   :  { %7452 = vmatpush3.bf16.msra.mxu1 %v7451_v14  ;;  %7484 = vmatpush3.bf16.msra.mxu0 %v7483_v21  ;;  %v3277_v14 = vld [vmem:[%s11150_s14 + $0xb0] sm:$0xff]  ;;  %v3278_v21 = vld [vmem:[%s11150_s14 + $0xb8] sm:$0xff] }
 0x81e   :  { %7454 = vmatprep.subr.bf16.mxu1 %v7453_v48  ;;  %7486 = vmatprep.subr.bf16.mxu0 %v7485_v23  ;;  %v7459_v48 = vpack.c.bf16 %v3260_v0, %v3259_v16  ;;  %v7491_v23 = vpack.c.bf16 %v3292_v31, %v3291_v30  ;;  %v7461_v39 = vpack.c.bf16 %v3278_v21, %v3277_v14  ;;  %v3312_v16 = vld [vmem:[%s11150_s14 + $0x1c8] sm:$0xff]  ;;  %v3295_v21 = vld [vmem:[%s11150_s14 + $0x140] sm:$0xff] }
 0x81f   :  { %6278 = vmatmul.mubr.msk.f32.gmra.mrb[56].mxu1 %vm574_vm2, %v9735_v45  ;;  %6280 = vmatmul.mubr.msk.f32.gmra.mrb[48].mxu0 %vm574_vm2, %v9735_v45  ;;  %v3261_v45 = vld [vmem:[%s11150_s14 + $0x30] sm:$0xff]  ;;  %v3264_v30 = vld [vmem:[%s11150_s14 + $0x48] sm:$0xff] }
 0x820   :  { %v7463_v0 = vpack.c.bf16 %v3262_v13, %v3261_v45  ;;  %v3314_v45 = vld [vmem:[%s11150_s14 + $0x1d8] sm:$0xff] }
 0x821   :  { %7456 = vmatpush3.bf16.msra.mxu1 %v7455_v58  ;;  %7488 = vmatpush3.bf16.msra.mxu0 %v7487_v59  ;;  %v3280_v58 = vld [vmem:[%s11150_s14 + $0xc8] sm:$0xff]  ;;  %v3311_v59 = vld [vmem:[%s11150_s14 + $0x1c0] sm:$0xff] }
 0x822   :  { %7458 = vmatprep.subr.bf16.mxu1 %v7457_v4  ;;  %7490 = vmatprep.subr.bf16.mxu0 %v7489_v34  ;;  %v7495_v4 = vpack.c.bf16 %v3294_v10, %v3293_v5  ;;  %v3263_v34 = vld [vmem:[%s11150_s14 + $0x40] sm:$0xff]  ;;  %v7465_v31 = vpack.c.bf16 %v3280_v58, %v3279_v20  ;;  %v7497_v14 = vpack.c.bf16 %v3312_v16, %v3311_v59  ;;  %v3266_v20 = vld [vmem:[%s11150_s14 + $0x58] sm:$0xff]  ;;  %v3297_v58 = vld [vmem:[%s11150_s14 + $0x150] sm:$0xff] }
 0x823   :  { %v7467_v13 = vpack.c.bf16 %v3264_v30, %v3263_v34  ;;  %v3298_v59 = vld [vmem:[%s11150_s14 + $0x158] sm:$0xff]  ;;  %v3284_v34 = vld [vmem:[%s11150_s14 + $0xe8] sm:$0xff]  ;;  %v3315_v30 = vld [vmem:[%s11150_s14 + $0x1e0] sm:$0xff] }
 0x825   :  { %7460 = vmatpush3.bf16.msra.mxu1 %v7459_v48  ;;  %7492 = vmatpush3.bf16.msra.mxu0 %v7491_v23  ;;  %v3282_v48 = vld [vmem:[%s11150_s14 + $0xd8] sm:$0xff]  ;;  %v3313_v23 = vld [vmem:[%s11150_s14 + $0x1d0] sm:$0xff] }
 0x826   :  { %7462 = vmatprep.subr.bf16.mxu1 %v7461_v39  ;;  %7494 = vmatprep.subr.bf16.mxu0 %v7493_v8  ;;  %v7499_v39 = vpack.c.bf16 %v3296_v32, %v3295_v21  ;;  %v3265_v8 = vld [vmem:[%s11150_s14 + $0x50] sm:$0xff]  ;;  %v7469_v5 = vpack.c.bf16 %v3282_v48, %v3281_v29  ;;  %v7501_v10 = vpack.c.bf16 %v3314_v45, %v3313_v23  ;;  %v3267_v21 = vld [vmem:[%s11150_s14 + $0x60] sm:$0xff]  ;;  %v3268_v32 = vld [vmem:[%s11150_s14 + $0x68] sm:$0xff] }
 0x827   :  { %v7471_v16 = vpack.c.bf16 %v3266_v20, %v3265_v8  ;;  %v7475_v48 = vpack.c.bf16 %v3268_v32, %v3267_v21  ;;  %v3299_v23 = vld [vmem:[%s11150_s14 + $0x160] sm:$0xff]  ;;  %v3300_v45 = vld [vmem:[%s11150_s14 + $0x168] sm:$0xff]  ;;  %v3286_v8 = vld [vmem:[%s11150_s14 + $0xf8] sm:$0xff] }
 0x828   :  { %v3318_v20 = vld [vmem:[%s11150_s14 + $0x1f8] sm:$0xff]  ;;  %v3367_v21 = vld [vmem:[%s11150_s14 + $0x380] sm:$0xff] }
 0x829   :  { %7464 = vmatpush3.bf16.msra.mxu1 %v7463_v0  ;;  %7496 = vmatpush3.bf16.msra.mxu0 %v7495_v4  ;;  %v7503_v0 = vpack.c.bf16 %v3298_v59, %v3297_v58  ;;  %v3283_v4 = vld [vmem:[%s11150_s14 + $0xe0] sm:$0xff]  ;;  %v3269_v58 = vld [vmem:[%s11150_s14 + $0x70] sm:$0xff]  ;;  %v3270_v59 = vld [vmem:[%s11150_s14 + $0x78] sm:$0xff] }
 0x82a   :  { %7466 = vmatprep.subr.bf16.mxu1 %v7465_v31  ;;  %7498 = vmatprep.subr.bf16.mxu0 %v7497_v14  ;;  %v7473_v31 = vpack.c.bf16 %v3284_v34, %v3283_v4  ;;  %v3316_v14 = vld [vmem:[%s11150_s14 + $0x1e8] sm:$0xff]  ;;  %v3301_v4 = vld [vmem:[%s11150_s14 + $0x170] sm:$0xff]  ;;  %v3302_v34 = vld [vmem:[%s11150_s14 + $0x178] sm:$0xff] }
 0x82b   :  { %v7505_v29 = vpack.c.bf16 %v3316_v14, %v3315_v30  ;;  %v7511_v30 = vpack.c.bf16 %v3302_v34, %v3301_v4  ;;  %v3336_v14 = vld [vmem:[%s11150_s14 + $0x288] sm:$0xff] }
 0x82c   :  { %v8055_v34 = vld [vmem:[%s11266_s24 + $0x8] sm:$0xff] }
 0x82d   :  { %7468 = vmatpush3.bf16.msra.mxu1 %v7467_v13  ;;  %7500 = vmatpush3.bf16.msra.mxu0 %v7499_v39  ;;  %v7507_v13 = vpack.c.bf16 %v3300_v45, %v3299_v23  ;;  %v3285_v39 = vld [vmem:[%s11150_s14 + $0xf0] sm:$0xff] }
 0x82e   :  { %7470 = vmatprep.subr.bf16.mxu1 %v7469_v5  ;;  %7502 = vmatprep.subr.bf16.mxu0 %v7501_v10  ;;  %v3317_v5 = vld [vmem:[%s11150_s14 + $0x1f0] sm:$0xff]  ;;  %v7477_v10 = vpack.c.bf16 %v3286_v8, %v3285_v39 }
 0x831   :  { %7472 = vmatpush3.bf16.msra.mxu1 %v7471_v16  ;;  %7504 = vmatpush3.bf16.msra.mxu0 %v7503_v0  ;;  %v7509_v16 = vpack.c.bf16 %v3318_v20, %v3317_v5  ;;  %v7479_v0 = vpack.c.bf16 %v3270_v59, %v3269_v58  ;;  %v8052_v5 = vld [vmem:[%s11266_s24] sm:$0xff] }
 0x832   :  { %7474 = vmatprep.subr.bf16.mxu1 %v7473_v31  ;;  %7506 = vmatprep.subr.bf16.mxu0 %v7505_v29  ;;  %v3335_v31 = vld [vmem:[%s11150_s14 + $0x280] sm:$0xff]  ;;  %v3368_v29 = vld [vmem:[%s11150_s14 + $0x388] sm:$0xff] }
 0x833   :  { %v7513_v32 = vpack.c.bf16 %v3336_v14, %v3335_v31  ;;  %v8053_v20 = vld [vmem:[%s11266_s24 + $0x40] sm:$0xff]  ;;  %v8056_v31 = vld [vmem:[%s11266_s24 + $0x50] sm:$0xff] }
 0x835   :  { %7476 = vmatpush3.bf16.msra.mxu1 %v7475_v48  ;;  %7508 = vmatpush3.bf16.msra.mxu0 %v7507_v13  ;;  %v7545_v48 = vpack.c.bf16 %v3368_v29, %v3367_v21  ;;  %v8057_v21 = vld [vmem:[%s11266_s24 + $0x48] sm:$0xff] }
 0x836   :  { %7478 = vmatprep.subr.bf16.mxu1 %v7477_v10  ;;  %7510 = vmatprep.subr.bf16.mxu0 %v7509_v16 }
 0x839   :  { %7480 = vmatpush3.bf16.msra.mxu1 %v7479_v0  ;;  %7512 = vmatpush3.bf16.msra.mxu0 %v7511_v30  ;;  %v8054_v0 = vld [vmem:[%s11266_s24 + $0x10] sm:$0xff] }
 0x83a   :  { %7514 = vmatprep.subr.bf16.mxu1 %v7513_v32  ;;  %7546 = vmatprep.subr.bf16.mxu0 %v7545_v48  ;;  %v8058_v48 = vld [vmem:[%s11266_s24 + $0x18] sm:$0xff] }
 0x86b   :  { %v2519_v23 = vpop.f32.mrb[42].mxu1 }
 0x86c   :  { %v2596_v45 = vpop.f32.mrb[34].mxu0  ;;  %v2521_v13 = vpop.f32.mrb[43].mxu1  ;;  %v2761_v10 = vmul.f32 %v8052_v5, %v2519_v23 }
 0x86d   :  { %v2598_v39 = vpop.f32.mrb[35].mxu0  ;;  %v2763_v4 = vmul.f32 %v8054_v0, %v2596_v45  ;;  %v2762_v30 = vmul.f32 %v8055_v34, %v2521_v13  ;;  %v8059_v13 = vld [vmem:[%s11266_s24 + $0x58] sm:$0xff] }
 0x86e   :  { %v2764_v23 = vmul.f32 %v8058_v48, %v2598_v39  ;;  %v8061_v39 = vld [vmem:[%s11266_s24 + $0x60] sm:$0xff]  ;;  %v8064_v48 = vld [vmem:[%s11266_s24 + $0x70] sm:$0xff] }
 0x86f   :  { %v2525_v8 = vpop.f32.mrb[44].mxu1 }
 0x870   :  { %v2769_v58 = vmul.f32 %v8053_v20, %v2525_v8  ;;  %v2602_v59 = vpop.f32.mrb[36].mxu0  ;;  %v2527_v16 = vpop.f32.mrb[45].mxu1 }
 0x871   :  { %v2771_v14 = vmul.f32 %v8056_v31, %v2602_v59  ;;  %v2770_v32 = vmul.f32 %v8057_v21, %v2527_v16  ;;  %v2604_v29 = vpop.f32.mrb[37].mxu0  ;;  %v8060_v21 = vld [vmem:[%s11266_s24 + $0x20] sm:$0xff] }
 0x872   :  { %v2777_v45 = vadd.f32 %v2769_v58, %v2761_v10  ;;  %v2772_v8 = vmul.f32 %v8059_v13, %v2604_v29  ;;  %v8065_v13 = vld [vmem:[%s11266_s24 + $0x68] sm:$0xff] }
 0x873   :  { %v2791_v5 = vadd.f32 %v2771_v14, %v2763_v4  ;;  %v2784_v20 = vadd.f32 %v2770_v32, %v2762_v30  ;;  %v8062_v4 = vld [vmem:[%s11266_s24 + $0x30] sm:$0xff]  ;;  %v8063_v14 = vld [vmem:[%s11266_s24 + $0x28] sm:$0xff] }
 0x874   :  { %v2798_v59 = vadd.f32 %v2772_v8, %v2764_v23 }
 0x875   :  { %v2792_v55 = vrot.slane %v2791_v5, 4  ;;  %v2785_v43 = vrot.slane %v2784_v20, 4 }
 0x876   :  { %v2799_v2 = vrot.slane %v2798_v59, 4 }
 0x877   :  { %v2786_v53 = vadd.f32 %v2785_v43, %v2784_v20  ;;  %v10043_v20 = vld [vmem:[%s11150_s14 + $0x298] sm:$0xff] }
 0x878   :  { %v2800_v33 = vadd.f32 %v2799_v2, %v2798_v59  ;;  %v10018_v2 = vld [vmem:[%s11150_s14 + $0x200] sm:$0xff]  ;;  %v10048_v59 = vld [vmem:[%s11150_s14 + $0x390] sm:$0xff] }
 0x87b   :  { %v2673_v0 = vpop.f32.mrb[46].mxu1 }
 0x87c   :  { %v2750_v34 = vpop.f32.mrb[38].mxu0  ;;  %v2675_v31 = vpop.f32.mrb[47].mxu1  ;;  %v2765_v7 = vmul.f32 %v8060_v21, %v2673_v0 }
 0x87d   :  { %v2752_v28 = vpop.f32.mrb[39].mxu0  ;;  %v2767_v30 = vmul.f32 %v8062_v4, %v2750_v34  ;;  %v2766_v32 = vmul.f32 %v8063_v14, %v2675_v31  ;;  %v8066_v34 = vld [vmem:[%s11266_s24 + $0x38] sm:$0xff] }
 0x87e   :  { %v8067_v31 = vld [vmem:[%s11266_s24 + $0x78] sm:$0xff] }
 0x87f   :  { %v2679_v16 = vpop.f32.mrb[48].mxu1 }
 0x880   :  { %v2773_v10 = vmul.f32 %v8061_v39, %v2679_v16  ;;  %v2756_v58 = vpop.f32.mrb[40].mxu0  ;;  %v2681_v29 = vpop.f32.mrb[49].mxu1  ;;  %v2768_v16 = vmul.f32 %v8066_v34, %v2752_v28  ;;  %v2787_v28 = vrot.slane %v2786_v53, 2 }
 0x881   :  { %v2775_v23 = vmul.f32 %v8064_v48, %v2756_v58  ;;  %v2774_v8 = vmul.f32 %v8065_v13, %v2681_v29  ;;  %v2758_v0 = vpop.f32.mrb[41].mxu0  ;;  %v2778_v48 = vrot.slane %v2777_v45, 4  ;;  %v2793_v13 = vadd.f32 %v2792_v55, %v2791_v5 }
 0x882   :  { %v2805_v21 = vadd.f32 %v2773_v10, %v2765_v7  ;;  %v2776_v39 = vmul.f32 %v8067_v31, %v2758_v0  ;;  %v2801_v7 = vrot.slane %v2800_v33, 2  ;;  %v2788_v0 = vadd.f32 %v2787_v28, %v2786_v53 }
 0x883   :  { %v2819_v4 = vadd.f32 %v2775_v23, %v2767_v30  ;;  %v2812_v14 = vadd.f32 %v2774_v8, %v2766_v32  ;;  %v2779_v29 = vadd.f32 %v2778_v48, %v2777_v45  ;;  %v2794_v35 = vrot.slane %v2793_v13, 2 }
 0x884   :  { %v2826_v58 = vadd.f32 %v2776_v39, %v2768_v16  ;;  %v2806_v40 = vrot.slane %v2805_v21, 4  ;;  %v2802_v30 = vadd.f32 %v2801_v7, %v2800_v33  ;;  %v2789_v45 = vrot.slane %v2788_v0, 1 }
 0x885   :  { %v2780_v56 = vrot.slane %v2779_v29, 2  ;;  %v2795_v34 = vadd.f32 %v2794_v35, %v2793_v13  ;;  %v2820_v38 = vrot.slane %v2819_v4, 4  ;;  %v2813_v32 = vrot.slane %v2812_v14, 4  ;;  %v10023_v35 = vld [vmem:[%s11150_s14 + $0x208] sm:$0xff] }
 0x886   :  { %v2827_v23 = vrot.slane %v2826_v58, 4  ;;  %v2807_v31 = vadd.f32 %v2806_v40, %v2805_v21  ;;  %v2803_v55 = vrot.slane %v2802_v30, 1  ;;  %v10038_v40 = vld [vmem:[%s11150_s14 + $0x290] sm:$0xff]  ;;  %v10053_v21 = vld [vmem:[%s11150_s14 + $0x398] sm:$0xff] }
 0x887   :  { %v2781_v10 = vadd.f32 %v2780_v56, %v2779_v29  ;;  %v2796_v16 = vrot.slane %v2795_v34, 1  ;;  %v2821_v39 = vadd.f32 %v2820_v38, %v2819_v4  ;;  %v10028_v56 = vld [vmem:[%s11150_s14 + $0x300] sm:$0xff]  ;;  %v10033_v38 = vld [vmem:[%s11150_s14 + $0x308] sm:$0xff]  ;;  %v2814_v33 = vadd.f32 %v2813_v32, %v2812_v14 }
 0x888   :  { %v2828_v53 = vadd.f32 %v2827_v23, %v2826_v58  ;;  %v2790_v58 = vadd.f32 %v2789_v45, %v2788_v0  ;;  %v2804_v48 = vadd.f32 %v2803_v55, %v2802_v30  ;;  %v2808_v29 = vrot.slane %v2807_v31, 2  ;;  %v11400_v30 = vld [vmem:[#allocation58_spill] sm:$0xff]  ;;  %v11401_v55 = vld [vmem:[#allocation67_spill] sm:$0xff] }
 0x889   :  { %v2782_v8 = vrot.slane %v2781_v10, 1  ;;  %v2797_v5 = vadd.f32 %v2796_v16, %v2795_v34  ;;  %v2822_v13 = vrot.slane %v2821_v39, 2  ;;  %v7515_v32 = vpack.c.bf16 %v10023_v35, %v10018_v2  ;;  %v11403_v2 = vld [vmem:[#allocation70_spill] sm:$0xff] }
 0x88a   :  { %v7547_v23 = vpack.c.bf16 %v10033_v38, %v10028_v56  ;;  %v7517_v1 = vpack.c.bf16 %v10043_v20, %v10038_v40  ;;  %v7549_v0 = vpack.c.bf16 %v10053_v21, %v10048_v59  ;;  %v2829_v22 = vrot.slane %v2828_v53, 2 }
 0x88b   :  { %v2783_v43 = vadd.f32 %v2782_v8, %v2781_v10  ;;  %v10067_v38 = vadd.f32 %v2808_v29, %v2807_v31  ;;  %v3321_v31 = vld [vmem:[%s11150_s14 + $0x210] sm:$0xff]  ;;  %v11407_v29 = vld [vmem:[#allocation73_spill] sm:$0xff] }
 0x8de   :  { %v2907_v4 = vpop.f32.mrb[50].mxu1  ;;  %v2984_v14 = vpop.f32.mrb[42].mxu0 }
 0x8df   :  { %v2908_v28 = vadd.f32 %v2907_v4, %v2783_v43  ;;  %v2985_v7 = vadd.f32 %v2984_v14, %v2797_v5  ;;  %v2909_v10 = vpop.f32.mrb[51].mxu1  ;;  %v2986_v34 = vpop.f32.mrb[43].mxu0  ;;  %v2815_v14 = vrot.slane %v2814_v33, 2 }
 0x8e0   :  { %v2910_v8 = vadd.f32 %v2909_v10, %v2790_v58  ;;  %v2987_v16 = vadd.f32 %v2986_v34, %v2804_v48  ;;  %v10069_v10 = vadd.f32 %v2822_v13, %v2821_v39  ;;  %v3322_v39 = vld [vmem:[%s11150_s14 + $0x218] sm:$0xff] }
 0x8e1   :  { %v3207_v45 = vadd.f32 %v11400_v30, %v2908_v28  ;;  %v3209_v4 = vadd.f32 %v11401_v55, %v2985_v7 }
 0x8e2   :  { %v3208_v27 = vadd.f32 %v11402_v44, %v2910_v8  ;;  %v3210_v35 = vadd.f32 %v11403_v2, %v2987_v16  ;;  %v2913_v63 = vpop.f32.mrb[52].mxu1  ;;  %v2990_v56 = vpop.f32.mrb[44].mxu0  ;;  %v11405_v8 = vld [vmem:[#allocation68_spill] sm:$0xff] }
 0x8e3   :  { %v3223_v40 = vmul.f32 0.2, %v3207_v45  ;;  %v3225_v20 = vmul.f32 0.2, %v3209_v4  ;;  %v2914_v34 = vadd.f32 %v2913_v63, %v2783_v43  ;;  %v2991_v59 = vadd.f32 %v2990_v56, %v2797_v5  ;;  %v2915_v21 = vpop.f32.mrb[53].mxu1  ;;  %v2992_v28 = vpop.f32.mrb[45].mxu0 }
 0x8e4   :  { %v3224_v30 = vmul.f32 0.2, %v3208_v27  ;;  %v3226_v7 = vmul.f32 0.2, %v3210_v35  ;;  %v2916_v55 = vadd.f32 %v2915_v21, %v2790_v58  ;;  %v2993_v54 = vadd.f32 %v2992_v28, %v2804_v48  ;;  %v3353_v63 = vld [vmem:[%s11150_s14 + $0x310] sm:$0xff]  ;;  %v11406_v58 = vld [vmem:[#allocation65_spill] sm:$0xff] }
 0x8e5   :  { %v3215_v44 = vadd.f32 %v11404_v3, %v2914_v34  ;;  %v3217_v16 = vadd.f32 %v11405_v8, %v2991_v59  ;;  %v2816_v43 = vadd.f32 %v2815_v14, %v2814_v33  ;;  %v2830_v5 = vadd.f32 %v2829_v22, %v2828_v53  ;;  %v3354_v56 = vld [vmem:[%s11150_s14 + $0x318] sm:$0xff]  ;;  %v3339_v34 = vld [vmem:[%s11150_s14 + $0x2a0] sm:$0xff]  ;;  %v3340_v59 = vld [vmem:[%s11150_s14 + $0x2a8] sm:$0xff] }
 0x8e6   :  { %v3216_v48 = vadd.f32 %v11406_v58, %v2916_v55  ;;  %v3218_v3 = vadd.f32 %v11407_v29, %v2993_v54  ;;  %v3240_v13 = vmax.f32 %v3208_v27, %v3224_v30  ;;  %v3242_v2 = vmax.f32 %v3210_v35, %v3226_v7  ;;  %v3371_v35 = vld [vmem:[%s11150_s14 + $0x3a0] sm:$0xff]  ;;  %v3372_v28 = vld [vmem:[%s11150_s14 + $0x3a8] sm:$0xff] }
 0x8e7   :  { %v3239_v33 = vmax.f32 %v3207_v45, %v3223_v40  ;;  %v3241_v22 = vmax.f32 %v3209_v4, %v3225_v20  ;;  %v3231_v53 = vmul.f32 0.2, %v3215_v44  ;;  %v3233_v14 = vmul.f32 0.2, %v3217_v16  ;;  %v3323_v30 = vld [vmem:[%s11150_s14 + $0x220] sm:$0xff]  ;;  %v3324_v7 = vld [vmem:[%s11150_s14 + $0x228] sm:$0xff] }
 0x8e8   :  { %v3232_v21 = vmul.f32 0.2, %v3216_v48  ;;  %v3234_v54 = vmul.f32 0.2, %v3218_v3  ;;  %3447 = vmatprep.mubr.f32.mxu1 %v3240_v13  ;;  %3522 = vmatprep.mubr.f32.mxu0 %v3242_v2  ;;  %v7519_v27 = vpack.c.bf16 %v3322_v39, %v3321_v31  ;;  %v2810_v45 = vrot.slane %v10067_v38, 1  ;;  %v3355_v58 = vld [vmem:[%s11150_s14 + $0x320] sm:$0xff] }
 0x8e9   :  { %3448 = vmatmul.mubr.f32.vlgmr.msra.gmra.mrb[58].mxu1 %v3239_v33  ;;  %3523 = vmatmul.mubr.f32.vlgmr.msra.gmra.mrb[50].mxu0 %v3241_v22  ;;  %v2824_v4 = vrot.slane %v10069_v10, 1  ;;  %v7551_v40 = vpack.c.bf16 %v3354_v56, %v3353_v63  ;;  %v7521_v20 = vpack.c.bf16 %v3340_v59, %v3339_v34  ;;  %v2817_v31 = vrot.slane %v2816_v43, 1  ;;  %v3356_v63 = vld [vmem:[%s11150_s14 + $0x328] sm:$0xff]  ;;  %v3325_v56 = vld [vmem:[%s11150_s14 + $0x230] sm:$0xff] }
 0x8ea   :  { %7516 = vmatpush3.bf16.msra.mxu1 %v7515_v32  ;;  %7548 = vmatpush3.bf16.msra.mxu0 %v7547_v23  ;;  %v3248_v55 = vmax.f32 %v3216_v48, %v3232_v21  ;;  %v3250_v8 = vmax.f32 %v3218_v3, %v3234_v54  ;;  %v2831_v39 = vrot.slane %v2830_v5, 1  ;;  %v3247_v29 = vmax.f32 %v3215_v44, %v3231_v53  ;;  %v3341_v32 = vld [vmem:[%s11150_s14 + $0x2b0] sm:$0xff]  ;;  %v3342_v23 = vld [vmem:[%s11150_s14 + $0x2b8] sm:$0xff] }
 0x8eb   :  { %7518 = vmatprep.subr.bf16.mxu1 %v7517_v1  ;;  %7550 = vmatprep.subr.bf16.mxu0 %v7549_v0  ;;  %v3249_v13 = vmax.f32 %v3217_v16, %v3233_v14  ;;  %v7553_v2 = vpack.c.bf16 %v3372_v28, %v3371_v35  ;;  %v7523_v48 = vpack.c.bf16 %v3324_v7, %v3323_v30  ;;  %v3373_v3 = vld [vmem:[%s11150_s14 + $0x3b0] sm:$0xff]  ;;  %v3374_v1 = vld [vmem:[%s11150_s14 + $0x3b8] sm:$0xff]  ;;  %v3344_v28 = vld [vmem:[%s11150_s14 + $0x2c8] sm:$0xff] }
 0x8ec   :  { %3452 = vmatprep.mubr.f32.mxu1 %v3248_v55  ;;  %3527 = vmatprep.mubr.f32.mxu0 %v3250_v8  ;;  %v2811_v0 = vadd.f32 %v2810_v45, %v10067_v38  ;;  %v2825_v44 = vadd.f32 %v2824_v4, %v10069_v10  ;;  %v7555_v16 = vpack.c.bf16 %v3356_v63, %v3355_v58  ;;  %v3326_v38 = vld [vmem:[%s11150_s14 + $0x238] sm:$0xff]  ;;  %v3357_v10 = vld [vmem:[%s11150_s14 + $0x330] sm:$0xff]  ;;  %v3327_v58 = vld [vmem:[%s11150_s14 + $0x240] sm:$0xff] }
 0x8ed   :  { %3453 = vmatmul.mubr.f32.gmra.mrb[60].mxu1 %v3247_v29  ;;  %3528 = vmatmul.mubr.f32.gmra.mrb[52].mxu0 %v3249_v13  ;;  %v2818_v33 = vadd.f32 %v2817_v31, %v2816_v43  ;;  %v2832_v22 = vadd.f32 %v2831_v39, %v2830_v5  ;;  %v7525_v53 = vpack.c.bf16 %v3342_v23, %v3341_v32  ;;  %v3358_v14 = vld [vmem:[%s11150_s14 + $0x338] sm:$0xff]  ;;  %v3343_v5 = vld [vmem:[%s11150_s14 + $0x2c0] sm:$0xff]  ;;  %v11410_v63 = vld [vmem:[#allocation30_spill] sm:$0xff] }
 0x8ee   :  { %v3061_v34 = vpop.f32.mrb[54].mxu1  ;;  %v3138_v59 = vpop.f32.mrb[46].mxu0  ;;  %7520 = vmatpush3.bf16.msra.mxu1 %v7519_v27  ;;  %7552 = vmatpush3.bf16.msra.mxu0 %v7551_v40  ;;  %v7557_v43 = vpack.c.bf16 %v3374_v1, %v3373_v3  ;;  %v3375_v40 = vld [vmem:[%s11150_s14 + $0x3c0] sm:$0xff]  ;;  %v11408_v30 = vld [vmem:[#allocation27_spill] sm:$0xff]  ;;  %v7527_v31 = vpack.c.bf16 %v3326_v38, %v3325_v56  ;;  %v7559_v39 = vpack.c.bf16 %v3358_v14, %v3357_v10  ;;  %v3328_v1 = vld [vmem:[%s11150_s14 + $0x248] sm:$0xff] }
 0x8ef   :  { %v3062_v21 = vadd.f32 %v3061_v34, %v2811_v0  ;;  %v3139_v54 = vadd.f32 %v3138_v59, %v2825_v44  ;;  %v3063_v35 = vpop.f32.mrb[55].mxu1  ;;  %v3140_v27 = vpop.f32.mrb[47].mxu0  ;;  %7522 = vmatprep.subr.bf16.mxu1 %v7521_v20  ;;  %7554 = vmatprep.subr.bf16.mxu0 %v7553_v2  ;;  %v3376_v20 = vld [vmem:[%s11150_s14 + $0x3c8] sm:$0xff]  ;;  %v11409_v55 = vld [vmem:[#allocation75_spill] sm:$0xff]  ;;  %v7529_v3 = vpack.c.bf16 %v3344_v28, %v3343_v5  ;;  %v3359_v56 = vld [vmem:[%s11150_s14 + $0x340] sm:$0xff] }
 0x8f0   :  { %v3064_v45 = vadd.f32 %v3063_v35, %v2818_v33  ;;  %v3141_v4 = vadd.f32 %v3140_v27, %v2832_v22  ;;  %v11411_v13 = vld [vmem:[#allocation77_spill] sm:$0xff]  ;;  %v11413_v28 = vld [vmem:[#allocation79_spill] sm:$0xff] }
 0x8f1   :  { %v10152_v7 = vadd.f32 %v11408_v30, %v3062_v21  ;;  %v10155_v8 = vadd.f32 %v11409_v55, %v3139_v54  ;;  %v3360_v34 = vld [vmem:[%s11150_s14 + $0x348] sm:$0xff]  ;;  %v3346_v21 = vld [vmem:[%s11150_s14 + $0x2d8] sm:$0xff] }
 0x8f2   :  { %v3212_v29 = vadd.f32 %v11410_v63, %v3064_v45  ;;  %v3214_v2 = vadd.f32 %v11411_v13, %v3141_v4  ;;  %v3067_v32 = vpop.f32.mrb[56].mxu1  ;;  %v3144_v23 = vpop.f32.mrb[48].mxu0  ;;  %7524 = vmatpush3.bf16.msra.mxu1 %v7523_v48  ;;  %7556 = vmatpush3.bf16.msra.mxu0 %v7555_v16  ;;  %v7561_v48 = vpack.c.bf16 %v3376_v20, %v3375_v40  ;;  %v3345_v16 = vld [vmem:[%s11150_s14 + $0x2d0] sm:$0xff]  ;;  %v11414_v20 = vld [vmem:[#allocation36_spill] sm:$0xff] }
 0x8f3   :  { %v3068_v59 = vadd.f32 %v3067_v32, %v2811_v0  ;;  %v3145_v38 = vadd.f32 %v3144_v23, %v2825_v44  ;;  %v3069_v10 = vpop.f32.mrb[57].mxu1  ;;  %v3146_v14 = vpop.f32.mrb[49].mxu0  ;;  %7526 = vmatprep.subr.bf16.mxu1 %v7525_v53  ;;  %7558 = vmatprep.subr.bf16.mxu0 %v7557_v43  ;;  %v3377_v0 = vld [vmem:[%s11150_s14 + $0x3d0] sm:$0xff]  ;;  %v3378_v44 = vld [vmem:[%s11150_s14 + $0x3d8] sm:$0xff]  ;;  %v11412_v53 = vld [vmem:[#allocation33_spill] sm:$0xff]  ;;  %v7531_v4 = vpack.c.bf16 %v3328_v1, %v3327_v58 }
 0x8f4   :  { %v3228_v54 = vmul.f32 0.2, %v3212_v29  ;;  %v3230_v35 = vmul.f32 0.2, %v3214_v2  ;;  %v3070_v27 = vadd.f32 %v3069_v10, %v2818_v33  ;;  %v3147_v5 = vadd.f32 %v3146_v14, %v2832_v22  ;;  %v11415_v33 = vld [vmem:[#allocation81_spill] sm:$0xff]  ;;  %v3329_v63 = vld [vmem:[%s11150_s14 + $0x250] sm:$0xff] }
 0x8f5   :  { %v10184_v43 = vadd.f32 %v11412_v53, %v3068_v59  ;;  %v10187_v45 = vadd.f32 %v11413_v28, %v3145_v38  ;;  %v7563_v40 = vpack.c.bf16 %v3360_v34, %v3359_v56  ;;  %v3330_v13 = vld [vmem:[%s11150_s14 + $0x258] sm:$0xff]  ;;  %v7533_v58 = vpack.c.bf16 %v3346_v21, %v3345_v16  ;;  %v3361_v1 = vld [vmem:[%s11150_s14 + $0x350] sm:$0xff]  ;;  %v3331_v59 = vld [vmem:[%s11150_s14 + $0x260] sm:$0xff] }
 0x8f6   :  { %v10190_v30 = vadd.f32 %v11414_v20, %v3070_v27  ;;  %v10193_v22 = vadd.f32 %v11415_v33, %v3147_v5  ;;  %7528 = vmatpush3.bf16.msra.mxu1 %v7527_v31  ;;  %7560 = vmatpush3.bf16.msra.mxu0 %v7559_v39  ;;  %v3244_v55 = vmax.f32 %v3212_v29, %v3228_v54  ;;  %v3362_v31 = vld [vmem:[%s11150_s14 + $0x358] sm:$0xff]  ;;  %v3347_v39 = vld [vmem:[%s11150_s14 + $0x2e0] sm:$0xff]  ;;  %v3348_v29 = vld [vmem:[%s11150_s14 + $0x2e8] sm:$0xff] }
 0x8f7   :  { %v3246_v32 = vmax.f32 %v3214_v2, %v3230_v35  ;;  %7530 = vmatprep.subr.bf16.mxu1 %v7529_v3  ;;  %7562 = vmatprep.subr.bf16.mxu0 %v7561_v48  ;;  %v7565_v23 = vpack.c.bf16 %v3378_v44, %v3377_v0  ;;  %v3379_v2 = vld [vmem:[%s11150_s14 + $0x3e0] sm:$0xff]  ;;  %v3380_v3 = vld [vmem:[%s11150_s14 + $0x3e8] sm:$0xff]  ;;  %v7535_v56 = vpack.c.bf16 %v3330_v13, %v3329_v63  ;;  %v3349_v21 = vld [vmem:[%s11150_s14 + $0x2f0] sm:$0xff]  ;;  %v3227_v63 = vmul.f32 0.2, %v10152_v7 }
 0x8f8   :  { %3597 = vmatprep.mubr.f32.mxu1 %v3244_v55  ;;  %v7567_v34 = vpack.c.bf16 %v3362_v31, %v3361_v1  ;;  %v3332_v38 = vld [vmem:[%s11150_s14 + $0x268] sm:$0xff]  ;;  %v7537_v10 = vpack.c.bf16 %v3348_v29, %v3347_v39  ;;  %v7569_v14 = vpack.c.bf16 %v3380_v3, %v3379_v2  ;;  %v3363_v48 = vld [vmem:[%s11150_s14 + $0x360] sm:$0xff]  ;;  %v3350_v54 = vld [vmem:[%s11150_s14 + $0x2f8] sm:$0xff]  ;;  %v3229_v13 = vmul.f32 0.2, %v10155_v8 }
 0x8f9   :  { %3672 = vmatprep.mubr.f32.mxu0 %v3246_v32  ;;  %v3364_v16 = vld [vmem:[%s11150_s14 + $0x368] sm:$0xff]  ;;  %v3381_v35 = vld [vmem:[%s11150_s14 + $0x3f0] sm:$0xff]  ;;  %v3382_v27 = vld [vmem:[%s11150_s14 + $0x3f8] sm:$0xff]  ;;  %v7539_v5 = vpack.c.bf16 %v3332_v38, %v3331_v59  ;;  %v7541_v53 = vpack.c.bf16 %v3350_v54, %v3349_v21  ;;  %v3236_v32 = vmul.f32 0.2, %v10190_v30 }
 0x8fa   :  { %7532 = vmatpush3.bf16.msra.mxu1 %v7531_v4  ;;  %7564 = vmatpush3.bf16.msra.mxu0 %v7563_v40  ;;  %v7571_v0 = vpack.c.bf16 %v3364_v16, %v3363_v48  ;;  %v3333_v44 = vld [vmem:[%s11150_s14 + $0x270] sm:$0xff]  ;;  %v7573_v28 = vpack.c.bf16 %v3382_v27, %v3381_v35  ;;  %v3334_v4 = vld [vmem:[%s11150_s14 + $0x278] sm:$0xff]  ;;  %v3245_v1 = vmax.f32 %v10155_v8, %v3229_v13  ;;  %v3235_v31 = vmul.f32 0.2, %v10184_v43 }
 0x8fb   :  { %7534 = vmatprep.subr.bf16.mxu1 %v7533_v58  ;;  %7566 = vmatprep.subr.bf16.mxu0 %v7565_v23  ;;  %v3365_v40 = vld [vmem:[%s11150_s14 + $0x370] sm:$0xff]  ;;  %v3366_v20 = vld [vmem:[%s11150_s14 + $0x378] sm:$0xff]  ;;  %v7543_v33 = vpack.c.bf16 %v3334_v4, %v3333_v44  ;;  %v3238_v58 = vmul.f32 0.2, %v10193_v22  ;;  %v3243_v23 = vmax.f32 %v10152_v7, %v3227_v63  ;;  %v3237_v39 = vmul.f32 0.2, %v10187_v45 }
 0x8fc   :  { %v7575_v55 = vpack.c.bf16 %v3366_v20, %v3365_v40  ;;  %v3252_v29 = vmax.f32 %v10190_v30, %v3236_v32  ;;  %v3251_v7 = vmax.f32 %v10184_v43, %v3235_v31 }
 0x8fd   :  { %v3254_v2 = vmax.f32 %v10193_v22, %v3238_v58  ;;  %v3253_v8 = vmax.f32 %v10187_v45, %v3237_v39 }
 0x8fe   :  { %7536 = vmatpush3.bf16.msra.mxu1 %v7535_v56  ;;  %7568 = vmatpush3.bf16.msra.mxu0 %v7567_v34 }
 0x8ff   :  { %7538 = vmatprep.subr.bf16.mxu1 %v7537_v10  ;;  %7570 = vmatprep.subr.bf16.mxu0 %v7569_v14 }
 0x902   :  { %7540 = vmatpush3.bf16.msra.mxu1 %v7539_v5  ;;  %7572 = vmatpush3.bf16.msra.mxu0 %v7571_v0 }
 0x903   :  { %7542 = vmatprep.subr.bf16.mxu1 %v7541_v53  ;;  %7574 = vmatprep.subr.bf16.mxu0 %v7573_v28 }
 0x906   :  { %7544 = vmatpush3.bf16.msra.mxu1 %v7543_v33  ;;  %7576 = vmatpush3.bf16.msra.mxu0 %v7575_v55 }
 0x907   :  { %7578 = vmatprep.subr.bf16.mxu1 %v9678_v11 }
 0x909   :  { %3598 = vmatmul.mubr.f32.vlgmr.msra.gmra.mrb[62].mxu1 %v3243_v23  ;;  %3673 = vmatmul.mubr.f32.vlgmr.msra.gmra.mrb[54].mxu0 %v3245_v1 }
 0x90a   :  { %3602 = vmatprep.mubr.f32.mxu1 %v3252_v29  ;;  %3677 = vmatprep.mubr.f32.mxu0 %v3254_v2 }
 0x90b   :  { %7580 = vmatpush3.bf16.msra.mxu1 %v9678_v11 }
 0x90d   :  { %3603 = vmatmul.mubr.f32.gmra.mrb[64].mxu1 %v3251_v7  ;;  %3678 = vmatmul.mubr.f32.gmra.mrb[56].mxu0 %v3253_v8 }
 0x9bc   :  { %v6538_v3 = vpop.f32.mrb[58].mxu1  ;;  %v6576_v56 = vpop.f32.mrb[50].mxu0 }
 0x9bd   :  { %v6539_v34 = vpop.f32.mrb[59].mxu1  ;;  %v6577_v59 = vpop.f32.mrb[51].mxu0 }
 0x9be   :  { %v6540_v38 = vadd.f32 %v6539_v34, %v6538_v3  ;;  %v6578_v30 = vadd.f32 %v6577_v59, %v6576_v56 }
 0x9c0   :  { %v3525_v10 = vadd.f32 %v6578_v30, %v6540_v38  ;;  %v6541_v22 = vpop.f32.mrb[60].mxu1  ;;  %v6579_v14 = vpop.f32.mrb[52].mxu0 }
 0x9c1   :  { %v6542_v48 = vpop.f32.mrb[61].mxu1  ;;  %v6580_v16 = vpop.f32.mrb[53].mxu0 }
 0x9c2   :  { %v6543_v21 = vadd.f32 %v6542_v48, %v6541_v22  ;;  %v6581_v54 = vadd.f32 %v6580_v16, %v6579_v14 }
 0x9c4   :  { %v3530_v11 = vadd.f32 %v6581_v54, %v6543_v21 }
 0x9dc   :  { %v6614_v35 = vpop.f32.mrb[62].mxu1  ;;  %v6652_v43 = vpop.f32.mrb[54].mxu0 }
 0x9dd   :  { %v6615_v27 = vpop.f32.mrb[63].mxu1  ;;  %v6653_v45 = vpop.f32.mrb[55].mxu0 }
 0x9de   :  { %v6616_v5 = vadd.f32 %v6615_v27, %v6614_v35  ;;  %v6654_v0 = vadd.f32 %v6653_v45, %v6652_v43 }
 0x9e0   :  { %v3600_v44 = vadd.f32 %v6616_v5, %v3525_v10  ;;  %v6617_v53 = vpop.f32.mrb[64].mxu1  ;;  %v6655_v28 = vpop.f32.mrb[56].mxu0 }
 0x9e1   :  { %v6618_v4 = vpop.f32.mrb[65].mxu1  ;;  %v6656_v40 = vpop.f32.mrb[57].mxu0 }
 0x9e2   :  { %v3675_v20 = vadd.f32 %v6654_v0, %v3600_v44  ;;  %v6619_v33 = vadd.f32 %v6618_v4, %v6617_v53  ;;  %v6657_v55 = vadd.f32 %v6656_v40, %v6655_v28 }
 0x9e4   :  { %v3605_v63 = vadd.f32 %v6619_v33, %v3530_v11  ;;  %v3788_v13 = vadd.f32 %v3675_v20, %v9513_v41  ;;  %v3911_v29 = vadd.f32 %v3675_v20, %v9515_v19  ;;  %v4034_v3 = vadd.f32 %v3675_v20, %v9530_v6 }
 0x9e6   :  { %v3680_v32 = vadd.f32 %v6657_v55, %v3605_v63  ;;  %v3790_v58 = vsel %vm1926_vm3, %v3788_v13, -inf  ;;  %v3913_v7 = vsel %vm2056_vm4, %v3911_v29, -inf  ;;  %v4036_v56 = vsel %vm2186_vm5, %v4034_v3, -inf }
 0x9e7   :  { %3791 = vmax.xlane.f32.xlu1 %v3790_v58 }
 0x9e8   :  { %v3789_v23 = vadd.f32 %v3680_v32, %v9517_v25  ;;  %v3912_v1 = vadd.f32 %v3680_v32, %v9523_v18  ;;  %v4035_v2 = vadd.f32 %v3680_v32, %v9540_v24  ;;  %v3684_v55 = vadd.f32 %v3680_v32, %v9186_v42 }
 0x9ea   :  { %v3793_v31 = vsel %vm1926_vm3, %v3789_v23, -inf  ;;  %v3916_v39 = vsel %vm2056_vm4, %v3912_v1, -inf  ;;  %v4039_v8 = vsel %vm2186_vm5, %v4035_v2, -inf  ;;  %v3688_v63 = vsel %vm167_vm0, %v3684_v55, -inf }
 0x9eb   :  { %3794 = vmax.xlane.f32.xlu0 %v3793_v31  ;;  %3917 = vmax.xlane.f32.xlu1 %v3916_v39 }
 0x9ef   :  { %3914 = vmax.xlane.f32.xlu0 %v3913_v7  ;;  %4040 = vmax.xlane.f32.xlu1 %v4039_v8 }
 0x9f3   :  { %4037 = vmax.xlane.f32.xlu0 %v4036_v56 }
 0xa74   :  { %v3792_v34 = vpop.xlane.xlu1 %3791 }
 0xa75   :  { %v3796_v59 = vsub.f32 %v3788_v13, %v3792_v34  ;;  %v3683_v13 = vadd.f32 %v3675_v20, %v9180_v50 }
 0xa77   :  { %v3798_v38 = vmul.f32 1.442695, %v3796_v59  ;;  %v3685_v58 = vsel %vm167_vm0, %v3683_v13, -inf }
 0xa78   :  { %v3795_v30 = vpop.xlane.xlu0 %3794  ;;  %v3918_v10 = vpop.xlane.xlu1 %3917 }
 0xa79   :  { %7984 = vpow2.f32 %v3798_v38  ;;  %v3797_v22 = vsub.f32 %v3789_v23, %v3795_v30  ;;  %v3920_v14 = vsub.f32 %v3912_v1, %v3918_v10 }
 0xa7b   :  { %v3800_v48 = vmul.f32 1.442695, %v3797_v22  ;;  %v3923_v16 = vmul.f32 1.442695, %v3920_v14 }
 0xa7c   :  { %v3915_v21 = vpop.xlane.xlu0 %3914  ;;  %v4041_v54 = vpop.xlane.xlu1 %4040 }
 0xa7d   :  { %7986 = vpow2.f32 %v3800_v48  ;;  %v3919_v11 = vsub.f32 %v3911_v29, %v3915_v21  ;;  %v4043_v35 = vsub.f32 %v4035_v2, %v4041_v54 }
 0xa7e   :  { %7988 = vpow2.f32 %v3923_v16 }
 0xa7f   :  { %v3921_v43 = vmul.f32 1.442695, %v3919_v11  ;;  %v4046_v27 = vmul.f32 1.442695, %v4043_v35 }
 0xa80   :  { %v4038_v45 = vpop.xlane.xlu0 %4037 }
 0xa81   :  { %7990 = vpow2.f32 %v3921_v43  ;;  %v4042_v5 = vsub.f32 %v4034_v3, %v4038_v45 }
 0xa82   :  { %7992 = vpow2.f32 %v4046_v27 }
 0xa83   :  { %v10281_v0 = vpop.eup %7984  ;;  %v4044_v44 = vmul.f32 1.442695, %v4042_v5 }
 0xa84   :  { %3804 = vrot.lane.b32.xlu0 %v10281_v0, %s8113_s9 }
 0xa85   :  { %7994 = vpow2.f32 %v4044_v44 }
 0xa87   :  { %v10285_v53 = vpop.eup %7986 }
 0xa88   :  { %v10287_v28 = vpop.eup %7988  ;;  %3806 = vrot.lane.b32.xlu1 %v10285_v53, %s8113_s9 }
 0xa89   :  { %3929 = vrot.lane.b32.xlu0 %v10287_v28, %s8114_s7 }
 0xa8b   :  { %v10293_v4 = vpop.eup %7990 }
 0xa8c   :  { %v10295_v40 = vpop.eup %7992  ;;  %3927 = vrot.lane.b32.xlu1 %v10293_v4, %s8114_s7 }
 0xa8d   :  { %4052 = vrot.lane.b32.xlu0 %v10295_v40, %s8115_s28 }
 0xa8f   :  { %v10301_v33 = vpop.eup %7994 }
 0xa90   :  { %4050 = vrot.lane.b32.xlu1 %v10301_v33, %s8115_s28 }
 0xaac   :  { %3689 = vmax.xlane.f32.xlu0 %v3688_v63 }
 0xab4   :  { %3686 = vmax.xlane.f32.xlu1 %v3685_v58 }
 0xaf6   :  { %v3805_v23 = vpop.permute.xlu0 %3804 }
 0xaf7   :  { %v3810_v1 = vsel %vm167_vm0, %v3805_v23, 0.0 }
 0xaf8   :  { %3811 = vadd.xlane.f32.xlu0 %v3810_v1 }
 0xafa   :  { %v3807_v31 = vpop.permute.xlu1 %3806 }
 0xafb   :  { %v3930_v39 = vpop.permute.xlu0 %3929  ;;  %v3813_v29 = vsel %vm167_vm0, %v3807_v31, 0.0 }
 0xafc   :  { %3814 = vadd.xlane.f32.xlu1 %v3813_v29  ;;  %v3936_v7 = vsel %vm167_vm0, %v3930_v39, 0.0 }
 0xafe   :  { %v3928_v2 = vpop.permute.xlu1 %3927 }
 0xaff   :  { %v3933_v32 = vsel %vm167_vm0, %v3928_v2, 0.0  ;;  %v4053_v8 = vpop.permute.xlu0 %4052 }
 0xb00   :  { %3934 = vadd.xlane.f32.xlu0 %v3933_v32  ;;  %3937 = vadd.xlane.f32.xlu1 %v3936_v7  ;;  %v4059_v56 = vsel %vm167_vm0, %v4053_v8, 0.0 }
 0xb02   :  { %v4051_v20 = vpop.permute.xlu1 %4050 }
 0xb03   :  { %v4056_v3 = vsel %vm167_vm0, %v4051_v20, 0.0 }
 0xb04   :  { %4057 = vadd.xlane.f32.xlu0 %v4056_v3  ;;  %4060 = vadd.xlane.f32.xlu1 %v4059_v56 }
 0xb39   :  { %v3690_v34 = vpop.xlane.xlu0 %3689 }
 0xb3a   :  { %v3692_v59 = vsub.f32 %v3684_v55, %v3690_v34 }
 0xb3c   :  { %v3695_v38 = vmul.f32 1.442695, %v3692_v59 }
 0xb3e   :  { %7996 = vpow2.f32 %v3695_v38 }
 0xb41   :  { %v3687_v30 = vpop.xlane.xlu1 %3686 }
 0xb42   :  { %v3691_v10 = vsub.f32 %v3683_v13, %v3687_v30 }
 0xb44   :  { %v3693_v22 = vmul.f32 1.442695, %v3691_v10 }
 0xb46   :  { %7998 = vpow2.f32 %v3693_v22 }
 0xb48   :  { %v7997_v14 = vpop.eup %7996 }
 0xb49   :  { %v3700_v48 = vsel %vm167_vm0, %v7997_v14, 0.0 }
 0xb4a   :  { %3701 = vadd.xlane.f32.xlu1 %v3700_v48 }
 0xb50   :  { %v7999_v16 = vpop.eup %7998 }
 0xb51   :  { %v3697_v21 = vsel %vm167_vm0, %v7999_v16, 0.0 }
 0xb52   :  { %3698 = vadd.xlane.f32.xlu0 %v3697_v21 }
 0xb5b   :  { %7928 = vrot.lane.b32.xlu1 %v9680_v26, %s8114_s7 }
 0xb68   :  { %7923 = vrot.lane.b32.xlu0 %v9680_v26, %s8113_s9 }
 0xb85   :  { %v3812_v54 = vpop.xlane.xlu0 %3811 }
 0xb86   :  { %8000 = vrcp.f32 %v3812_v54 }
 0xb89   :  { %v3815_v11 = vpop.xlane.xlu1 %3814 }
 0xb8a   :  { %8002 = vrcp.f32 %v3815_v11 }
 0xb8d   :  { %v3935_v35 = vpop.xlane.xlu0 %3934  ;;  %v3938_v43 = vpop.xlane.xlu1 %3937 }
 0xb8e   :  { %8004 = vrcp.f32 %v3935_v35 }
 0xb8f   :  { %8006 = vrcp.f32 %v3938_v43  ;;  %v4198_v43 = vld [vmem:[%s11152_s16] sm:$0xff] }
 0xb90   :  { %v8001_v27 = vpop.eup %8000 }
 0xb91   :  { %v4058_v45 = vpop.xlane.xlu0 %4057  ;;  %v4061_v5 = vpop.xlane.xlu1 %4060  ;;  %v3818_v44 = vmul.f32 %v8001_v27, %v10281_v0  ;;  %v4199_v27 = vld [vmem:[%s11152_s16 + $0x8] sm:$0xff] }
 0xb92   :  { %8008 = vrcp.f32 %v4058_v45  ;;  %v7593_v45 = vpack.c.bf16 %v4199_v27, %v4198_v43 }
 0xb93   :  { %8010 = vrcp.f32 %v4061_v5  ;;  %3822 = vrot.lane.b32.xlu1 %v3818_v44, %s8113_s9  ;;  %v4200_v5 = vld [vmem:[%s11152_s16 + $0x10] sm:$0xff]  ;;  %v4201_v44 = vld [vmem:[%s11152_s16 + $0x18] sm:$0xff] }
 0xb94   :  { %v8003_v55 = vpop.eup %8002  ;;  %7594 = vmatprep.subr.bf16.mxu0 %v7593_v45 }
 0xb95   :  { %v3819_v63 = vmul.f32 %v8003_v55, %v10285_v53  ;;  %7596 = vmatpush3.bf16.msra.mxu0 %v7593_v45  ;;  %v7597_v55 = vpack.c.bf16 %v4201_v44, %v4200_v5 }
 0xb97   :  { %7933 = vrot.lane.b32.xlu1 %v9680_v26, %s8115_s28  ;;  %3824 = vrot.lane.b32.xlu0 %v3819_v63, %s8113_s9  ;;  %v4202_v63 = vld [vmem:[%s11152_s16 + $0x20] sm:$0xff] }
 0xb98   :  { %v8005_v13 = vpop.eup %8004  ;;  %7598 = vmatprep.subr.bf16.mxu0 %v7597_v55 }
 0xb99   :  { %v8007_v58 = vpop.eup %8006  ;;  %v3941_v23 = vmul.f32 %v8005_v13, %v10293_v4  ;;  %7600 = vmatpush3.bf16.msra.mxu0 %v7597_v55  ;;  %v4203_v13 = vld [vmem:[%s11152_s16 + $0x28] sm:$0xff] }
 0xb9a   :  { %v3942_v1 = vmul.f32 %v8007_v58, %v10287_v28  ;;  %v7601_v58 = vpack.c.bf16 %v4203_v13, %v4202_v63  ;;  %v11420_v55 = vld [vmem:[#allocation38_spill] sm:$0xff]  ;;  %v11421_v63 = vld [vmem:[#allocation39_spill] sm:$0xff]  ;;  %v11422_v13 = vld [vmem:[#allocation40_spill] sm:$0xff] }
 0xb9b   :  { %3945 = vrot.lane.b32.xlu0 %v3941_v23, %s8114_s7  ;;  %v4204_v23 = vld [vmem:[%s11152_s16 + $0x30] sm:$0xff] }
 0xb9c   :  { %v8009_v0 = vpop.eup %8008  ;;  %3947 = vrot.lane.b32.xlu1 %v3942_v1, %s8114_s7  ;;  %7602 = vmatprep.subr.bf16.mxu0 %v7601_v58  ;;  %v4205_v1 = vld [vmem:[%s11152_s16 + $0x38] sm:$0xff] }
 0xb9d   :  { %v8011_v31 = vpop.eup %8010  ;;  %v4064_v39 = vmul.f32 %v8009_v0, %v10301_v33  ;;  %7604 = vmatpush3.bf16.msra.mxu0 %v7601_v58  ;;  %v7605_v0 = vpack.c.bf16 %v4205_v1, %v4204_v23  ;;  %v11423_v58 = vld [vmem:[#allocation41_spill] sm:$0xff]  ;;  %v11424_v23 = vld [vmem:[#allocation44_spill] sm:$0xff] }
 0xb9e   :  { %v4065_v53 = vmul.f32 %v8011_v31, %v10295_v40  ;;  %v11425_v1 = vld [vmem:[#allocation45_spill] sm:$0xff] }
 0xb9f   :  { %4068 = vrot.lane.b32.xlu0 %v4064_v39, %s8115_s28  ;;  %7606 = vmatprep.subr.bf16.mxu0 %v7605_v0 }
 0xba0   :  { %4070 = vrot.lane.b32.xlu1 %v4065_v53, %s8115_s28 }
 0xba1   :  { %7608 = vmatpush3.bf16.msra.mxu0 %v7605_v0  ;;  %v11426_v0 = vld [vmem:[#allocation46_spill] sm:$0xff] }
 0xba2   :  { %7626 = vmatprep.subr.bf16.mxu0 %v11377_v61 }
 0xbd7   :  { %v3702_v26 = vpop.xlane.xlu1 %3701 }
 0xbd8   :  { %8012 = vrcp.f32 %v3702_v26 }
 0xbdb   :  { %v7929_v7 = vpop.permute.xlu1 %7928 }
 0xbdc   :  { %v7931_v3 = vunpack.i.h.bf16 %v7929_v7  ;;  %v7930_v33 = vunpack.i.l.bf16 %v7929_v7 }
 0xbde   :  { %v7585_v34 = vpack.c.bf16 %v7931_v3, %v7930_v33 }
 0xbdf   :  { %v3699_v29 = vpop.xlane.xlu0 %3698 }
 0xbe0   :  { %8014 = vrcp.f32 %v3699_v29 }
 0xbe2   :  { %v8013_v8 = vpop.eup %8012 }
 0xbe3   :  { %v7924_v4 = vpop.permute.xlu0 %7923  ;;  %v3706_v40 = vmul.f32 %v8013_v8, %v7997_v14 }
 0xbe4   :  { %v7926_v28 = vunpack.i.h.bf16 %v7924_v4  ;;  %v7925_v2 = vunpack.i.l.bf16 %v7924_v4 }
 0xbe6   :  { %v7581_v32 = vpack.c.bf16 %v7926_v28, %v7925_v2 }
 0xbe8   :  { %7582 = vmatprep.subr.bf16.mxu1 %v7581_v32 }
 0xbea   :  { %v8015_v20 = vpop.eup %8014 }
 0xbeb   :  { %v3705_v56 = vmul.f32 %v8015_v20, %v7999_v16  ;;  %v6289_v20 = vld [vmem:[%s11151_s15] ss:$0 sm:$0xff] }
 0xbed   :  { %6920 = vmatprep.mubr.msk.f32.mxu1 %vm167_vm0, %v3705_v56 }
 0xbee   :  { %6921 = vmatmul.mubr.msk.f32.vlgmr.msra.gmra.mrb[66].mxu1 %vm167_vm0, %v3706_v40 }
 0xbef   :  { %7584 = vmatpush3.bf16.msra.mxu1 %v7581_v32 }
 0xbf0   :  { %7586 = vmatprep.subr.bf16.mxu1 %v7585_v34 }
 0xc05   :  { %v3823_v59 = vpop.permute.xlu1 %3822 }
 0xc06   :  { %6927 = vmatprep.mubr.msk.f32.mxu1 %vm167_vm0, %v3823_v59 }
 0xc09   :  { %v3825_v38 = vpop.permute.xlu0 %3824  ;;  %v7934_v30 = vpop.permute.xlu1 %7933 }
 0xc0a   :  { %v7936_v10 = vunpack.i.h.bf16 %v7934_v30  ;;  %v7935_v22 = vunpack.i.l.bf16 %v7934_v30  ;;  %6928 = vmatmul.mubr.msk.f32.vlgmr.msra.gmra.mrb[68].mxu1 %vm167_vm0, %v3825_v38 }
 0xc0b   :  { %7588 = vmatpush3.bf16.msra.mxu1 %v7585_v34 }
 0xc0c   :  { %v7589_v48 = vpack.c.bf16 %v7936_v10, %v7935_v22 }
 0xc0d   :  { %v3946_v16 = vpop.permute.xlu0 %3945 }
 0xc0e   :  { %v3948_v14 = vpop.permute.xlu1 %3947  ;;  %6934 = vmatprep.mubr.msk.f32.mxu1 %vm167_vm0, %v3946_v16  ;;  %7590 = vmatprep.subr.bf16.mxu1 %v7589_v48  ;;  %v11416_v16 = vld [vmem:[#allocation17_spill] sm:$0xff] }
 0xc0f   :  { %6935 = vmatmul.mubr.msk.f32.vlgmr.msra.gmra.mrb[70].mxu1 %vm167_vm0, %v3948_v14  ;;  %v11417_v14 = vld [vmem:[#allocation19_spill] sm:$0xff] }
 0xc10   :  { %7592 = vmatpush3.bf16.msra.mxu1 %v7589_v48 }
 0xc11   :  { %v4069_v21 = vpop.permute.xlu0 %4068  ;;  %7610 = vmatprep.subr.bf16.mxu1 %v11372_v12 }
 0xc12   :  { %v4071_v54 = vpop.permute.xlu1 %4070  ;;  %6941 = vmatprep.mubr.msk.f32.mxu1 %vm167_vm0, %v4069_v21  ;;  %v11418_v21 = vld [vmem:[#allocation21_spill] sm:$0xff] }
 0xc13   :  { %6942 = vmatmul.mubr.msk.f32.vlgmr.msra.gmra.mrb[72].mxu1 %vm167_vm0, %v4071_v54  ;;  %v11419_v54 = vld [vmem:[#allocation23_spill] sm:$0xff] }
 0xc14   :  { %7612 = vmatpush1.bf16.msra.mxu1 %v8413_v46  ;;  %4364 = vmatprep.mubr.f32.mxu1 %v11311_v37 }
 0xc15   :  { %7614 = vmatprep.subr.bf16.mxu1 %v8415_v47 }
 0xc18   :  { %7616 = vmatpush1.bf16.msra.mxu1 %v8433_v51 }
 0xc19   :  { %7618 = vmatprep.subr.bf16.mxu1 %v8450_v57 }
 0xc1c   :  { %7620 = vmatpush1.bf16.msra.mxu1 %v11373_v36 }
 0xc1d   :  { %7622 = vmatprep.subr.bf16.mxu1 %v11374_v60 }
 0xc20   :  { %7624 = vmatpush1.bf16.msra.mxu1 %v11375_v49 }
 0xc21   :  { %7642 = vmatprep.subr.bf16.mxu1 %v11376_v9 }
 0xcc1   :  { %v6922_v11 = vpop.f32.mrb[66].mxu1 }
 0xcc2   :  { %v3779_v35 = vpop.f32.mrb[67].mxu1 }
 0xcdd   :  { %v6929_v31 = vpop.f32.mrb[68].mxu1 }
 0xcde   :  { %4161 = vrot.lane.b32.xlu1 %v6929_v31, %s8110_s3  ;;  %v3902_v39 = vpop.f32.mrb[69].mxu1  ;;  %v11427_v31 = vld [vmem:[#allocation47_spill] sm:$0xff] }
 0xcdf   :  { %4159 = vrot.lane.b32.xlu0 %v3902_v39, %s8110_s3  ;;  %v11428_v39 = vld [vmem:[#allocation48_spill] sm:$0xff] }
 0xce2   :  { %v6936_v53 = vpop.f32.mrb[70].mxu1 }
 0xce3   :  { %4169 = vrot.lane.b32.xlu1 %v6936_v53, %s8111_s0  ;;  %v4025_v26 = vpop.f32.mrb[71].mxu1  ;;  %v11429_v53 = vld [vmem:[#allocation49_spill] sm:$0xff] }
 0xce4   :  { %4167 = vrot.lane.b32.xlu0 %v4025_v26, %s8111_s0  ;;  %v11430_v26 = vld [vmem:[#allocation50_spill] sm:$0xff] }
 0xce6   :  { %v6943_v29 = vpop.f32.mrb[72].mxu1 }
 0xce7   :  { %4177 = vrot.lane.b32.xlu1 %v6943_v29, %s8112_s4  ;;  %v4148_v4 = vpop.f32.mrb[73].mxu1  ;;  %v11431_v29 = vld [vmem:[#allocation51_spill] sm:$0xff] }
 0xce8   :  { %4175 = vrot.lane.b32.xlu0 %v4148_v4, %s8112_s4  ;;  %v11432_v4 = vld [vmem:[#allocation55_spill] sm:$0xff] }
 0xd50   :  { %v4162_v28 = vpop.permute.xlu1 %4161 }
 0xd51   :  { %v4160_v2 = vpop.permute.xlu0 %4159  ;;  %v4182_v8 = vsel %vm167_vm0, %v6922_v11, %v4162_v28  ;;  %v6290_v11 = vld [vmem:[%s11153_s17] ss:$0 sm:$0xff] }
 0xd52   :  { %v4181_v3 = vsel %vm167_vm0, %v3779_v35, %v4160_v2  ;;  %v11433_v28 = vld [vmem:[#allocation56_spill] sm:$0xff]  ;;  %v5152_v2 = vld [vmem:[%s11155_s19 + $0x190] sm:$0xff] }
 0xd55   :  { %v4170_v32 = vpop.permute.xlu1 %4169 }
 0xd56   :  { %v4168_v7 = vpop.permute.xlu0 %4167  ;;  %v4184_v33 = vsel %vm2334_vm6, %v4182_v8, %v4170_v32  ;;  %v5153_v32 = vld [vmem:[%s11155_s19 + $0x198] sm:$0xff] }
 0xd57   :  { %v4183_v40 = vsel %vm2334_vm6, %v4181_v3, %v4168_v7  ;;  %v5105_v3 = vld [vmem:[%s11155_s19 + $0x18] sm:$0xff] }
 0xd59   :  { %v4178_v56 = vpop.permute.xlu1 %4177 }
 0xd5a   :  { %v4186_v34 = vsel %vm2337_vm7, %v4184_v33, %v4178_v56  ;;  %v4176_v59 = vpop.permute.xlu0 %4175  ;;  %v7773_v56 = vpack.c.bf16 %v5153_v32, %v5152_v2 }
 0xd5b   :  { %v4195_v38 = vadd.f32 %v6289_v20, %v4186_v34  ;;  %v4185_v30 = vsel %vm2337_vm7, %v4183_v40, %v4176_v59  ;;  %v5136_v40 = vld [vmem:[%s11155_s19 + $0x110] sm:$0xff]  ;;  %v5137_v34 = vld [vmem:[%s11155_s19 + $0x118] sm:$0xff]  ;;  %v5122_v59 = vld [vmem:[%s11155_s19 + $0xa0] sm:$0xff] }
 0xd5c   :  { %v4194_v10 = vadd.f32 %v6289_v20, %v4185_v30  ;;  %v5104_v20 = vld [vmem:[%s11155_s19 + $0x10] sm:$0xff]  ;;  %v5154_v30 = vld [vmem:[%s11155_s19 + $0x1a0] sm:$0xff] }
 0xd5d   :  { %v4197_v48 = vmax.f32 %v4195_v38, 0.0  ;;  %v5123_v38 = vld [vmem:[%s11155_s19 + $0xa8] sm:$0xff] }
 0xd5e   :  { %v4196_v22 = vmax.f32 %v4194_v10, 0.0  ;;  %v5155_v10 = vld [vmem:[%s11155_s19 + $0x1a8] sm:$0xff] }
 0xd60   :  { %6960 = vmatprep.mubr.msk.f32.mxu0 %vm574_vm2, %v4196_v22  ;;  %v7743_v22 = vpack.c.bf16 %v5105_v3, %v5104_v20  ;;  %v5145_v20 = vld [vmem:[%s11155_s19 + $0x158] sm:$0xff] }
 0xd61   :  { %6961 = vmatmul.mubr.msk.f32.vlgmr.msra.gmra.mrb[58].mxu0 %vm574_vm2, %v4197_v48  ;;  %v7775_v48 = vpack.c.bf16 %v5137_v34, %v5136_v40  ;;  %v5131_v40 = vld [vmem:[%s11155_s19 + $0xe8] sm:$0xff]  ;;  %v5162_v34 = vld [vmem:[%s11155_s19 + $0x1e0] sm:$0xff] }
 0xd62   :  { %7628 = vmatpush1.bf16.msra.mxu0 %v11378_v15  ;;  %4441 = vmatprep.mubr.f32.mxu0 %v11311_v37 }
 0xd63   :  { %7630 = vmatprep.subr.bf16.mxu0 %v11379_v52 }
 0xd66   :  { %7632 = vmatpush1.bf16.msra.mxu0 %v11380_v62 }
 0xd67   :  { %7634 = vmatprep.subr.bf16.mxu0 %v11381_v17 }
 0xd6a   :  { %7636 = vmatpush1.bf16.msra.mxu0 %v11416_v16 }
 0xd6b   :  { %7638 = vmatprep.subr.bf16.mxu0 %v11417_v14 }
 0xd6e   :  { %7640 = vmatpush1.bf16.msra.mxu0 %v11418_v21 }
 0xd6f   :  { %7658 = vmatprep.subr.bf16.mxu0 %v11419_v54 }
 0xe34   :  { %v6962_v35 = vpop.f32.mrb[58].mxu0 }
 0xe35   :  { %v4291_v43 = vadd.f32 %v6962_v35, %v6290_v11  ;;  %v4285_v27 = vpop.f32.mrb[59].mxu0  ;;  %v5139_v35 = vld [vmem:[%s11155_s19 + $0x128] sm:$0xff] }
 0xe36   :  { %v4286_v45 = vadd.f32 %v6290_v11, %v4285_v27  ;;  %v5138_v11 = vld [vmem:[%s11155_s19 + $0x120] sm:$0xff]  ;;  %v5125_v27 = vld [vmem:[%s11155_s19 + $0xb8] sm:$0xff] }
 0xe37   :  { %4682 = vrot.lane.b32.xlu1 %v4291_v43, %s8109_s1 }
 0xe38   :  { %4680 = vrot.lane.b32.xlu0 %v4286_v45, %s8109_s1  ;;  %6293 = vmatmul.mubr.msk.f32.vlgmr.msra.gmra.mrb[74].mxu1 %vm574_vm2, %v4286_v45  ;;  %v10410_v5 = vpack.c.bf16 %v4291_v43, %v4286_v45  ;;  %v10412_v44 = vpack.i.bf16 %v4291_v43, %v4286_v45 }
 0xe39   :  { %6295 = vmatmul.mubr.msk.f32.vlgmr.msra.gmra.mrb[60].mxu0 %vm574_vm2, %v4286_v45  ;;  %7644 = vmatpush1.bf16.msra.mxu1 %v11420_v55 }
 0xe3a   :  { %7660 = vmatpush1.bf16.msra.mxu0 %v11421_v63  ;;  %4370 = vmatprep.mubr.f32.mxu1 %v11311_v37 }
 0xe3b   :  { %4447 = vmatprep.mubr.f32.mxu0 %v11311_v37  ;;  %7646 = vmatprep.subr.bf16.mxu1 %v11422_v13 }
 0xe3c   :  { %7662 = vmatprep.subr.bf16.mxu0 %v11423_v58  ;;  %6294 = vmatmul.mubr.msk.f32.gmra.mrb[76].mxu1 %vm574_vm2, %v4291_v43 }
 0xe3d   :  { %6296 = vmatmul.mubr.msk.f32.gmra.mrb[62].mxu0 %vm574_vm2, %v4291_v43  ;;  %7648 = vmatpush1.bf16.msra.mxu1 %v11424_v23 }
 0xe3e   :  { %7664 = vmatpush1.bf16.msra.mxu0 %v11425_v1  ;;  %7650 = vmatprep.subr.bf16.mxu1 %v11426_v0 }
 0xe3f   :  { %7666 = vmatprep.subr.bf16.mxu0 %v11427_v31  ;;  %4518 = vmatprep.mubr.f32.mxu1 %v11311_v37 }
 0xe40   :  { %4595 = vmatprep.mubr.f32.mxu0 %v11311_v37 }
 0xe41   :  { %7652 = vmatpush1.bf16.msra.mxu1 %v11428_v39 }
 0xe42   :  { %7668 = vmatpush1.bf16.msra.mxu0 %v11429_v53  ;;  %7654 = vmatprep.subr.bf16.mxu1 %v11430_v26 }
 0xe43   :  { %7670 = vmatprep.subr.bf16.mxu0 %v11431_v29 }
 0xe45   :  { %7656 = vmatpush1.bf16.msra.mxu1 %v11432_v4 }
 0xe46   :  { %7672 = vmatpush1.bf16.msra.mxu0 %v11433_v28  ;;  %7674 = vmatprep.subr.bf16.mxu1 %v11372_v12  ;;  %v5150_v12 = vld [vmem:[%s11155_s19 + $0x180] sm:$0xff] }
 0xe47   :  { %7690 = vmatprep.subr.bf16.mxu0 %v11377_v61  ;;  %v5103_v61 = vld [vmem:[%s11155_s19 + $0x8] sm:$0xff] }
 0xe48   :  { %6297 = vmatmul.mubr.msk.f32.vlgmr.msra.gmra.mrb[78].mxu1 %vm574_vm2, %v4286_v45 }
 0xe49   :  { %6299 = vmatmul.mubr.msk.f32.vlgmr.msra.gmra.mrb[64].mxu0 %vm574_vm2, %v4286_v45  ;;  %4524 = vmatprep.mubr.f32.mxu1 %v11311_v37  ;;  %v5156_v45 = vld [vmem:[%s11155_s19 + $0x1b0] sm:$0xff] }
 0xe4a   :  { %4601 = vmatprep.mubr.f32.mxu0 %v11311_v37  ;;  %7676 = vmatpush1.bf16.msra.mxu1 %v8413_v46 }
 0xe4b   :  { %7692 = vmatpush1.bf16.msra.mxu0 %v11378_v15  ;;  %7678 = vmatprep.subr.bf16.mxu1 %v8415_v47  ;;  %v5134_v15 = vld [vmem:[%s11155_s19 + $0x100] sm:$0xff] }
 0xe4c   :  { %6298 = vmatmul.mubr.msk.f32.gmra.mrb[80].mxu1 %vm574_vm2, %v4291_v43  ;;  %7694 = vmatprep.subr.bf16.mxu0 %v11379_v52  ;;  %v5135_v52 = vld [vmem:[%s11155_s19 + $0x108] sm:$0xff] }
 0xe4d   :  { %6300 = vmatmul.mubr.msk.f32.gmra.mrb[66].mxu0 %vm574_vm2, %v4291_v43  ;;  %4752 = vmatprep.mubr.f32.mxu1 %v11311_v37  ;;  %v7771_v8 = vpack.c.bf16 %v5135_v52, %v5134_v15  ;;  %v5124_v43 = vld [vmem:[%s11155_s19 + $0xb0] sm:$0xff]  ;;  %v5161_v15 = vld [vmem:[%s11155_s19 + $0x1d8] sm:$0xff] }
 0xe4e   :  { %7680 = vmatpush1.bf16.msra.mxu1 %v8433_v51  ;;  %4829 = vmatprep.mubr.f32.mxu0 %v11311_v37  ;;  %v5118_v51 = vld [vmem:[%s11155_s19 + $0x80] sm:$0xff] }
 0xe4f   :  { %7696 = vmatpush1.bf16.msra.mxu0 %v11380_v62  ;;  %7682 = vmatprep.subr.bf16.mxu1 %v8450_v57  ;;  %v5119_v57 = vld [vmem:[%s11155_s19 + $0x88] sm:$0xff]  ;;  %v5120_v62 = vld [vmem:[%s11155_s19 + $0x90] sm:$0xff] }
 0xe50   :  { %7698 = vmatprep.subr.bf16.mxu0 %v11381_v17  ;;  %v5121_v17 = vld [vmem:[%s11155_s19 + $0x98] sm:$0xff] }
 0xe51   :  { %v7741_v33 = vpack.c.bf16 %v5121_v17, %v5120_v62  ;;  %v5112_v17 = vld [vmem:[%s11155_s19 + $0x50] sm:$0xff] }
 0xe52   :  { %7684 = vmatpush1.bf16.msra.mxu1 %v11373_v36  ;;  %v5151_v36 = vld [vmem:[%s11155_s19 + $0x188] sm:$0xff] }
 0xe53   :  { %7700 = vmatpush1.bf16.msra.mxu0 %v11416_v16  ;;  %7686 = vmatprep.subr.bf16.mxu1 %v11374_v60  ;;  %v7737_v60 = vpack.c.bf16 %v5119_v57, %v5118_v51  ;;  %v5106_v16 = vld [vmem:[%s11155_s19 + $0x20] sm:$0xff]  ;;  %v5111_v51 = vld [vmem:[%s11155_s19 + $0x48] sm:$0xff] }
 0xe54   :  { %7702 = vmatprep.subr.bf16.mxu0 %v11417_v14  ;;  %v5107_v14 = vld [vmem:[%s11155_s19 + $0x28] sm:$0xff] }
 0xe56   :  { %7688 = vmatpush1.bf16.msra.mxu1 %v11375_v49  ;;  %v7769_v49 = vpack.c.bf16 %v5151_v36, %v5150_v12  ;;  %v5142_v36 = vld [vmem:[%s11155_s19 + $0x140] sm:$0xff] }
 0xe57   :  { %7704 = vmatpush1.bf16.msra.mxu0 %v11418_v21  ;;  %7706 = vmatprep.subr.bf16.mxu1 %v11376_v9  ;;  %v5102_v9 = vld [vmem:[%s11155_s19] sm:$0xff]  ;;  %v7745_v21 = vpack.c.bf16 %v5123_v38, %v5122_v59  ;;  %v5163_v38 = vld [vmem:[%s11155_s19 + $0x1e8] sm:$0xff] }
 0xe58   :  { %7722 = vmatprep.subr.bf16.mxu0 %v11419_v54  ;;  %v7739_v7 = vpack.c.bf16 %v5103_v61, %v5102_v9  ;;  %v7777_v54 = vpack.c.bf16 %v5155_v10, %v5154_v30  ;;  %v5129_v9 = vld [vmem:[%s11155_s19 + $0xd8] sm:$0xff]  ;;  %v5160_v61 = vld [vmem:[%s11155_s19 + $0x1d0] sm:$0xff]  ;;  %v5114_v30 = vld [vmem:[%s11155_s19 + $0x60] sm:$0xff] }
 0xe59   :  { %v7789_v32 = vpack.c.bf16 %v5161_v15, %v5160_v61  ;;  %v5115_v10 = vld [vmem:[%s11155_s19 + $0x68] sm:$0xff]  ;;  %v8070_v61 = vld [vmem:[%s11266_s24 + $0x10] sm:$0xff] }
 0xea9   :  { %v10467_v47 = vpop.permute.xlu1 %4682 }
 0xeaa   :  { %v4681_v46 = vpop.permute.xlu0 %4680 }
 0xeab   :  { %6301 = vmatmul.mubr.msk.f32.vlgmr.msra.gmra.mrb[82].mxu1 %vm574_vm2, %v4681_v46  ;;  %6303 = vmatmul.mubr.msk.f32.vlgmr.msra.gmra.mrb[68].mxu0 %vm574_vm2, %v4681_v46 }
 0xeac   :  { %7708 = vmatpush1.bf16.msra.mxu1 %v11420_v55  ;;  %7724 = vmatpush1.bf16.msra.mxu0 %v11421_v63  ;;  %v5157_v55 = vld [vmem:[%s11155_s19 + $0x1b8] sm:$0xff]  ;;  %v7747_v63 = vpack.c.bf16 %v5107_v14, %v5106_v16  ;;  %v5146_v16 = vld [vmem:[%s11155_s19 + $0x160] sm:$0xff]  ;;  %v5147_v14 = vld [vmem:[%s11155_s19 + $0x168] sm:$0xff] }
 0xead   :  { %4758 = vmatprep.mubr.f32.mxu1 %v11311_v37  ;;  %4835 = vmatprep.mubr.f32.mxu0 %v11311_v37 }
 0xeae   :  { %7710 = vmatprep.subr.bf16.mxu1 %v11422_v13  ;;  %7726 = vmatprep.subr.bf16.mxu0 %v11423_v58  ;;  %v7779_v13 = vpack.c.bf16 %v5139_v35, %v5138_v11  ;;  %v5108_v58 = vld [vmem:[%s11155_s19 + $0x30] sm:$0xff]  ;;  %v5133_v11 = vld [vmem:[%s11155_s19 + $0xf8] sm:$0xff] }
 0xeaf   :  { %6302 = vmatmul.mubr.msk.f32.gmra.mrb[84].mxu1 %vm574_vm2, %v10467_v47  ;;  %6304 = vmatmul.mubr.msk.f32.gmra.mrb[70].mxu0 %vm574_vm2, %v10467_v47  ;;  %v5164_v35 = vld [vmem:[%s11155_s19 + $0x1f0] sm:$0xff] }
 0xeb0   :  { %7712 = vmatpush1.bf16.msra.mxu1 %v11424_v23  ;;  %7728 = vmatpush1.bf16.msra.mxu0 %v11425_v1  ;;  %v5109_v23 = vld [vmem:[%s11155_s19 + $0x38] sm:$0xff]  ;;  %v7749_v1 = vpack.c.bf16 %v5125_v27, %v5124_v43 }
 0xeb1   :  { %7714 = vmatprep.subr.bf16.mxu1 %v11426_v0  ;;  %7730 = vmatprep.subr.bf16.mxu0 %v11427_v31  ;;  %v7781_v0 = vpack.c.bf16 %v5157_v55, %v5156_v45  ;;  %v5140_v31 = vld [vmem:[%s11155_s19 + $0x130] sm:$0xff]  ;;  %v5165_v27 = vld [vmem:[%s11155_s19 + $0x1f8] sm:$0xff] }
 0xeb2   :  { %4906 = vmatprep.mubr.f32.mxu1 %v11311_v37  ;;  %4983 = vmatprep.mubr.f32.mxu0 %v11311_v37  ;;  %v5116_v45 = vld [vmem:[%s11155_s19 + $0x70] sm:$0xff]  ;;  %v5117_v55 = vld [vmem:[%s11155_s19 + $0x78] sm:$0xff] }
 0xeb4   :  { %7716 = vmatpush1.bf16.msra.mxu1 %v11428_v39  ;;  %7732 = vmatpush1.bf16.msra.mxu0 %v11429_v53  ;;  %v5141_v39 = vld [vmem:[%s11155_s19 + $0x138] sm:$0xff]  ;;  %v5126_v53 = vld [vmem:[%s11155_s19 + $0xc0] sm:$0xff] }
 0xeb5   :  { %7718 = vmatprep.subr.bf16.mxu1 %v11430_v26  ;;  %7734 = vmatprep.subr.bf16.mxu0 %v11431_v29  ;;  %v5127_v26 = vld [vmem:[%s11155_s19 + $0xc8] sm:$0xff]  ;;  %v5158_v29 = vld [vmem:[%s11155_s19 + $0x1c0] sm:$0xff] }
 0xeb6   :  { %v7753_v57 = vpack.c.bf16 %v5127_v26, %v5126_v53  ;;  %v5215_v26 = vld [vmem:[%s11155_s19 + $0x388] sm:$0xff] }
 0xeb8   :  { %7720 = vmatpush1.bf16.msra.mxu1 %v11432_v4  ;;  %7736 = vmatpush1.bf16.msra.mxu0 %v11433_v28  ;;  %v5159_v4 = vld [vmem:[%s11155_s19 + $0x1c8] sm:$0xff]  ;;  %v7751_v28 = vpack.c.bf16 %v5109_v23, %v5108_v58  ;;  %v5148_v58 = vld [vmem:[%s11155_s19 + $0x170] sm:$0xff]  ;;  %v5149_v23 = vld [vmem:[%s11155_s19 + $0x178] sm:$0xff] }
 0xeb9   :  { %7738 = vmatprep.subr.bf16.mxu1 %v7737_v60  ;;  %7770 = vmatprep.subr.bf16.mxu0 %v7769_v49  ;;  %v7785_v12 = vpack.c.bf16 %v5159_v4, %v5158_v29  ;;  %v5143_v60 = vld [vmem:[%s11155_s19 + $0x148] sm:$0xff]  ;;  %v5128_v49 = vld [vmem:[%s11155_s19 + $0xd0] sm:$0xff] }
 0xeba   :  { %v7787_v62 = vpack.c.bf16 %v5143_v60, %v5142_v36  ;;  %v7757_v2 = vpack.c.bf16 %v5129_v9, %v5128_v49  ;;  %v8069_v36 = vld [vmem:[%s11266_s24 + $0x40] sm:$0xff] }
 0xebb   :  { %6305 = vmatmul.mubr.msk.f32.vlgmr.msra.gmra.mrb[86].mxu1 %vm574_vm2, %v4681_v46  ;;  %6307 = vmatmul.mubr.msk.f32.vlgmr.msra.gmra.mrb[72].mxu0 %vm574_vm2, %v4681_v46  ;;  %v7783_v46 = vpack.c.bf16 %v5141_v39, %v5140_v31  ;;  %v5183_v31 = vld [vmem:[%s11155_s19 + $0x288] sm:$0xff]  ;;  %v5214_v39 = vld [vmem:[%s11155_s19 + $0x380] sm:$0xff] }
 0xebc   :  { %4912 = vmatprep.mubr.f32.mxu1 %v11311_v37  ;;  %4989 = vmatprep.mubr.f32.mxu0 %v11311_v37  ;;  %v7833_v29 = vpack.c.bf16 %v5215_v26, %v5214_v39  ;;  %v8083_v26 = vld [vmem:[%s11266_s24 + $0x78] sm:$0xff] }
 0xebd   :  { %7740 = vmatpush3.bf16.msra.mxu1 %v7739_v7  ;;  %7772 = vmatpush3.bf16.msra.mxu0 %v7771_v8  ;;  %v5113_v7 = vld [vmem:[%s11155_s19 + $0x58] sm:$0xff]  ;;  %v5144_v8 = vld [vmem:[%s11155_s19 + $0x150] sm:$0xff] }
 0xebe   :  { %7742 = vmatprep.subr.bf16.mxu1 %v7741_v33  ;;  %7774 = vmatprep.subr.bf16.mxu0 %v7773_v56  ;;  %v7759_v3 = vpack.c.bf16 %v5113_v7, %v5112_v17  ;;  %v7791_v33 = vpack.c.bf16 %v5145_v20, %v5144_v8  ;;  %v5130_v56 = vld [vmem:[%s11155_s19 + $0xe0] sm:$0xff]  ;;  %v8072_v17 = vld [vmem:[%s11266_s24 + $0x50] sm:$0xff]  ;;  %v8074_v20 = vld [vmem:[%s11266_s24 + $0x18] sm:$0xff] }
 0xebf   :  { %6306 = vmatmul.mubr.msk.f32.gmra.mrb[88].mxu1 %vm574_vm2, %v10467_v47  ;;  %6308 = vmatmul.mubr.msk.f32.gmra.mrb[74].mxu0 %vm574_vm2, %v10467_v47  ;;  %v5110_v47 = vld [vmem:[%s11155_s19 + $0x40] sm:$0xff]  ;;  %v7761_v59 = vpack.c.bf16 %v5131_v40, %v5130_v56  ;;  %v8075_v56 = vld [vmem:[%s11266_s24 + $0x58] sm:$0xff] }
 0xec0   :  { %v7755_v52 = vpack.c.bf16 %v5111_v51, %v5110_v47 }
 0xec1   :  { %7744 = vmatpush3.bf16.msra.mxu1 %v7743_v22  ;;  %7776 = vmatpush3.bf16.msra.mxu0 %v7775_v48  ;;  %v7793_v22 = vpack.c.bf16 %v5163_v38, %v5162_v34  ;;  %v7763_v48 = vpack.c.bf16 %v5115_v10, %v5114_v30 }
 0xec2   :  { %7746 = vmatprep.subr.bf16.mxu1 %v7745_v21  ;;  %7778 = vmatprep.subr.bf16.mxu0 %v7777_v54  ;;  %v7795_v21 = vpack.c.bf16 %v5147_v14, %v5146_v16  ;;  %v5132_v54 = vld [vmem:[%s11155_s19 + $0xf0] sm:$0xff]  ;;  %v8076_v14 = vld [vmem:[%s11266_s24 + $0x20] sm:$0xff] }
 0xec3   :  { %v7765_v43 = vpack.c.bf16 %v5133_v11, %v5132_v54  ;;  %v8077_v54 = vld [vmem:[%s11266_s24 + $0x60] sm:$0xff] }
 0xec5   :  { %7748 = vmatpush3.bf16.msra.mxu1 %v7747_v63  ;;  %7780 = vmatpush3.bf16.msra.mxu0 %v7779_v13  ;;  %v7797_v63 = vpack.c.bf16 %v5165_v27, %v5164_v35  ;;  %v7767_v13 = vpack.c.bf16 %v5117_v55, %v5116_v45  ;;  %v8078_v27 = vld [vmem:[%s11266_s24 + $0x30] sm:$0xff]  ;;  %v8079_v55 = vld [vmem:[%s11266_s24 + $0x28] sm:$0xff] }
 0xec6   :  { %7750 = vmatprep.subr.bf16.mxu1 %v7749_v1  ;;  %7782 = vmatprep.subr.bf16.mxu0 %v7781_v0  ;;  %v7799_v1 = vpack.c.bf16 %v5149_v23, %v5148_v58  ;;  %v5182_v0 = vld [vmem:[%s11155_s19 + $0x280] sm:$0xff]  ;;  %v8081_v23 = vld [vmem:[%s11266_s24 + $0x68] sm:$0xff] }
 0xec7   :  { %v7801_v53 = vpack.c.bf16 %v5183_v31, %v5182_v0  ;;  %v8082_v31 = vld [vmem:[%s11266_s24 + $0x38] sm:$0xff] }
 0xec9   :  { %7752 = vmatpush3.bf16.msra.mxu1 %v7751_v28  ;;  %7784 = vmatpush3.bf16.msra.mxu0 %v7783_v46 }
 0xeca   :  { %7754 = vmatprep.subr.bf16.mxu1 %v7753_v57  ;;  %7786 = vmatprep.subr.bf16.mxu0 %v7785_v12  ;;  %v8068_v57 = vld [vmem:[%s11266_s24] sm:$0xff] }
 0xecd   :  { %7756 = vmatpush3.bf16.msra.mxu1 %v7755_v52  ;;  %7788 = vmatpush3.bf16.msra.mxu0 %v7787_v62  ;;  %v8071_v52 = vld [vmem:[%s11266_s24 + $0x8] sm:$0xff] }
 0xece   :  { %7758 = vmatprep.subr.bf16.mxu1 %v7757_v2  ;;  %7790 = vmatprep.subr.bf16.mxu0 %v7789_v32  ;;  %v8073_v32 = vld [vmem:[%s11266_s24 + $0x48] sm:$0xff] }
 0xed1   :  { %7760 = vmatpush3.bf16.msra.mxu1 %v7759_v3  ;;  %7792 = vmatpush3.bf16.msra.mxu0 %v7791_v33 }
 0xed2   :  { %7762 = vmatprep.subr.bf16.mxu1 %v7761_v59  ;;  %7794 = vmatprep.subr.bf16.mxu0 %v7793_v22 }
 0xed5   :  { %7764 = vmatpush3.bf16.msra.mxu1 %v7763_v48  ;;  %7796 = vmatpush3.bf16.msra.mxu0 %v7795_v21 }
 0xed6   :  { %7766 = vmatprep.subr.bf16.mxu1 %v7765_v43  ;;  %7798 = vmatprep.subr.bf16.mxu0 %v7797_v63 }
 0xed9   :  { %7768 = vmatpush3.bf16.msra.mxu1 %v7767_v13  ;;  %7800 = vmatpush3.bf16.msra.mxu0 %v7799_v1  ;;  %v8080_v13 = vld [vmem:[%s11266_s24 + $0x70] sm:$0xff] }
 0xeda   :  { %7802 = vmatprep.subr.bf16.mxu1 %v7801_v53  ;;  %7834 = vmatprep.subr.bf16.mxu0 %v7833_v29 }
 0xf0b   :  { %v4366_v4 = vpop.f32.mrb[74].mxu1 }
 0xf0c   :  { %v4443_v28 = vpop.f32.mrb[60].mxu0  ;;  %v4368_v46 = vpop.f32.mrb[75].mxu1  ;;  %v4608_v12 = vmul.f32 %v8068_v57, %v4366_v4 }
 0xf0d   :  { %v4445_v47 = vpop.f32.mrb[61].mxu0  ;;  %v4610_v15 = vmul.f32 %v8070_v61, %v4443_v28  ;;  %v4609_v62 = vmul.f32 %v8071_v52, %v4368_v46 }
 0xf0e   :  { %v4611_v3 = vmul.f32 %v8074_v20, %v4445_v47 }
 0xf0f   :  { %v4372_v51 = vpop.f32.mrb[76].mxu1 }
 0xf10   :  { %v4616_v60 = vmul.f32 %v8069_v36, %v4372_v51  ;;  %v4449_v49 = vpop.f32.mrb[62].mxu0  ;;  %v4374_v9 = vpop.f32.mrb[77].mxu1 }
 0xf11   :  { %v4618_v2 = vmul.f32 %v8072_v17, %v4449_v49  ;;  %v4617_v7 = vmul.f32 %v8073_v32, %v4374_v9  ;;  %v4451_v8 = vpop.f32.mrb[63].mxu0 }
 0xf12   :  { %v4624_v33 = vadd.f32 %v4616_v60, %v4608_v12  ;;  %v4619_v40 = vmul.f32 %v8075_v56, %v4451_v8 }
 0xf13   :  { %v4638_v34 = vadd.f32 %v4618_v2, %v4610_v15  ;;  %v4631_v59 = vadd.f32 %v4617_v7, %v4609_v62 }
 0xf14   :  { %v4645_v38 = vadd.f32 %v4619_v40, %v4611_v3  ;;  %v4625_v47 = vrot.slane %v4624_v33, 4 }
 0xf15   :  { %v4639_v51 = vrot.slane %v4638_v34, 4  ;;  %v4632_v57 = vrot.slane %v4631_v59, 4 }
 0xf16   :  { %v4646_v12 = vrot.slane %v4645_v38, 4  ;;  %v4626_v36 = vadd.f32 %v4625_v47, %v4624_v33 }
 0xf17   :  { %v4640_v60 = vadd.f32 %v4639_v51, %v4638_v34  ;;  %v4633_v49 = vadd.f32 %v4632_v57, %v4631_v59  ;;  %v10750_v59 = vld [vmem:[%s11155_s19 + $0x200] sm:$0xff]  ;;  %v11434_v51 = vld [vmem:[#allocation59_spill] sm:$0xff] }
 0xf18   :  { %v4647_v9 = vadd.f32 %v4646_v12, %v4645_v38  ;;  %v4627_v61 = vrot.slane %v4626_v36, 2  ;;  %v10755_v38 = vld [vmem:[%s11155_s19 + $0x208] sm:$0xff] }
 0xf19   :  { %v4641_v15 = vrot.slane %v4640_v60, 2  ;;  %v4634_v52 = vrot.slane %v4633_v49, 2  ;;  %v11435_v12 = vld [vmem:[#allocation69_spill] sm:$0xff] }
 0xf1a   :  { %v4648_v62 = vrot.slane %v4647_v9, 2  ;;  %v4628_v17 = vadd.f32 %v4627_v61, %v4626_v36 }
 0xf1b   :  { %v4520_v30 = vpop.f32.mrb[78].mxu1  ;;  %v4642_v2 = vadd.f32 %v4641_v15, %v4640_v60  ;;  %v4635_v8 = vadd.f32 %v4634_v52, %v4633_v49  ;;  %v11437_v15 = vld [vmem:[#allocation71_spill] sm:$0xff] }
 0xf1c   :  { %v4597_v10 = vpop.f32.mrb[64].mxu0  ;;  %v4522_v22 = vpop.f32.mrb[79].mxu1  ;;  %v4612_v21 = vmul.f32 %v8076_v14, %v4520_v30  ;;  %v4649_v20 = vadd.f32 %v4648_v62, %v4647_v9  ;;  %v4629_v40 = vrot.slane %v4628_v17, 1  ;;  %v10770_v14 = vld [vmem:[%s11155_s19 + $0x290] sm:$0xff] }
 0xf1d   :  { %v4599_v48 = vpop.f32.mrb[65].mxu0  ;;  %v4614_v45 = vmul.f32 %v8078_v27, %v4597_v10  ;;  %v4613_v63 = vmul.f32 %v8079_v55, %v4522_v22  ;;  %v4643_v30 = vrot.slane %v4642_v2, 1  ;;  %v4636_v33 = vrot.slane %v4635_v8, 1  ;;  %v10780_v27 = vld [vmem:[%s11155_s19 + $0x390] sm:$0xff] }
 0xf1e   :  { %v4615_v39 = vmul.f32 %v8082_v31, %v4599_v48  ;;  %v4650_v34 = vrot.slane %v4649_v20, 1  ;;  %v10760_v48 = vld [vmem:[%s11155_s19 + $0x300] sm:$0xff]  ;;  %v11436_v9 = vld [vmem:[#allocation62_spill] sm:$0xff] }
 0xf1f   :  { %v4526_v16 = vpop.f32.mrb[80].mxu1 }
 0xf20   :  { %v4620_v11 = vmul.f32 %v8077_v54, %v4526_v16  ;;  %v4603_v35 = vpop.f32.mrb[66].mxu0  ;;  %v4528_v43 = vpop.f32.mrb[81].mxu1  ;;  %v10765_v16 = vld [vmem:[%s11155_s19 + $0x308] sm:$0xff] }
 0xf21   :  { %v4622_v58 = vmul.f32 %v8080_v13, %v4603_v35  ;;  %v4621_v1 = vmul.f32 %v8081_v23, %v4528_v43  ;;  %v4605_v0 = vpop.f32.mrb[67].mxu0  ;;  %v4644_v35 = vadd.f32 %v4643_v30, %v4642_v2  ;;  %v10775_v43 = vld [vmem:[%s11155_s19 + $0x298] sm:$0xff]  ;;  %v4637_v13 = vadd.f32 %v4636_v33, %v4635_v8 }
 0xf22   :  { %v4652_v53 = vadd.f32 %v4620_v11, %v4612_v21  ;;  %v4623_v29 = vmul.f32 %v8083_v26, %v4605_v0  ;;  %v4630_v11 = vadd.f32 %v4629_v40, %v4628_v17  ;;  %v7803_v26 = vpack.c.bf16 %v10755_v38, %v10750_v59  ;;  %v11438_v38 = vld [vmem:[#allocation64_spill] sm:$0xff] }
 0xf23   :  { %v4666_v4 = vadd.f32 %v4622_v58, %v4614_v45  ;;  %v4659_v28 = vadd.f32 %v4621_v1, %v4613_v63  ;;  %v10785_v45 = vld [vmem:[%s11155_s19 + $0x398] sm:$0xff]  ;;  %v4651_v58 = vadd.f32 %v4650_v34, %v4649_v20 }
 0xf24   :  { %v4673_v46 = vadd.f32 %v4623_v29, %v4615_v39  ;;  %v4653_v32 = vrot.slane %v4652_v53, 4  ;;  %v7835_v29 = vpack.c.bf16 %v10765_v16, %v10760_v48  ;;  %v7837_v47 = vpack.c.bf16 %v10785_v45, %v10780_v27  ;;  %v11439_v16 = vld [vmem:[#allocation72_spill] sm:$0xff]  ;;  %v11440_v27 = vld [vmem:[#allocation66_spill] sm:$0xff] }
 0xf25   :  { %v4667_v7 = vrot.slane %v4666_v4, 4  ;;  %v4660_v3 = vrot.slane %v4659_v28, 4 }
 0xf26   :  { %v4674_v56 = vrot.slane %v4673_v46, 4  ;;  %v4654_v10 = vadd.f32 %v4653_v32, %v4652_v53 }
 0xf27   :  { %v4668_v22 = vadd.f32 %v4667_v7, %v4666_v4  ;;  %v4661_v21 = vadd.f32 %v4660_v3, %v4659_v28 }
 0xf28   :  { %v4675_v54 = vadd.f32 %v4674_v56, %v4673_v46  ;;  %v4655_v23 = vrot.slane %v4654_v10, 2  ;;  %v7805_v46 = vpack.c.bf16 %v10775_v43, %v10770_v14 }
 0xf29   :  { %v4669_v1 = vrot.slane %v4668_v22, 2  ;;  %v4662_v60 = vrot.slane %v4661_v21, 2 }
 0xf2a   :  { %v4676_v49 = vrot.slane %v4675_v54, 2  ;;  %v10799_v2 = vadd.f32 %v4655_v23, %v4654_v10  ;;  %v5168_v10 = vld [vmem:[%s11155_s19 + $0x210] sm:$0xff]  ;;  %v5201_v23 = vld [vmem:[%s11155_s19 + $0x318] sm:$0xff] }
 0xf2b   :  { %v10801_v32 = vadd.f32 %v4669_v1, %v4668_v22  ;;  %v5169_v22 = vld [vmem:[%s11155_s19 + $0x218] sm:$0xff]  ;;  %v5186_v1 = vld [vmem:[%s11155_s19 + $0x2a0] sm:$0xff] }
 0xf2c   :  { %v4677_v43 = vadd.f32 %v4676_v49, %v4675_v54 }
 0xf7e   :  { %v4754_v55 = vpop.f32.mrb[82].mxu1  ;;  %v4831_v63 = vpop.f32.mrb[68].mxu0 }
 0xf7f   :  { %v4755_v0 = vadd.f32 %v4754_v55, %v4630_v11  ;;  %v4832_v31 = vadd.f32 %v4831_v63, %v4644_v35  ;;  %v4756_v39 = vpop.f32.mrb[83].mxu1  ;;  %v4833_v53 = vpop.f32.mrb[69].mxu0  ;;  %v11441_v55 = vld [vmem:[#allocation74_spill] sm:$0xff] }
 0xf80   :  { %v4757_v4 = vadd.f32 %v4756_v39, %v4637_v13  ;;  %v4834_v28 = vadd.f32 %v4833_v53, %v4651_v58 }
 0xf81   :  { %v5054_v57 = vadd.f32 %v11434_v51, %v4755_v0  ;;  %v5056_v36 = vadd.f32 %v11435_v12, %v4832_v31  ;;  %v5187_v0 = vld [vmem:[%s11155_s19 + $0x2a8] sm:$0xff]  ;;  %v5218_v51 = vld [vmem:[%s11155_s19 + $0x3a0] sm:$0xff] }
 0xf82   :  { %v5055_v61 = vadd.f32 %v11436_v9, %v4757_v4  ;;  %v5057_v52 = vadd.f32 %v11437_v15, %v4834_v28  ;;  %v4760_v62 = vpop.f32.mrb[84].mxu1  ;;  %v4837_v17 = vpop.f32.mrb[70].mxu0  ;;  %v7807_v28 = vpack.c.bf16 %v5169_v22, %v5168_v10  ;;  %v5219_v12 = vld [vmem:[%s11155_s19 + $0x3a8] sm:$0xff]  ;;  %v7809_v49 = vpack.c.bf16 %v5187_v0, %v5186_v1  ;;  %v5170_v9 = vld [vmem:[%s11155_s19 + $0x220] sm:$0xff]  ;;  %v5205_v22 = vld [vmem:[%s11155_s19 + $0x338] sm:$0xff] }
 0xf83   :  { %v5070_v7 = vmul.f32 0.2, %v5054_v57  ;;  %v5072_v8 = vmul.f32 0.2, %v5056_v36  ;;  %v4761_v20 = vadd.f32 %v4760_v62, %v4630_v11  ;;  %v4838_v3 = vadd.f32 %v4837_v17, %v4644_v35  ;;  %v4762_v56 = vpop.f32.mrb[85].mxu1  ;;  %v4839_v40 = vpop.f32.mrb[71].mxu0 }
 0xf84   :  { %v5071_v30 = vmul.f32 0.2, %v5055_v61  ;;  %v5073_v33 = vmul.f32 0.2, %v5057_v52  ;;  %v4763_v34 = vadd.f32 %v4762_v56, %v4637_v13  ;;  %v4840_v59 = vadd.f32 %v4839_v40, %v4651_v58  ;;  %v5200_v11 = vld [vmem:[%s11155_s19 + $0x310] sm:$0xff]  ;;  %v5223_v1 = vld [vmem:[%s11155_s19 + $0x3c8] sm:$0xff] }
 0xf85   :  { %v5062_v48 = vadd.f32 %v11438_v38, %v4761_v20  ;;  %v5064_v14 = vadd.f32 %v11439_v16, %v4838_v3  ;;  %v4663_v35 = vadd.f32 %v4662_v60, %v4661_v21  ;;  %v5086_v21 = vmax.f32 %v5054_v57, %v5070_v7  ;;  %v5202_v7 = vld [vmem:[%s11155_s19 + $0x320] sm:$0xff] }
 0xf86   :  { %v5063_v45 = vadd.f32 %v11440_v27, %v4763_v34  ;;  %v5065_v63 = vadd.f32 %v11441_v55, %v4840_v59  ;;  %v5087_v13 = vmax.f32 %v5055_v61, %v5071_v30  ;;  %v5089_v58 = vmax.f32 %v5057_v52, %v5073_v33  ;;  %v5171_v61 = vld [vmem:[%s11155_s19 + $0x228] sm:$0xff]  ;;  %v5220_v30 = vld [vmem:[%s11155_s19 + $0x3b0] sm:$0xff]  ;;  %v11442_v0 = vld [vmem:[#allocation28_spill] sm:$0xff] }
 0xf87   :  { %v5088_v54 = vmax.f32 %v5056_v36, %v5072_v8  ;;  %v5078_v31 = vmul.f32 0.2, %v5062_v48  ;;  %v5080_v39 = vmul.f32 0.2, %v5064_v14  ;;  %v4657_v57 = vrot.slane %v10799_v2, 1  ;;  %v5203_v8 = vld [vmem:[%s11155_s19 + $0x328] sm:$0xff] }
 0xf88   :  { %v5079_v53 = vmul.f32 0.2, %v5063_v45  ;;  %v5081_v4 = vmul.f32 0.2, %v5065_v63  ;;  %5294 = vmatprep.mubr.f32.mxu1 %v5087_v13  ;;  %5369 = vmatprep.mubr.f32.mxu0 %v5089_v58  ;;  %v4671_v36 = vrot.slane %v10801_v32, 1  ;;  %v7839_v60 = vpack.c.bf16 %v5201_v23, %v5200_v11  ;;  %v5172_v59 = vld [vmem:[%s11155_s19 + $0x230] sm:$0xff] }
 0xf89   :  { %5295 = vmatmul.mubr.f32.vlgmr.msra.gmra.mrb[90].mxu1 %v5086_v21  ;;  %5370 = vmatmul.mubr.f32.vlgmr.msra.gmra.mrb[76].mxu0 %v5088_v54  ;;  %v4664_v62 = vrot.slane %v4663_v35, 1  ;;  %v4678_v17 = vrot.slane %v4677_v43, 1  ;;  %v5094_v20 = vmax.f32 %v5062_v48, %v5078_v31  ;;  %v5096_v3 = vmax.f32 %v5064_v14, %v5080_v39  ;;  %v5222_v23 = vld [vmem:[%s11155_s19 + $0x3c0] sm:$0xff] }
 0xf8a   :  { %7804 = vmatpush3.bf16.msra.mxu1 %v7803_v26  ;;  %7836 = vmatpush3.bf16.msra.mxu0 %v7835_v29  ;;  %v5095_v15 = vmax.f32 %v5063_v45, %v5079_v53  ;;  %v5097_v52 = vmax.f32 %v5065_v63, %v5081_v4  ;;  %v7841_v56 = vpack.c.bf16 %v5219_v12, %v5218_v51  ;;  %v5188_v26 = vld [vmem:[%s11155_s19 + $0x2b0] sm:$0xff]  ;;  %v5189_v29 = vld [vmem:[%s11155_s19 + $0x2b8] sm:$0xff]  ;;  %v5191_v63 = vld [vmem:[%s11155_s19 + $0x2c8] sm:$0xff] }
 0xf8b   :  { %7806 = vmatprep.subr.bf16.mxu1 %v7805_v46  ;;  %7838 = vmatprep.subr.bf16.mxu0 %v7837_v47  ;;  %v7811_v40 = vpack.c.bf16 %v5171_v61, %v5170_v9  ;;  %v5221_v46 = vld [vmem:[%s11155_s19 + $0x3b8] sm:$0xff]  ;;  %v4658_v47 = vadd.f32 %v4657_v57, %v10799_v2  ;;  %v4672_v33 = vadd.f32 %v4671_v36, %v10801_v32  ;;  %v5204_v32 = vld [vmem:[%s11155_s19 + $0x330] sm:$0xff]  ;;  %v5174_v4 = vld [vmem:[%s11155_s19 + $0x240] sm:$0xff] }
 0xf8c   :  { %5299 = vmatprep.mubr.f32.mxu1 %v5095_v15  ;;  %5374 = vmatprep.mubr.f32.mxu0 %v5097_v52  ;;  %v7843_v34 = vpack.c.bf16 %v5203_v8, %v5202_v7  ;;  %v4665_v16 = vadd.f32 %v4664_v62, %v4663_v35  ;;  %v4679_v14 = vadd.f32 %v4678_v17, %v4677_v43  ;;  %v5173_v2 = vld [vmem:[%s11155_s19 + $0x238] sm:$0xff]  ;;  %v5190_v43 = vld [vmem:[%s11155_s19 + $0x2c0] sm:$0xff]  ;;  %v11445_v12 = vld [vmem:[#allocation78_spill] sm:$0xff] }
 0xf8d   :  { %5300 = vmatmul.mubr.f32.gmra.mrb[92].mxu1 %v5094_v20  ;;  %5375 = vmatmul.mubr.f32.gmra.mrb[78].mxu0 %v5096_v3  ;;  %v7813_v10 = vpack.c.bf16 %v5189_v29, %v5188_v26  ;;  %v7845_v35 = vpack.c.bf16 %v5221_v46, %v5220_v30  ;;  %v11443_v54 = vld [vmem:[#allocation76_spill] sm:$0xff]  ;;  %v7815_v39 = vpack.c.bf16 %v5173_v2, %v5172_v59  ;;  %v5175_v9 = vld [vmem:[%s11155_s19 + $0x248] sm:$0xff]  ;;  %v5192_v20 = vld [vmem:[%s11155_s19 + $0x2d0] sm:$0xff] }
 0xf8e   :  { %v4908_v38 = vpop.f32.mrb[86].mxu1  ;;  %v4985_v48 = vpop.f32.mrb[72].mxu0  ;;  %7808 = vmatpush3.bf16.msra.mxu1 %v7807_v28  ;;  %7840 = vmatpush3.bf16.msra.mxu0 %v7839_v60  ;;  %v7847_v53 = vpack.c.bf16 %v5205_v22, %v5204_v32  ;;  %v11444_v28 = vld [vmem:[#allocation31_spill] sm:$0xff]  ;;  %v5206_v61 = vld [vmem:[%s11155_s19 + $0x340] sm:$0xff]  ;;  %v5207_v15 = vld [vmem:[%s11155_s19 + $0x348] sm:$0xff]  ;;  %v7849_v8 = vpack.c.bf16 %v5223_v1, %v5222_v23 }
 0xf8f   :  { %v4909_v11 = vadd.f32 %v4908_v38, %v4658_v47  ;;  %v4986_v27 = vadd.f32 %v4985_v48, %v4672_v33  ;;  %v4910_v45 = vpop.f32.mrb[87].mxu1  ;;  %v4987_v55 = vpop.f32.mrb[73].mxu0  ;;  %7810 = vmatprep.subr.bf16.mxu1 %v7809_v49  ;;  %7842 = vmatprep.subr.bf16.mxu0 %v7841_v56  ;;  %v7817_v49 = vpack.c.bf16 %v5191_v63, %v5190_v43  ;;  %v5193_v3 = vld [vmem:[%s11155_s19 + $0x2d8] sm:$0xff]  ;;  %v5224_v30 = vld [vmem:[%s11155_s19 + $0x3d0] sm:$0xff]  ;;  %v5194_v63 = vld [vmem:[%s11155_s19 + $0x2e0] sm:$0xff] }
 0xf90   :  { %v4911_v13 = vadd.f32 %v4910_v45, %v4665_v16  ;;  %v4988_v58 = vadd.f32 %v4987_v55, %v4679_v14  ;;  %v5225_v46 = vld [vmem:[%s11155_s19 + $0x3d8] sm:$0xff]  ;;  %v7819_v38 = vpack.c.bf16 %v5175_v9, %v5174_v4  ;;  %v7851_v48 = vpack.c.bf16 %v5207_v15, %v5206_v61  ;;  %v5176_v22 = vld [vmem:[%s11155_s19 + $0x250] sm:$0xff]  ;;  %v5227_v23 = vld [vmem:[%s11155_s19 + $0x3e8] sm:$0xff] }
 0xf91   :  { %v10884_v21 = vadd.f32 %v11442_v0, %v4909_v11  ;;  %v10887_v31 = vadd.f32 %v11443_v54, %v4986_v27  ;;  %v5177_v11 = vld [vmem:[%s11155_s19 + $0x258] sm:$0xff]  ;;  %v7821_v45 = vpack.c.bf16 %v5193_v3, %v5192_v20  ;;  %v7853_v55 = vpack.c.bf16 %v5225_v46, %v5224_v30  ;;  %v5178_v54 = vld [vmem:[%s11155_s19 + $0x260] sm:$0xff]  ;;  %v5180_v61 = vld [vmem:[%s11155_s19 + $0x270] sm:$0xff] }
 0xf92   :  { %v5059_v51 = vadd.f32 %v11444_v28, %v4911_v13  ;;  %v5061_v57 = vadd.f32 %v11445_v12, %v4988_v58  ;;  %v4914_v36 = vpop.f32.mrb[88].mxu1  ;;  %v4991_v60 = vpop.f32.mrb[74].mxu0  ;;  %7812 = vmatpush3.bf16.msra.mxu1 %v7811_v40  ;;  %7844 = vmatpush3.bf16.msra.mxu0 %v7843_v34  ;;  %v11447_v34 = vld [vmem:[#allocation80_spill] sm:$0xff]  ;;  %v5195_v13 = vld [vmem:[%s11155_s19 + $0x2e8] sm:$0xff]  ;;  %v7823_v1 = vpack.c.bf16 %v5177_v11, %v5176_v22  ;;  %v5196_v12 = vld [vmem:[%s11155_s19 + $0x2f0] sm:$0xff] }
 0xf93   :  { %v4915_v52 = vadd.f32 %v4914_v36, %v4658_v47  ;;  %v4992_v62 = vadd.f32 %v4991_v60, %v4672_v33  ;;  %v4916_v17 = vpop.f32.mrb[89].mxu1  ;;  %v4993_v7 = vpop.f32.mrb[75].mxu0  ;;  %7814 = vmatprep.subr.bf16.mxu1 %v7813_v10  ;;  %7846 = vmatprep.subr.bf16.mxu0 %v7845_v35  ;;  %v11446_v47 = vld [vmem:[#allocation34_spill] sm:$0xff]  ;;  %v11448_v10 = vld [vmem:[#allocation37_spill] sm:$0xff]  ;;  %v5209_v43 = vld [vmem:[%s11155_s19 + $0x358] sm:$0xff] }
 0xf94   :  { %v5075_v56 = vmul.f32 0.2, %v5059_v51  ;;  %v5077_v26 = vmul.f32 0.2, %v5061_v57  ;;  %v4917_v29 = vadd.f32 %v4916_v17, %v4665_v16  ;;  %v4994_v40 = vadd.f32 %v4993_v7, %v4679_v14  ;;  %v11449_v16 = vld [vmem:[#allocation82_spill] sm:$0xff]  ;;  %v5226_v58 = vld [vmem:[%s11155_s19 + $0x3e0] sm:$0xff] }
 0xf95   :  { %v10916_v33 = vadd.f32 %v11446_v47, %v4915_v52  ;;  %v10919_v59 = vadd.f32 %v11447_v34, %v4992_v62  ;;  %v5208_v35 = vld [vmem:[%s11155_s19 + $0x350] sm:$0xff]  ;;  %v7857_v4 = vpack.c.bf16 %v5227_v23, %v5226_v58  ;;  %v5210_v28 = vld [vmem:[%s11155_s19 + $0x360] sm:$0xff]  ;;  %v5229_v60 = vld [vmem:[%s11155_s19 + $0x3f8] sm:$0xff]  ;;  %v5074_v3 = vmul.f32 0.2, %v10884_v21 }
 0xf96   :  { %v10922_v2 = vadd.f32 %v11448_v10, %v4917_v29  ;;  %v10925_v14 = vadd.f32 %v11449_v16, %v4994_v40  ;;  %7816 = vmatpush3.bf16.msra.mxu1 %v7815_v39  ;;  %7848 = vmatpush3.bf16.msra.mxu0 %v7847_v53  ;;  %v5091_v32 = vmax.f32 %v5059_v51, %v5075_v56  ;;  %v5179_v39 = vld [vmem:[%s11155_s19 + $0x268] sm:$0xff]  ;;  %v5228_v36 = vld [vmem:[%s11155_s19 + $0x3f0] sm:$0xff]  ;;  %v5181_v62 = vld [vmem:[%s11155_s19 + $0x278] sm:$0xff]  ;;  %v5076_v56 = vmul.f32 0.2, %v10887_v31 }
 0xf97   :  { %v5093_v27 = vmax.f32 %v5061_v57, %v5077_v26  ;;  %7818 = vmatprep.subr.bf16.mxu1 %v7817_v49  ;;  %7850 = vmatprep.subr.bf16.mxu0 %v7849_v8  ;;  %v7855_v0 = vpack.c.bf16 %v5209_v43, %v5208_v35  ;;  %v7825_v53 = vpack.c.bf16 %v5195_v13, %v5194_v63  ;;  %v5211_v51 = vld [vmem:[%s11155_s19 + $0x368] sm:$0xff]  ;;  %v5197_v57 = vld [vmem:[%s11155_s19 + $0x2f8] sm:$0xff]  ;;  %v5212_v17 = vld [vmem:[%s11155_s19 + $0x370] sm:$0xff]  ;;  %v5082_v46 = vmul.f32 0.2, %v10916_v33 }
 0xf98   :  { %5444 = vmatprep.mubr.f32.mxu1 %v5091_v32  ;;  %v7827_v49 = vpack.c.bf16 %v5179_v39, %v5178_v54  ;;  %v7859_v9 = vpack.c.bf16 %v5211_v51, %v5210_v28  ;;  %v7829_v15 = vpack.c.bf16 %v5197_v57, %v5196_v12  ;;  %v7861_v52 = vpack.c.bf16 %v5229_v60, %v5228_v36  ;;  %v5213_v7 = vld [vmem:[%s11155_s19 + $0x378] sm:$0xff] }
 0xf99   :  { %5519 = vmatprep.mubr.f32.mxu0 %v5093_v27  ;;  %v7831_v8 = vpack.c.bf16 %v5181_v62, %v5180_v61  ;;  %v7863_v20 = vpack.c.bf16 %v5213_v7, %v5212_v17  ;;  %v5083_v26 = vmul.f32 0.2, %v10922_v2  ;;  %v5085_v29 = vmul.f32 0.2, %v10925_v14 }
 0xf9a   :  { %7820 = vmatpush3.bf16.msra.mxu1 %v7819_v38  ;;  %7852 = vmatpush3.bf16.msra.mxu0 %v7851_v48  ;;  %v5090_v40 = vmax.f32 %v10884_v21, %v5074_v3  ;;  %v5092_v30 = vmax.f32 %v10887_v31, %v5076_v56  ;;  %v5084_v47 = vmul.f32 0.2, %v10919_v59  ;;  %v5098_v21 = vmax.f32 %v10916_v33, %v5082_v46 }
 0xf9b   :  { %7822 = vmatprep.subr.bf16.mxu1 %v7821_v45  ;;  %7854 = vmatprep.subr.bf16.mxu0 %v7853_v55  ;;  %v5099_v34 = vmax.f32 %v10922_v2, %v5083_v26  ;;  %v5101_v38 = vmax.f32 %v10925_v14, %v5085_v29 }
 0xf9c   :  { %v5100_v31 = vmax.f32 %v10919_v59, %v5084_v47 }
 0xf9e   :  { %7824 = vmatpush3.bf16.msra.mxu1 %v7823_v1  ;;  %7856 = vmatpush3.bf16.msra.mxu0 %v7855_v0 }
 0xf9f   :  { %7826 = vmatprep.subr.bf16.mxu1 %v7825_v53  ;;  %7858 = vmatprep.subr.bf16.mxu0 %v7857_v4 }
 0xfa2   :  { %7828 = vmatpush3.bf16.msra.mxu1 %v7827_v49  ;;  %7860 = vmatpush3.bf16.msra.mxu0 %v7859_v9 }
 0xfa3   :  { %7830 = vmatprep.subr.bf16.mxu1 %v7829_v15  ;;  %7862 = vmatprep.subr.bf16.mxu0 %v7861_v52 }
 0xfa6   :  { %7832 = vmatpush3.bf16.msra.mxu1 %v7831_v8  ;;  %7864 = vmatpush3.bf16.msra.mxu0 %v7863_v20 }
 0xfa7   :  { %7866 = vmatprep.subr.bf16.mxu1 %v10410_v5 }
 0xfa9   :  { %5445 = vmatmul.mubr.f32.vlgmr.msra.gmra.mrb[94].mxu1 %v5090_v40  ;;  %5520 = vmatmul.mubr.f32.vlgmr.msra.gmra.mrb[80].mxu0 %v5092_v30 }
 0xfaa   :  { %5449 = vmatprep.mubr.f32.mxu1 %v5099_v34  ;;  %5524 = vmatprep.mubr.f32.mxu0 %v5101_v38 }
 0xfab   :  { %7868 = vmatpush3.bf16.msra.mxu1 %v10410_v5 }
 0xfad   :  { %5450 = vmatmul.mubr.f32.gmra.mrb[96].mxu1 %v5098_v21  ;;  %5525 = vmatmul.mubr.f32.gmra.mrb[82].mxu0 %v5100_v31 }
0x105c   :  { %v6716_v48 = vpop.f32.mrb[90].mxu1  ;;  %v6754_v10 = vpop.f32.mrb[76].mxu0 }
0x105d   :  { %v6717_v16 = vpop.f32.mrb[91].mxu1  ;;  %v6755_v32 = vpop.f32.mrb[77].mxu0 }
0x105e   :  { %v6718_v22 = vadd.f32 %v6717_v16, %v6716_v48  ;;  %v6756_v2 = vadd.f32 %v6755_v32, %v6754_v10 }
0x1060   :  { %v5372_v11 = vadd.f32 %v6756_v2, %v6718_v22  ;;  %v6719_v14 = vpop.f32.mrb[92].mxu1  ;;  %v6757_v27 = vpop.f32.mrb[78].mxu0 }
0x1061   :  { %v6720_v45 = vpop.f32.mrb[93].mxu1  ;;  %v6758_v55 = vpop.f32.mrb[79].mxu0 }
0x1062   :  { %v6721_v35 = vadd.f32 %v6720_v45, %v6719_v14  ;;  %v6759_v43 = vadd.f32 %v6758_v55, %v6757_v27 }
0x1064   :  { %v5377_v5 = vadd.f32 %v6759_v43, %v6721_v35 }
0x107c   :  { %v6792_v63 = vpop.f32.mrb[94].mxu1  ;;  %v6830_v33 = vpop.f32.mrb[80].mxu0 }
0x107d   :  { %v6793_v13 = vpop.f32.mrb[95].mxu1  ;;  %v6831_v59 = vpop.f32.mrb[81].mxu0 }
0x107e   :  { %v6794_v58 = vadd.f32 %v6793_v13, %v6792_v63  ;;  %v6832_v23 = vadd.f32 %v6831_v59, %v6830_v33 }
0x1080   :  { %v5447_v1 = vadd.f32 %v6794_v58, %v5372_v11  ;;  %v6795_v0 = vpop.f32.mrb[96].mxu1  ;;  %v6833_v54 = vpop.f32.mrb[82].mxu0 }
0x1081   :  { %v6796_v39 = vpop.f32.mrb[97].mxu1  ;;  %v6834_v53 = vpop.f32.mrb[83].mxu0 }
0x1082   :  { %v5522_v4 = vadd.f32 %v6832_v23, %v5447_v1  ;;  %v6797_v28 = vadd.f32 %v6796_v39, %v6795_v0  ;;  %v6835_v51 = vadd.f32 %v6834_v53, %v6833_v54 }
0x1084   :  { %v5452_v12 = vadd.f32 %v6797_v28, %v5377_v5  ;;  %v5635_v57 = vadd.f32 %v5522_v4, %v9513_v41  ;;  %v5758_v49 = vadd.f32 %v5522_v4, %v9515_v19  ;;  %v5881_v52 = vadd.f32 %v5522_v4, %v9530_v6 }
0x1085   :  { %v5530_v11 = vadd.f32 %v5522_v4, %v9180_v50 }
0x1086   :  { %v5527_v36 = vadd.f32 %v6835_v51, %v5452_v12  ;;  %v5637_v60 = vsel %vm1926_vm3, %v5635_v57, -inf  ;;  %v5760_v15 = vsel %vm2056_vm4, %v5758_v49, -inf  ;;  %v5883_v41 = vsel %vm2186_vm5, %v5881_v52, -inf }
0x1087   :  { %5638 = vmax.xlane.f32.xlu0 %v5637_v60  ;;  %v5532_v14 = vsel %vm167_vm0, %v5530_v11, -inf }
0x1088   :  { %v5636_v9 = vadd.f32 %v5527_v36, %v9517_v25  ;;  %v5759_v62 = vadd.f32 %v5527_v36, %v9523_v18  ;;  %v5882_v7 = vadd.f32 %v5527_v36, %v9540_v24  ;;  %v5531_v27 = vadd.f32 %v5527_v36, %v9186_v42 }
0x108a   :  { %v5640_v61 = vsel %vm1926_vm3, %v5636_v9, -inf  ;;  %v5763_v17 = vsel %vm2056_vm4, %v5759_v62, -inf  ;;  %v5886_v19 = vsel %vm2186_vm5, %v5882_v7, -inf  ;;  %v5535_v45 = vsel %vm167_vm0, %v5531_v27, -inf }
0x108b   :  { %5641 = vmax.xlane.f32.xlu1 %v5640_v61  ;;  %5761 = vmax.xlane.f32.xlu0 %v5760_v15 }
0x108f   :  { %5884 = vmax.xlane.f32.xlu1 %v5883_v41  ;;  %5764 = vmax.xlane.f32.xlu0 %v5763_v17 }
0x1093   :  { %5887 = vmax.xlane.f32.xlu0 %v5886_v19 }
0x1114   :  { %v5639_v25 = vpop.xlane.xlu0 %5638 }
0x1115   :  { %v5643_v8 = vsub.f32 %v5635_v57, %v5639_v25 }
0x1117   :  { %v5645_v20 = vmul.f32 1.442695, %v5643_v8 }
0x1118   :  { %v5642_v3 = vpop.xlane.xlu1 %5641  ;;  %v5762_v6 = vpop.xlane.xlu0 %5761 }
0x1119   :  { %8016 = vpow2.f32 %v5645_v20  ;;  %v5644_v18 = vsub.f32 %v5636_v9, %v5642_v3  ;;  %v5766_v56 = vsub.f32 %v5758_v49, %v5762_v6 }
0x111b   :  { %v5647_v26 = vmul.f32 1.442695, %v5644_v18  ;;  %v5768_v29 = vmul.f32 1.442695, %v5766_v56 }
0x111c   :  { %v5885_v40 = vpop.xlane.xlu1 %5884  ;;  %v5765_v30 = vpop.xlane.xlu0 %5764 }
0x111d   :  { %8018 = vpow2.f32 %v5647_v26  ;;  %v5889_v46 = vsub.f32 %v5881_v52, %v5885_v40  ;;  %v5767_v24 = vsub.f32 %v5759_v62, %v5765_v30 }
0x111e   :  { %8020 = vpow2.f32 %v5768_v29 }
0x111f   :  { %v5891_v47 = vmul.f32 1.442695, %v5889_v46  ;;  %v5770_v34 = vmul.f32 1.442695, %v5767_v24 }
0x1120   :  { %v5888_v38 = vpop.xlane.xlu0 %5887 }
0x1121   :  { %8022 = vpow2.f32 %v5891_v47  ;;  %v5890_v21 = vsub.f32 %v5882_v7, %v5888_v38 }
0x1122   :  { %8024 = vpow2.f32 %v5770_v34 }
0x1123   :  { %v11013_v31 = vpop.eup %8016  ;;  %v5893_v48 = vmul.f32 1.442695, %v5890_v21 }
0x1124   :  { %5651 = vrot.lane.b32.xlu1 %v11013_v31, %s8113_s9 }
0x1125   :  { %8026 = vpow2.f32 %v5893_v48 }
0x1127   :  { %v11017_v10 = vpop.eup %8018 }
0x1128   :  { %v11019_v16 = vpop.eup %8020  ;;  %5653 = vrot.lane.b32.xlu0 %v11017_v10, %s8113_s9 }
0x1129   :  { %5774 = vrot.lane.b32.xlu1 %v11019_v16, %s8114_s7 }
0x112b   :  { %v11025_v32 = vpop.eup %8022 }
0x112c   :  { %v11027_v22 = vpop.eup %8024  ;;  %5897 = vrot.lane.b32.xlu0 %v11025_v32, %s8115_s28 }
0x112d   :  { %5776 = vrot.lane.b32.xlu1 %v11027_v22, %s8114_s7 }
0x112f   :  { %v11033_v2 = vpop.eup %8026 }
0x1131   :  { %5899 = vrot.lane.b32.xlu1 %v11033_v2, %s8115_s28 }
0x114b   :  { %5533 = vmax.xlane.f32.xlu0 %v5532_v14 }
0x1155   :  { %5536 = vmax.xlane.f32.xlu1 %v5535_v45 }
0x1196   :  { %v5652_v55 = vpop.permute.xlu1 %5651 }
0x1197   :  { %v5657_v35 = vsel %vm167_vm0, %v5652_v55, 0.0 }
0x1198   :  { %5658 = vadd.xlane.f32.xlu0 %v5657_v35 }
0x119a   :  { %v5654_v43 = vpop.permute.xlu0 %5653 }
0x119b   :  { %v5775_v5 = vpop.permute.xlu1 %5774  ;;  %v5660_v63 = vsel %vm167_vm0, %v5654_v43, 0.0 }
0x119c   :  { %v5780_v33 = vsel %vm167_vm0, %v5775_v5, 0.0  ;;  %5661 = vadd.xlane.f32.xlu0 %v5660_v63 }
0x119d   :  { %5781 = vadd.xlane.f32.xlu1 %v5780_v33  ;;  %v8116_v33 = vmov 0.0|0.0  }
0x119e   :  { %v5898_v50 = vpop.permute.xlu0 %5897 }
0x119f   :  { %v5777_v13 = vpop.permute.xlu1 %5776  ;;  %v5903_v59 = vsel %vm167_vm0, %v5898_v50, 0.0 }
0x11a0   :  { %v5783_v42 = vsel %vm167_vm0, %v5777_v13, 0.0 }
0x11a1   :  { %5904 = vadd.xlane.f32.xlu1 %v5903_v59  ;;  %5784 = vadd.xlane.f32.xlu0 %v5783_v42  ;;  %v6119_v59 = vld [vmem:[%s11157_s21] sm:$0xff]  ;;  %v6120_v42 = vld [vmem:[%s11157_s21 + $0x8] sm:$0xff] }
0x11a3   :  { %v5900_v58 = vpop.permute.xlu1 %5899 }
0x11a4   :  { %v5906_v23 = vsel %vm167_vm0, %v5900_v58, 0.0  ;;  %v6121_v58 = vld [vmem:[%s11157_s21 + $0x10] sm:$0xff] }
0x11a5   :  { %5907 = vadd.xlane.f32.xlu0 %v5906_v23 }
0x11d8   :  { %v5534_v1 = vpop.xlane.xlu0 %5533 }
0x11d9   :  { %v5538_v0 = vsub.f32 %v5530_v11, %v5534_v1  ;;  %v7885_v1 = vpack.c.bf16 %v6120_v42, %v6119_v59 }
0x11db   :  { %v5540_v54 = vmul.f32 1.442695, %v5538_v0  ;;  %v6122_v0 = vld [vmem:[%s11157_s21 + $0x18] sm:$0xff] }
0x11dd   :  { %8028 = vpow2.f32 %v5540_v54 }
0x11e2   :  { %v5537_v39 = vpop.xlane.xlu1 %5536 }
0x11e3   :  { %v5539_v53 = vsub.f32 %v5531_v27, %v5537_v39  ;;  %v6123_v39 = vld [vmem:[%s11157_s21 + $0x20] sm:$0xff] }
0x11e5   :  { %v5542_v4 = vmul.f32 1.442695, %v5539_v53  ;;  %v6124_v53 = vld [vmem:[%s11157_s21 + $0x28] sm:$0xff] }
0x11e7   :  { %v8029_v28 = vpop.eup %8028  ;;  %8030 = vpow2.f32 %v5542_v4  ;;  %v7891_v4 = vpack.c.bf16 %v6124_v53, %v6123_v39 }
0x11e8   :  { %v5544_v51 = vsel %vm167_vm0, %v8029_v28, 0.0 }
0x11e9   :  { %5545 = vadd.xlane.f32.xlu1 %v5544_v51  ;;  %v6126_v51 = vld [vmem:[%s11157_s21 + $0x38] sm:$0xff] }
0x11f1   :  { %v8031_v12 = vpop.eup %8030 }
0x11f2   :  { %v5547_v57 = vsel %vm167_vm0, %v8031_v12, 0.0 }
0x11f3   :  { %5548 = vadd.xlane.f32.xlu0 %v5547_v57 }
0x11fa   :  { %7938 = vrot.lane.b32.xlu1 %v10412_v44, %s8113_s9 }
0x11fe   :  { %7948 = vrot.lane.b32.xlu1 %v10412_v44, %s8115_s28 }
0x1209   :  { %7943 = vrot.lane.b32.xlu0 %v10412_v44, %s8114_s7 }
0x1225   :  { %v5659_v36 = vpop.xlane.xlu0 %5658 }
0x1226   :  { %8032 = vrcp.f32 %v5659_v36 }
0x1229   :  { %v5662_v60 = vpop.xlane.xlu0 %5661 }
0x122a   :  { %v5782_v49 = vpop.xlane.xlu1 %5781  ;;  %8034 = vrcp.f32 %v5662_v60 }
0x122b   :  { %8036 = vrcp.f32 %v5782_v49 }
0x122e   :  { %v5905_v9 = vpop.xlane.xlu1 %5904  ;;  %v5785_v61 = vpop.xlane.xlu0 %5784 }
0x122f   :  { %8038 = vrcp.f32 %v5905_v9 }
0x1230   :  { %v8033_v15 = vpop.eup %8032  ;;  %8040 = vrcp.f32 %v5785_v61  ;;  %v6317_v61 = vld [vmem:[%s11156_s20] ss:$0 sm:$0xff] }
0x1231   :  { %v5665_v52 = vmul.f32 %v8033_v15, %v11013_v31 }
0x1232   :  { %v5908_v62 = vpop.xlane.xlu0 %5907 }
0x1233   :  { %8042 = vrcp.f32 %v5908_v62  ;;  %5669 = vrot.lane.b32.xlu1 %v5665_v52, %s8113_s9 }
0x1234   :  { %v8035_v41 = vpop.eup %8034 }
0x1235   :  { %v8037_v17 = vpop.eup %8036  ;;  %v5666_v44 = vmul.f32 %v8035_v41, %v11017_v10 }
0x1236   :  { %v5788_v7 = vmul.f32 %v8037_v17, %v11019_v16 }
0x1237   :  { %5671 = vrot.lane.b32.xlu0 %v5666_v44, %s8113_s9 }
0x1238   :  { %5792 = vrot.lane.b32.xlu1 %v5788_v7, %s8114_s7 }
0x1239   :  { %v8039_v19 = vpop.eup %8038 }
0x123a   :  { %v8041_v25 = vpop.eup %8040  ;;  %v5911_v8 = vmul.f32 %v8039_v19, %v11025_v32 }
0x123b   :  { %v5789_v20 = vmul.f32 %v8041_v25, %v11027_v22 }
0x123c   :  { %5915 = vrot.lane.b32.xlu1 %v5911_v8, %s8115_s28 }
0x123d   :  { %v8043_v3 = vpop.eup %8042  ;;  %5794 = vrot.lane.b32.xlu0 %v5789_v20, %s8114_s7 }
0x123e   :  { %v5912_v6 = vmul.f32 %v8043_v3, %v11033_v2 }
0x1241   :  { %5917 = vrot.lane.b32.xlu0 %v5912_v6, %s8115_s28  ;;  %v6045_v6 = vld [vmem:[%s11450_s25] sm:$0x3] }
0x1276   :  { %v5546_v18 = vpop.xlane.xlu1 %5545 }
0x1277   :  { %8044 = vrcp.f32 %v5546_v18 }
0x127a   :  { %v7939_v56 = vpop.permute.xlu1 %7938 }
0x127b   :  { %v7941_v26 = vunpack.i.h.bf16 %v7939_v56  ;;  %v7940_v29 = vunpack.i.l.bf16 %v7939_v56 }
0x127d   :  { %v7869_v40 = vpack.c.bf16 %v7941_v26, %v7940_v29  ;;  %v6319_v26 = vld [vmem:[%s11158_s22] ss:$0 sm:$0xff] }
0x127e   :  { %v7949_v30 = vpop.permute.xlu1 %7948 }
0x127f   :  { %v7951_v46 = vunpack.i.h.bf16 %v7949_v30  ;;  %v7950_v24 = vunpack.i.l.bf16 %v7949_v30  ;;  %7870 = vmatprep.subr.bf16.mxu1 %v7869_v40 }
0x1280   :  { %v5549_v47 = vpop.xlane.xlu0 %5548 }
0x1281   :  { %v8045_v34 = vpop.eup %8044  ;;  %v7877_v38 = vpack.c.bf16 %v7951_v46, %v7950_v24  ;;  %8046 = vrcp.f32 %v5549_v47 }
0x1282   :  { %v5552_v21 = vmul.f32 %v8045_v34, %v8029_v28  ;;  %v6125_v28 = vld [vmem:[%s11157_s21 + $0x30] sm:$0xff] }
0x1283   :  { %7878 = vmatprep.subr.bf16.mxu0 %v7877_v38 }
0x1284   :  { %6967 = vmatprep.mubr.msk.f32.mxu1 %vm167_vm0, %v5552_v21  ;;  %7880 = vmatpush3.bf16.msra.mxu0 %v7877_v38  ;;  %v7944_v31 = vpop.permute.xlu0 %7943 }
0x1285   :  { %v7946_v48 = vunpack.i.h.bf16 %v7944_v31  ;;  %v7945_v10 = vunpack.i.l.bf16 %v7944_v31  ;;  %7884 = vmatprep.subr.bf16.mxu0 %v8116_v33 }
0x1287   :  { %v7873_v22 = vpack.c.bf16 %v7946_v48, %v7945_v10 }
0x128b   :  { %v8047_v16 = vpop.eup %8046 }
0x128c   :  { %v5553_v32 = vmul.f32 %v8047_v16, %v8031_v12  ;;  %v7894_v12 = vpack.c.bf16 %v6126_v51, %v6125_v28 }
0x128e   :  { %6968 = vmatmul.mubr.msk.f32.vlgmr.msra.gmra.mrb[98].mxu1 %vm167_vm0, %v5553_v32 }
0x128f   :  { %7872 = vmatpush3.bf16.msra.mxu1 %v7869_v40 }
0x1290   :  { %7874 = vmatprep.subr.bf16.mxu1 %v7873_v22 }
0x12a5   :  { %v5670_v2 = vpop.permute.xlu1 %5669 }
0x12a6   :  { %6974 = vmatprep.mubr.msk.f32.mxu1 %vm167_vm0, %v5670_v2 }
0x12a9   :  { %v5672_v11 = vpop.permute.xlu0 %5671 }
0x12aa   :  { %v5793_v14 = vpop.permute.xlu1 %5792  ;;  %6975 = vmatmul.mubr.msk.f32.vlgmr.msra.gmra.mrb[100].mxu1 %vm167_vm0, %v5672_v11 }
0x12ab   :  { %7876 = vmatpush3.bf16.msra.mxu1 %v7873_v22  ;;  %6981 = vmatprep.mubr.msk.f32.mxu1 %vm167_vm0, %v5793_v14 }
0x12ac   :  { %7881 = vmatprep.subr.bf16.mxu1 %v8116_v33 }
0x12ae   :  { %v5916_v27 = vpop.permute.xlu1 %5915 }
0x12af   :  { %v5795_v45 = vpop.permute.xlu0 %5794  ;;  %6988 = vmatprep.mubr.msk.f32.mxu0 %vm167_vm0, %v5916_v27 }
0x12b0   :  { %6982 = vmatmul.mubr.msk.f32.vlgmr.msra.gmra.mrb[102].mxu1 %vm167_vm0, %v5795_v45 }
0x12b1   :  { %6995 = vmatprep.mubr.msk.f32.mxu1 %vm8117_vm8, %v11311_v37 }
0x12b3   :  { %v5918_v55 = vpop.permute.xlu0 %5917 }
0x12b4   :  { %6989 = vmatmul.mubr.msk.f32.vlgmr.msra.gmra.mrb[84].mxu0 %vm167_vm0, %v5918_v55 }
0x12b5   :  { %7014 = vmatprep.mubr.msk.f32.mxu0 %vm8117_vm8, %v11311_v37  ;;  %7886 = vmatpush3.bf16.msra.mxu0 %v7885_v1  ;;  %v7888_v37 = vpack.c.bf16 %v6122_v0, %v6121_v58 }
0x12b6   :  { %7887 = vmatprep.subr.bf16.mxu0 %v8116_v33 }
0x12b9   :  { %7889 = vmatpush3.bf16.msra.mxu0 %v7888_v37 }
0x12ba   :  { %7890 = vmatprep.subr.bf16.mxu0 %v8116_v33 }
0x12bd   :  { %7892 = vmatpush3.bf16.msra.mxu0 %v7891_v4 }
0x12be   :  { %7893 = vmatprep.subr.bf16.mxu0 %v8116_v33 }
0x12c1   :  { %7895 = vmatpush3.bf16.msra.mxu0 %v7894_v12 }
0x1361   :  { %v6969_v35 = vpop.f32.mrb[98].mxu1 }
0x1362   :  { %v5626_v43 = vpop.f32.mrb[99].mxu1 }
0x137d   :  { %v6976_v5 = vpop.f32.mrb[100].mxu1 }
0x137e   :  { %6008 = vrot.lane.b32.xlu0 %v6976_v5, %s8110_s3  ;;  %v5749_v63 = vpop.f32.mrb[101].mxu1 }
0x137f   :  { %6006 = vrot.lane.b32.xlu1 %v5749_v63, %s8110_s3 }
0x1383   :  { %v6983_v50 = vpop.f32.mrb[102].mxu1 }
0x1384   :  { %6016 = vrot.lane.b32.xlu0 %v6983_v50, %s8111_s0  ;;  %v5872_v13 = vpop.f32.mrb[103].mxu1 }
0x1385   :  { %6014 = vrot.lane.b32.xlu1 %v5872_v13, %s8111_s0 }
0x1387   :  { %v6990_v23 = vpop.f32.mrb[84].mxu0 }
0x1388   :  { %v5995_v54 = vpop.f32.mrb[85].mxu0  ;;  %6024 = vrot.lane.b32.xlu0 %v6990_v23, %s8112_s4 }
0x1389   :  { %6022 = vrot.lane.b32.xlu1 %v5995_v54, %s8112_s4 }
0x13f0   :  { %v6009_v57 = vpop.permute.xlu0 %6008 }
0x13f1   :  { %v6007_v36 = vpop.permute.xlu1 %6006  ;;  %v6029_v9 = vsel %vm167_vm0, %v6969_v35, %v6009_v57 }
0x13f2   :  { %v6028_v15 = vsel %vm167_vm0, %v5626_v43, %v6007_v36 }
0x13f6   :  { %v6017_v60 = vpop.permute.xlu0 %6016 }
0x13f7   :  { %v6015_v49 = vpop.permute.xlu1 %6014  ;;  %v6031_v52 = vsel %vm2334_vm6, %v6029_v9, %v6017_v60 }
0x13f8   :  { %v6030_v41 = vsel %vm2334_vm6, %v6028_v15, %v6015_v49 }
0x13fa   :  { %v6025_v62 = vpop.permute.xlu0 %6024 }
0x13fb   :  { %v6033_v17 = vsel %vm2337_vm7, %v6031_v52, %v6025_v62  ;;  %v6023_v44 = vpop.permute.xlu1 %6022 }
0x13fc   :  { %v6042_v7 = vadd.f32 %v6317_v61, %v6033_v17  ;;  %v6032_v19 = vsel %vm2337_vm7, %v6030_v41, %v6023_v44 }
0x13fd   :  { %v6041_v25 = vadd.f32 %v6317_v61, %v6032_v19 }
0x13fe   :  { %v6044_v8 = vmax.f32 %v6042_v7, 0.0 }
0x13ff   :  { %v6043_v20 = vmax.f32 %v6041_v25, 0.0 }
0x1401   :  { %v7882_v3 = vpack.c.bf16 %v6044_v8, %v6043_v20 }
0x1403   :  { %7883 = vmatpush3.bf16.msra.mxu1 %v7882_v3 }
0x1406   :  { %6996 = vmatmul.mubr.msk.f32.vlgmr.msra.gmra.mrb[104].mxu1 %vm167_vm0, %v6045_v6 }
0x14d9   :  { %v6115_v18 = vpop.f32.mrb[104].mxu1 }
0x14da   :  { %v6997_v56 = vpop.f32.mrb[105].mxu1  ;;  %7015 = vmatmul.mubr.msk.f32.vlgmr.msra.gmra.mrb[86].mxu0 %vm574_vm2, %v6115_v18 }
0x15ad   :  { %v6203_v29 = vpop.f32.mrb[86].mxu0 }
0x15ae   :  { %v6204_v40 = vadd.f32 %v6319_v26, %v6203_v29  ;;  %v7016_v30 = vpop.f32.mrb[87].mxu0 }
0x15b0   :  { %8048 = vtanh.f32 %v6204_v40 }
0x15ba   :  { %v8049_v46 = vpop.eup %8048 }
0x15bb   :  { %6209 = vst.msk [vmem:[#allocation2] sm:$0x3] %vm6208_vm9, %v8049_v46 }
0x15bc   :  { %8095 = shalt.err (!%p8092_p4)
}
0x15bd   :  { %s8096_s22 = scalar_lea.hbm %s11159_s23, 32 }
0x15be   :  { %p8097_p5 = scmp.ne.s32.totalorder %s11159_s23, %s8096_s22  ;;  %p8100_p6 = scmp.lt.u32.totalorder %s8096_s22, %s11159_s23 }
0x15c0   :  { %p8102_p7 = pnand %p8100_p6, %p8097_p5 }
0x15c2   :  { %8105 = shalt.err (!%p8102_p7)
}
0x15c3   :  { %6219 = dma.vmem_to_hbm [thread:$0]  %s6217_s26, 32, %s11159_s23, [#allocation3]  }
0x15c4   :  { %8106 = dma.done.wait [#allocation3], 32  }
0x15c5   :  { %8107 = vsyncadd [#allocation3], 4294967264 }
0x15c6   :  { %6223 = vsyncpa [#allocation3], 1 }

</bundles_post_ra>
